<compile_context>
chip_gen: v6e
topology: v6e:2x2x1
jax: 0.10.0
libtpu: 0.0.40
codegen_flags: <defaults>
</compile_context>

<pallas_src>
import functools
from typing import NamedTuple

import jax
import jax.numpy as jnp
from jax.experimental import pallas as pl
from jax.experimental.pallas import tpu as pltpu


class _LayerCfg(NamedTuple):
    H: int
    W: int
    Cin: int
    KH: int
    KW: int
    Cout: int
    stride: int
    pad: int
    Hp: int
    Wp: int
    Ho: int
    Wo: int
    pkh: int
    pkw: int
    Hop: int
    Wop: int


def _needs_pad_scratch(cfg):
    # Ref-based (possibly strided) tap reads need a VMEM staging buffer.
    return cfg.pad > 0 or cfg.stride > 1


def _needs_wpool_scratch(cfg):
    return cfg.pkw > 1


def _sl(start, size, stride=1):
    """Slice helper (emit strided pl.ds only when actually strided)."""
    if stride == 1:
        return pl.ds(start, size)
    return pl.ds(start, size, stride=stride)


def _pick_batch_block(n, cap=8):
    """Largest divisor NB of n with n//NB >= 2 (v7x: keep both TCs busy),
    capped so lane-padded scratch stays small."""
    if n <= 1:
        return 1
    best = 1
    for nb in range(1, min(n // 2, cap) + 1):
        if n % nb == 0:
            best = nb
    return best


# ----------------------------------------------------------------------------
# Fused kernel: ALL conv+pool layers for NB batch elements per grid step.
# refs = (x, w0, b0, ..., w_{L-1}, b_{L-1}, out, <per-layer scratch...>)
# per-layer scratch order: [pad (if pad>0 or stride>1), hpool (if pkw>1)]
# ----------------------------------------------------------------------------
def _fused_convnet_kernel(*refs, cfgs, pool_method):
    L = len(cfgs)
    x_ref = refs[0]
    o_ref = refs[1 + 2 * L]
    scratch = refs[2 + 2 * L:]

    cur = x_ref[...].astype(jnp.float32)              # (NB, H0, W0, C0)
    NB = cur.shape[0]

    s_idx = 0
    for l, cfg in enumerate(cfgs):
        w_ref = refs[1 + 2 * l]                       # (KH*KW, Cin, Cout)
        b_ref = refs[2 + 2 * l]                       # (1, Cout)

        pad_ref = None
        if _needs_pad_scratch(cfg):
            pad_ref = scratch[s_idx]                  # (NB, Hp, Wp, Cin)
            s_idx += 1
        hp_ref = None
        if _needs_wpool_scratch(cfg):
            hp_ref = scratch[s_idx]                   # (NB, Hop, Wo, Cout)
            s_idx += 1

        # -- spatial padding: zero only the 4 border slabs, write interior ----
        if pad_ref is not None:
            p, H, W, Cin = cfg.pad, cfg.H, cfg.W, cfg.Cin
            if p > 0:
                z_tb = jnp.zeros((NB, p, cfg.Wp, Cin), jnp.float32)
                z_lr = jnp.zeros((NB, H, p, Cin), jnp.float32)
                pad_ref[:, 0:p, :, :] = z_tb
                pad_ref[:, p + H:, :, :] = z_tb
                pad_ref[:, p:p + H, 0:p, :] = z_lr
                pad_ref[:, p:p + H, p + W:, :] = z_lr
            pad_ref[:, p:p + H, p:p + W, :] = cur

            def tap(kh, kw, cfg=cfg, pad_ref=pad_ref):
                return pad_ref[:, _sl(kh, cfg.Ho, cfg.stride),
                               _sl(kw, cfg.Wo, cfg.stride), :]
        else:
            # pad == 0 and stride == 1: slice taps straight from the value.
            def tap(kh, kw, cfg=cfg, cur=cur):
                return cur[:, kh:kh + cfg.Ho, kw:kw + cfg.Wo, :]

        # -- convolution: per-tap MXU matmuls, f32 accumulation ----------------
        M = NB * cfg.Ho * cfg.Wo
        acc = None
        t = 0
        for kh in range(cfg.KH):
            for kw in range(cfg.KW):
                patch = tap(kh, kw).reshape(M, cfg.Cin)      # (M, Cin)
                d = jnp.dot(patch, w_ref[t],
                            preferred_element_type=jnp.float32)
                acc = d if acc is None else acc + d
                t += 1
        acc = acc + b_ref[...]                               # (M, Cout)

        # -- pooling stage 1 (H axis): fully in-register (VPU combines) -------
        acc4 = acc.reshape(NB, cfg.Ho, cfg.Wo, cfg.Cout)
        if cfg.Ho != cfg.Hop * cfg.pkh:                      # floor-mode tail
            acc4 = acc4[:, :cfg.Hop * cfg.pkh]
        acc5 = acc4.reshape(NB, cfg.Hop, cfg.pkh, cfg.Wo, cfg.Cout)
        hp = None
        for dh in range(cfg.pkh):
            s = acc5[:, :, dh]                               # (NB, Hop, Wo, Cout)
            if hp is None:
                hp = s
            elif pool_method == "max":
                hp = jnp.maximum(hp, s)
            else:
                hp = hp + s

        # -- pooling stage 2 (W axis): strided VMEM reads ----------------------
        if hp_ref is None:                                   # pkw == 1
            pooled = hp
        else:
            hp_ref[...] = hp
            pooled = None
            for dw in range(cfg.pkw):
                win = hp_ref[:, :, _sl(dw, cfg.Wop, cfg.pkw), :]
                if pooled is None:
                    pooled = win
                elif pool_method == "max":
                    pooled = jnp.maximum(pooled, win)
                else:
                    pooled = pooled + win
        if pool_method != "max":
            pooled = pooled * (1.0 / float(cfg.pkh * cfg.pkw))

        cur = pooled                                         # (NB, Hop, Wop, Cout)

    o_ref[...] = cur.astype(o_ref.dtype)


# ----------------------------------------------------------------------------
# Jitted forward: NCHW in, torch-ordered flatten out, one pallas_call total.
# ----------------------------------------------------------------------------
@functools.partial(jax.jit, static_argnames=("cfgs", "pool_method", "flatten"))
def _convlayers_forward(x_nchw, flat_params, *, cfgs, pool_method, flatten):
    N = x_nchw.shape[0]
    NB = _pick_batch_block(N)
    x = jnp.transpose(x_nchw, (0, 2, 3, 1)).astype(jnp.float32)   # NCHW -> NHWC
    c0, last = cfgs[0], cfgs[-1]

    in_specs = [pl.BlockSpec((NB, c0.H, c0.W, c0.Cin), lambda n: (n, 0, 0, 0))]
    args = [x]
    for cfg, (w, b) in zip(cfgs, flat_params):
        T = cfg.KH * cfg.KW
        in_specs.append(pl.BlockSpec((T, cfg.Cin, cfg.Cout), lambda n: (0, 0, 0)))
        in_specs.append(pl.BlockSpec((1, cfg.Cout), lambda n: (0, 0)))
        # HWIO -> (KH*KW, Cin, Cout): tap t = kh*KW + kw matches kernel loop.
        args.append(w.reshape(T, cfg.Cin, cfg.Cout).astype(jnp.float32))
        args.append(b.reshape(1, cfg.Cout).astype(jnp.float32))

    scratch_shapes = []
    for cfg in cfgs:
        if _needs_pad_scratch(cfg):
            scratch_shapes.append(
                pltpu.VMEM((NB, cfg.Hp, cfg.Wp, cfg.Cin), jnp.float32))
        if _needs_wpool_scratch(cfg):
            scratch_shapes.append(
                pltpu.VMEM((NB, cfg.Hop, cfg.Wo, cfg.Cout), jnp.float32))

    out = pl.pallas_call(
        functools.partial(_fused_convnet_kernel, cfgs=cfgs,
                          pool_method=pool_method),
        out_shape=jax.ShapeDtypeStruct((N, last.Hop, last.Wop, last.Cout),
                                       x.dtype),
        grid=(N // NB,),
        in_specs=in_specs,
        out_specs=pl.BlockSpec((NB, last.Hop, last.Wop, last.Cout),
                               lambda n: (n, 0, 0, 0)),
        scratch_shapes=scratch_shapes,
        compiler_params=pltpu.CompilerParams(
            dimension_semantics=("parallel",),
            vmem_limit_bytes=32 * 1024 * 1024),
    )(*args)

    y = jnp.transpose(out, (0, 3, 1, 2))                          # NHWC -> NCHW
    if flatten:
        y = y.reshape(N, -1)
    return y


# ----------------------------------------------------------------------------
# ConvLayers equivalent (parameter setup / config is plain-Python glue).
# ----------------------------------------------------------------------------
class ConvLayersPallas:
    def __init__(self, input_size, channels, kernels, paddings, strides,
                 pool_kernel, pool_method="max", key=None):
        if channels[0] != input_size[0]:
            raise ValueError("channels[0] must be equal to input_size[0].")
        if key is None:
            key = jax.random.PRNGKey(0)
        self.channels = list(channels)
        self.kernels = [tuple(k) for k in kernels]
        self.paddings = list(paddings)
        self.strides = list(strides)
        self.pool_kernels = [tuple(pk) for pk in pool_kernel]
        self.pool_method = pool_method
        # TODO(synk): get_pool_func/logger in the original module are framework
        # glue; only 'max'/'avg' pooling (stride == kernel, pool padding 0) is
        # implemented.

        self.params = []
        for i_c, o_c, k in zip(self.channels[:-1], self.channels[1:],
                               self.kernels):
            kh, kw = k
            key, wkey, bkey = jax.random.split(key, 3)
            fan_in = i_c * kh * kw
            bound = float(fan_in) ** -0.5
            w = jax.random.uniform(wkey, (kh, kw, i_c, o_c), jnp.float32,
                                   minval=-bound, maxval=bound)        # HWIO
            b = jax.random.uniform(bkey, (o_c,), jnp.float32,
                                   minval=-bound, maxval=bound)
            self.params.append((w, b))

    def _layer_cfgs(self, H, W):
        cfgs = []
        h, w = H, W
        for i_c, o_c, k, p, s, pk in zip(self.channels[:-1], self.channels[1:],
                                         self.kernels, self.paddings,
                                         self.strides, self.pool_kernels):
            kh, kww = k
            hp, wp = h + 2 * p, w + 2 * p
            ho = (hp - kh) // s + 1
            wo = (wp - kww) // s + 1
            pkh, pkw = pk
            hop = (ho - pkh) // pkh + 1
            wop = (wo - pkw) // pkw + 1
            cfgs.append(_LayerCfg(H=h, W=w, Cin=i_c, KH=kh, KW=kww, Cout=o_c,
                                  stride=s, pad=p, Hp=hp, Wp=wp, Ho=ho, Wo=wo,
                                  pkh=pkh, pkw=pkw, Hop=hop, Wop=wop))
            h, w = hop, wop
        return tuple(cfgs)

    def __call__(self, x_nchw, flatten=True):
        _, _, H, W = x_nchw.shape
        cfgs = self._layer_cfgs(H, W)
        return _convlayers_forward(x_nchw, tuple(self.params),
                                   cfgs=cfgs, pool_method=self.pool_method,
                                   flatten=bool(flatten))


# ----------------------------------------------------------------------------
# Pure-JAX (XLA) reference for verification.
# ----------------------------------------------------------------------------
def reference_forward(x_nchw, model):
    x = jnp.transpose(x_nchw, (0, 2, 3, 1))
    for (w, b), p, s, pk in zip(model.params, model.paddings, model.strides,
                                model.pool_kernels):
        y = jax.lax.conv_general_dilated(
            x, w, window_strides=(s, s), padding=[(p, p), (p, p)],
            dimension_numbers=("NHWC", "HWIO", "NHWC"))
        y = y + b
        if model.pool_method == "max":
            y = jax.lax.reduce_window(
                y, -jnp.inf, jax.lax.max,
                window_dimensions=(1, pk[0], pk[1], 1),
                window_strides=(1, pk[0], pk[1], 1), padding="VALID")
        else:
            y = jax.lax.reduce_window(
                y, 0.0, jax.lax.add,
                window_dimensions=(1, pk[0], pk[1], 1),
                window_strides=(1, pk[0], pk[1], 1),
                padding="VALID") / float(pk[0] * pk[1])
        x = y
    x = jnp.transpose(x, (0, 3, 1, 2))
    return x.reshape(x.shape[0], -1)


if __name__ == "__main__":
    key = jax.random.PRNGKey(0)
    key, xk, xk8 = jax.random.split(key, 3)

    # Small config consistent with the module: input (C=4, 16, 16),
    # two conv layers 4->8->16, 3x3 kernels, pad 1, stride 1, 2x2 pools.
    input_size = (4, 16, 16)
    channels = [4, 8, 16]
    kernels = [(3, 3), (3, 3)]
    paddings = [1, 1]
    strides = [1, 1]
    pool_kernel = [(2, 2), (2, 2)]

    x = jax.random.normal(xk, (2, 4, 16, 16), jnp.float32)    # NCHW, like PyTorch
    x8 = jax.random.normal(xk8, (8, 4, 16, 16), jnp.float32)  # exercises NB>1

    model = None
    for method in ("max", "avg"):
        model = ConvLayersPallas(input_size, channels, kernels, paddings,
                                 strides, pool_kernel, pool_method=method,
                                 key=jax.random.PRNGKey(1))
        out = jax.block_until_ready(model(x, flatten=True))
        ref = jax.block_until_ready(reference_forward(x, model))
        assert out.shape == (2, 16 * 4 * 4), out.shape
        err = float(jnp.max(jnp.abs(out - ref)))
        assert jnp.allclose(out, ref, atol=1e-4, rtol=1e-3), \
            f"{method}: max abs err = {err}"

    # Batched grid path (N=8 -> NB=4, grid=(2,)), with the last-built model.
    out8 = jax.block_until_ready(model(x8, flatten=True))
    ref8 = jax.block_until_ready(reference_forward(x8, model))
    assert out8.shape == (8, 256), out8.shape
    err8 = float(jnp.max(jnp.abs(out8 - ref8)))
    assert jnp.allclose(out8, ref8, atol=1e-4, rtol=1e-3), \
        f"batched: max abs err = {err8}"

    # Exercise the flatten=False path (returns NCHW feature map like torch).
    out4d = jax.block_until_ready(model(x, flatten=False))
    assert out4d.shape == (2, 16, 4, 4), out4d.shape

    print("KERNEL_OK")
</pallas_src>

<mosaic_0001>
module attributes {stable_mosaic.version = 11 : i64} {
  func.func @_fused_convnet_kernel(%arg0: i32, %arg1: memref<1x16x16x4xf32, #tpu.memory_space<vmem>>, %arg2: memref<9x4x8xf32, #tpu.memory_space<vmem>>, %arg3: memref<1x8xf32, #tpu.memory_space<vmem>>, %arg4: memref<9x8x16xf32, #tpu.memory_space<vmem>>, %arg5: memref<1x16xf32, #tpu.memory_space<vmem>>, %arg6: memref<1x4x4x16xf32, #tpu.memory_space<vmem>>, %arg7: memref<1x18x18x4xf32, #tpu.memory_space<vmem>>, %arg8: memref<1x8x16x8xf32, #tpu.memory_space<vmem>>, %arg9: memref<1x10x10x8xf32, #tpu.memory_space<vmem>>, %arg10: memref<1x4x8x16xf32, #tpu.memory_space<vmem>>) attributes {dimension_semantics = [#tpu.dimension_semantics<parallel>], iteration_bounds = array<i64: 2>, scalar_prefetch = 0 : i64, scratch_operands = 4 : i64, tpu.core_type = #tpu.core_type<tc>, window_params = [{transform_indices = @transform_0, window_bounds = array<i64: 1, 16, 16, 4>}, {pipeline_mode = #tpu.pipeline_mode<synchronous>, transform_indices = @transform_1, window_bounds = array<i64: 9, 4, 8>}, {pipeline_mode = #tpu.pipeline_mode<synchronous>, transform_indices = @transform_2, window_bounds = array<i64: 1, 8>}, {pipeline_mode = #tpu.pipeline_mode<synchronous>, transform_indices = @transform_3, window_bounds = array<i64: 9, 8, 16>}, {pipeline_mode = #tpu.pipeline_mode<synchronous>, transform_indices = @transform_4, window_bounds = array<i64: 1, 16>}, {transform_indices = @transform_5, window_bounds = array<i64: 1, 4, 4, 16>}]} {
    %c0 = arith.constant 0 : index
    %c0_0 = arith.constant 0 : index
    %c0_1 = arith.constant 0 : index
    %c0_2 = arith.constant 0 : index
    %0 = vector.load %arg1[%c0, %c0_0, %c0_1, %c0_2] : memref<1x16x16x4xf32, #tpu.memory_space<vmem>>, vector<1x16x16x4xf32>
    %cst = arith.constant 0.000000e+00 : f32
    %1 = vector.broadcast %cst : f32 to vector<1x1x18x4xf32>
    %cst_3 = arith.constant 0.000000e+00 : f32
    %2 = vector.broadcast %cst_3 : f32 to vector<1x16x1x4xf32>
    %c0_4 = arith.constant 0 : index
    %c0_5 = arith.constant 0 : index
    %c0_6 = arith.constant 0 : index
    %c0_7 = arith.constant 0 : index
    %3 = vector.load %arg7[%c0_4, %c0_5, %c0_6, %c0_7] : memref<1x18x18x4xf32, #tpu.memory_space<vmem>>, vector<1x1x18x4xf32>
    tpu.vector_store %arg7[%c0_4, %c0_5, %c0_6, %c0_7], %1 {strides = array<i32>} : memref<1x18x18x4xf32, #tpu.memory_space<vmem>>, vector<1x1x18x4xf32>,
    %c0_8 = arith.constant 0 : index
    %c17 = arith.constant 17 : index
    %c0_9 = arith.constant 0 : index
    %c0_10 = arith.constant 0 : index
    %4 = vector.load %arg7[%c0_8, %c17, %c0_9, %c0_10] : memref<1x18x18x4xf32, #tpu.memory_space<vmem>>, vector<1x1x18x4xf32>
    tpu.vector_store %arg7[%c0_8, %c17, %c0_9, %c0_10], %1 {strides = array<i32>} : memref<1x18x18x4xf32, #tpu.memory_space<vmem>>, vector<1x1x18x4xf32>,
    %c0_11 = arith.constant 0 : index
    %c1 = arith.constant 1 : index
    %c0_12 = arith.constant 0 : index
    %c0_13 = arith.constant 0 : index
    %5 = vector.load %arg7[%c0_11, %c1, %c0_12, %c0_13] : memref<1x18x18x4xf32, #tpu.memory_space<vmem>>, vector<1x16x1x4xf32>
    tpu.vector_store %arg7[%c0_11, %c1, %c0_12, %c0_13], %2 {strides = array<i32>} : memref<1x18x18x4xf32, #tpu.memory_space<vmem>>, vector<1x16x1x4xf32>,
    %c0_14 = arith.constant 0 : index
    %c1_15 = arith.constant 1 : index
    %c17_16 = arith.constant 17 : index
    %c0_17 = arith.constant 0 : index
    %6 = vector.load %arg7[%c0_14, %c1_15, %c17_16, %c0_17] : memref<1x18x18x4xf32, #tpu.memory_space<vmem>>, vector<1x16x1x4xf32>
    tpu.vector_store %arg7[%c0_14, %c1_15, %c17_16, %c0_17], %2 {strides = array<i32>} : memref<1x18x18x4xf32, #tpu.memory_space<vmem>>, vector<1x16x1x4xf32>,
    %c0_18 = arith.constant 0 : index
    %c1_19 = arith.constant 1 : index
    %c1_20 = arith.constant 1 : index
    %c0_21 = arith.constant 0 : index
    %7 = vector.load %arg7[%c0_18, %c1_19, %c1_20, %c0_21] : memref<1x18x18x4xf32, #tpu.memory_space<vmem>>, vector<1x16x16x4xf32>
    tpu.vector_store %arg7[%c0_18, %c1_19, %c1_20, %c0_21], %0 {strides = array<i32>} : memref<1x18x18x4xf32, #tpu.memory_space<vmem>>, vector<1x16x16x4xf32>,
    %c0_22 = arith.constant 0 : index
    %c0_23 = arith.constant 0 : index
    %c0_24 = arith.constant 0 : index
    %c0_25 = arith.constant 0 : index
    %8 = vector.load %arg7[%c0_22, %c0_23, %c0_24, %c0_25] : memref<1x18x18x4xf32, #tpu.memory_space<vmem>>, vector<1x16x16x4xf32>
    %9 = vector.shape_cast %8 : vector<1x16x16x4xf32> to vector<256x4xf32>
    %c0_26 = arith.constant 0 : index
    %c0_27 = arith.constant 0 : index
    %c0_28 = arith.constant 0 : index
    %10 = vector.load %arg2[%c0_26, %c0_27, %c0_28] : memref<9x4x8xf32, #tpu.memory_space<vmem>>, vector<1x4x8xf32>
    %11 = vector.shape_cast %10 : vector<1x4x8xf32> to vector<4x8xf32>
    %cst_29 = arith.constant dense<0.000000e+00> : vector<256x8xf32>
    %12 = tpu.matmul %9, %11, %cst_29 {dimension_numbers = #tpu.dot_dimension_numbers<[1], [0], [0], [1], [0, 0, 1, 1], [], []>} : vector<256x4xf32>, vector<4x8xf32>, vector<256x8xf32> -> vector<256x8xf32>
    %c0_30 = arith.constant 0 : index
    %c0_31 = arith.constant 0 : index
    %c1_32 = arith.constant 1 : index
    %c0_33 = arith.constant 0 : index
    %13 = vector.load %arg7[%c0_30, %c0_31, %c1_32, %c0_33] : memref<1x18x18x4xf32, #tpu.memory_space<vmem>>, vector<1x16x16x4xf32>
    %14 = vector.shape_cast %13 : vector<1x16x16x4xf32> to vector<256x4xf32>
    %c1_34 = arith.constant 1 : index
    %c0_35 = arith.constant 0 : index
    %c0_36 = arith.constant 0 : index
    %15 = vector.load %arg2[%c1_34, %c0_35, %c0_36] : memref<9x4x8xf32, #tpu.memory_space<vmem>>, vector<1x4x8xf32>
    %16 = vector.shape_cast %15 : vector<1x4x8xf32> to vector<4x8xf32>
    %cst_37 = arith.constant dense<0.000000e+00> : vector<256x8xf32>
    %17 = tpu.matmul %14, %16, %cst_37 {dimension_numbers = #tpu.dot_dimension_numbers<[1], [0], [0], [1], [0, 0, 1, 1], [], []>} : vector<256x4xf32>, vector<4x8xf32>, vector<256x8xf32> -> vector<256x8xf32>
    %18 = arith.addf %12, %17 : vector<256x8xf32>
    %c0_38 = arith.constant 0 : index
    %c0_39 = arith.constant 0 : index
    %c2 = arith.constant 2 : index
    %c0_40 = arith.constant 0 : index
    %19 = vector.load %arg7[%c0_38, %c0_39, %c2, %c0_40] : memref<1x18x18x4xf32, #tpu.memory_space<vmem>>, vector<1x16x16x4xf32>
    %20 = vector.shape_cast %19 : vector<1x16x16x4xf32> to vector<256x4xf32>
    %c2_41 = arith.constant 2 : index
    %c0_42 = arith.constant 0 : index
    %c0_43 = arith.constant 0 : index
    %21 = vector.load %arg2[%c2_41, %c0_42, %c0_43] : memref<9x4x8xf32, #tpu.memory_space<vmem>>, vector<1x4x8xf32>
    %22 = vector.shape_cast %21 : vector<1x4x8xf32> to vector<4x8xf32>
    %cst_44 = arith.constant dense<0.000000e+00> : vector<256x8xf32>
    %23 = tpu.matmul %20, %22, %cst_44 {dimension_numbers = #tpu.dot_dimension_numbers<[1], [0], [0], [1], [0, 0, 1, 1], [], []>} : vector<256x4xf32>, vector<4x8xf32>, vector<256x8xf32> -> vector<256x8xf32>
    %24 = arith.addf %18, %23 : vector<256x8xf32>
    %c0_45 = arith.constant 0 : index
    %c1_46 = arith.constant 1 : index
    %c0_47 = arith.constant 0 : index
    %c0_48 = arith.constant 0 : index
    %25 = vector.load %arg7[%c0_45, %c1_46, %c0_47, %c0_48] : memref<1x18x18x4xf32, #tpu.memory_space<vmem>>, vector<1x16x16x4xf32>
    %26 = vector.shape_cast %25 : vector<1x16x16x4xf32> to vector<256x4xf32>
    %c3 = arith.constant 3 : index
    %c0_49 = arith.constant 0 : index
    %c0_50 = arith.constant 0 : index
    %27 = vector.load %arg2[%c3, %c0_49, %c0_50] : memref<9x4x8xf32, #tpu.memory_space<vmem>>, vector<1x4x8xf32>
    %28 = vector.shape_cast %27 : vector<1x4x8xf32> to vector<4x8xf32>
    %cst_51 = arith.constant dense<0.000000e+00> : vector<256x8xf32>
    %29 = tpu.matmul %26, %28, %cst_51 {dimension_numbers = #tpu.dot_dimension_numbers<[1], [0], [0], [1], [0, 0, 1, 1], [], []>} : vector<256x4xf32>, vector<4x8xf32>, vector<256x8xf32> -> vector<256x8xf32>
    %30 = arith.addf %24, %29 : vector<256x8xf32>
    %c0_52 = arith.constant 0 : index
    %c1_53 = arith.constant 1 : index
    %c1_54 = arith.constant 1 : index
    %c0_55 = arith.constant 0 : index
    %31 = vector.load %arg7[%c0_52, %c1_53, %c1_54, %c0_55] : memref<1x18x18x4xf32, #tpu.memory_space<vmem>>, vector<1x16x16x4xf32>
    %32 = vector.shape_cast %31 : vector<1x16x16x4xf32> to vector<256x4xf32>
    %c4 = arith.constant 4 : index
    %c0_56 = arith.constant 0 : index
    %c0_57 = arith.constant 0 : index
    %33 = vector.load %arg2[%c4, %c0_56, %c0_57] : memref<9x4x8xf32, #tpu.memory_space<vmem>>, vector<1x4x8xf32>
    %34 = vector.shape_cast %33 : vector<1x4x8xf32> to vector<4x8xf32>
    %cst_58 = arith.constant dense<0.000000e+00> : vector<256x8xf32>
    %35 = tpu.matmul %32, %34, %cst_58 {dimension_numbers = #tpu.dot_dimension_numbers<[1], [0], [0], [1], [0, 0, 1, 1], [], []>} : vector<256x4xf32>, vector<4x8xf32>, vector<256x8xf32> -> vector<256x8xf32>
    %36 = arith.addf %30, %35 : vector<256x8xf32>
    %c0_59 = arith.constant 0 : index
    %c1_60 = arith.constant 1 : index
    %c2_61 = arith.constant 2 : index
    %c0_62 = arith.constant 0 : index
    %37 = vector.load %arg7[%c0_59, %c1_60, %c2_61, %c0_62] : memref<1x18x18x4xf32, #tpu.memory_space<vmem>>, vector<1x16x16x4xf32>
    %38 = vector.shape_cast %37 : vector<1x16x16x4xf32> to vector<256x4xf32>
    %c5 = arith.constant 5 : index
    %c0_63 = arith.constant 0 : index
    %c0_64 = arith.constant 0 : index
    %39 = vector.load %arg2[%c5, %c0_63, %c0_64] : memref<9x4x8xf32, #tpu.memory_space<vmem>>, vector<1x4x8xf32>
    %40 = vector.shape_cast %39 : vector<1x4x8xf32> to vector<4x8xf32>
    %cst_65 = arith.constant dense<0.000000e+00> : vector<256x8xf32>
    %41 = tpu.matmul %38, %40, %cst_65 {dimension_numbers = #tpu.dot_dimension_numbers<[1], [0], [0], [1], [0, 0, 1, 1], [], []>} : vector<256x4xf32>, vector<4x8xf32>, vector<256x8xf32> -> vector<256x8xf32>
    %42 = arith.addf %36, %41 : vector<256x8xf32>
    %c0_66 = arith.constant 0 : index
    %c2_67 = arith.constant 2 : index
    %c0_68 = arith.constant 0 : index
    %c0_69 = arith.constant 0 : index
    %43 = vector.load %arg7[%c0_66, %c2_67, %c0_68, %c0_69] : memref<1x18x18x4xf32, #tpu.memory_space<vmem>>, vector<1x16x16x4xf32>
    %44 = vector.shape_cast %43 : vector<1x16x16x4xf32> to vector<256x4xf32>
    %c6 = arith.constant 6 : index
    %c0_70 = arith.constant 0 : index
    %c0_71 = arith.constant 0 : index
    %45 = vector.load %arg2[%c6, %c0_70, %c0_71] : memref<9x4x8xf32, #tpu.memory_space<vmem>>, vector<1x4x8xf32>
    %46 = vector.shape_cast %45 : vector<1x4x8xf32> to vector<4x8xf32>
    %cst_72 = arith.constant dense<0.000000e+00> : vector<256x8xf32>
    %47 = tpu.matmul %44, %46, %cst_72 {dimension_numbers = #tpu.dot_dimension_numbers<[1], [0], [0], [1], [0, 0, 1, 1], [], []>} : vector<256x4xf32>, vector<4x8xf32>, vector<256x8xf32> -> vector<256x8xf32>
    %48 = arith.addf %42, %47 : vector<256x8xf32>
    %c0_73 = arith.constant 0 : index
    %c2_74 = arith.constant 2 : index
    %c1_75 = arith.constant 1 : index
    %c0_76 = arith.constant 0 : index
    %49 = vector.load %arg7[%c0_73, %c2_74, %c1_75, %c0_76] : memref<1x18x18x4xf32, #tpu.memory_space<vmem>>, vector<1x16x16x4xf32>
    %50 = vector.shape_cast %49 : vector<1x16x16x4xf32> to vector<256x4xf32>
    %c7 = arith.constant 7 : index
    %c0_77 = arith.constant 0 : index
    %c0_78 = arith.constant 0 : index
    %51 = vector.load %arg2[%c7, %c0_77, %c0_78] : memref<9x4x8xf32, #tpu.memory_space<vmem>>, vector<1x4x8xf32>
    %52 = vector.shape_cast %51 : vector<1x4x8xf32> to vector<4x8xf32>
    %cst_79 = arith.constant dense<0.000000e+00> : vector<256x8xf32>
    %53 = tpu.matmul %50, %52, %cst_79 {dimension_numbers = #tpu.dot_dimension_numbers<[1], [0], [0], [1], [0, 0, 1, 1], [], []>} : vector<256x4xf32>, vector<4x8xf32>, vector<256x8xf32> -> vector<256x8xf32>
    %54 = arith.addf %48, %53 : vector<256x8xf32>
    %c0_80 = arith.constant 0 : index
    %c2_81 = arith.constant 2 : index
    %c2_82 = arith.constant 2 : index
    %c0_83 = arith.constant 0 : index
    %55 = vector.load %arg7[%c0_80, %c2_81, %c2_82, %c0_83] : memref<1x18x18x4xf32, #tpu.memory_space<vmem>>, vector<1x16x16x4xf32>
    %56 = vector.shape_cast %55 : vector<1x16x16x4xf32> to vector<256x4xf32>
    %c8 = arith.constant 8 : index
    %c0_84 = arith.constant 0 : index
    %c0_85 = arith.constant 0 : index
    %57 = vector.load %arg2[%c8, %c0_84, %c0_85] : memref<9x4x8xf32, #tpu.memory_space<vmem>>, vector<1x4x8xf32>
    %58 = vector.shape_cast %57 : vector<1x4x8xf32> to vector<4x8xf32>
    %cst_86 = arith.constant dense<0.000000e+00> : vector<256x8xf32>
    %59 = tpu.matmul %56, %58, %cst_86 {dimension_numbers = #tpu.dot_dimension_numbers<[1], [0], [0], [1], [0, 0, 1, 1], [], []>} : vector<256x4xf32>, vector<4x8xf32>, vector<256x8xf32> -> vector<256x8xf32>
    %60 = arith.addf %54, %59 : vector<256x8xf32>
    %c0_87 = arith.constant 0 : index
    %c0_88 = arith.constant 0 : index
    %61 = vector.load %arg3[%c0_87, %c0_88] : memref<1x8xf32, #tpu.memory_space<vmem>>, vector<1x8xf32>
    %62 = vector.broadcast %61 : vector<1x8xf32> to vector<256x8xf32>
    %63 = arith.addf %60, %62 : vector<256x8xf32>
    %64 = vector.shape_cast %63 : vector<256x8xf32> to vector<1x16x16x8xf32>
    %65 = vector.shape_cast %64 : vector<1x16x16x8xf32> to vector<1x8x2x16x8xf32>
    %66 = vector.extract_strided_slice %65 {offsets = [0, 0, 0, 0, 0], sizes = [1, 8, 1, 16, 8], strides = [1, 1, 1, 1, 1]} : vector<1x8x2x16x8xf32> to vector<1x8x1x16x8xf32>
    %67 = vector.shape_cast %66 : vector<1x8x1x16x8xf32> to vector<1x8x16x8xf32>
    %68 = vector.extract_strided_slice %65 {offsets = [0, 0, 1, 0, 0], sizes = [1, 8, 1, 16, 8], strides = [1, 1, 1, 1, 1]} : vector<1x8x2x16x8xf32> to vector<1x8x1x16x8xf32>
    %69 = vector.shape_cast %68 : vector<1x8x1x16x8xf32> to vector<1x8x16x8xf32>
    %70 = arith.maximumf %67, %69 : vector<1x8x16x8xf32>
    %c0_89 = arith.constant 0 : index
    %c0_90 = arith.constant 0 : index
    %c0_91 = arith.constant 0 : index
    %c0_92 = arith.constant 0 : index
    %71 = vector.load %arg8[%c0_89, %c0_90, %c0_91, %c0_92] : memref<1x8x16x8xf32, #tpu.memory_space<vmem>>, vector<1x8x16x8xf32>
    tpu.vector_store %arg8[%c0_89, %c0_90, %c0_91, %c0_92], %70 {strides = array<i32>} : memref<1x8x16x8xf32, #tpu.memory_space<vmem>>, vector<1x8x16x8xf32>,
    %c0_93 = arith.constant 0 : index
    %c0_94 = arith.constant 0 : index
    %c0_95 = arith.constant 0 : index
    %c0_96 = arith.constant 0 : index
    %72 = tpu.strided_load %arg8[%c0_93, %c0_94, %c0_95, %c0_96] {strides = array<i32: 1, 1, 2, 1>} : memref<1x8x16x8xf32, #tpu.memory_space<vmem>>, vector<1x8x8x8xf32>
    %c0_97 = arith.constant 0 : index
    %c0_98 = arith.constant 0 : index
    %c1_99 = arith.constant 1 : index
    %c0_100 = arith.constant 0 : index
    %73 = tpu.strided_load %arg8[%c0_97, %c0_98, %c1_99, %c0_100] {strides = array<i32: 1, 1, 2, 1>} : memref<1x8x16x8xf32, #tpu.memory_space<vmem>>, vector<1x8x8x8xf32>
    %74 = arith.maximumf %72, %73 : vector<1x8x8x8xf32>
    %cst_101 = arith.constant 0.000000e+00 : f32
    %75 = vector.broadcast %cst_101 : f32 to vector<1x1x10x8xf32>
    %cst_102 = arith.constant 0.000000e+00 : f32
    %76 = vector.broadcast %cst_102 : f32 to vector<1x8x1x8xf32>
    %c0_103 = arith.constant 0 : index
    %c0_104 = arith.constant 0 : index
    %c0_105 = arith.constant 0 : index
    %c0_106 = arith.constant 0 : index
    %77 = vector.load %arg9[%c0_103, %c0_104, %c0_105, %c0_106] : memref<1x10x10x8xf32, #tpu.memory_space<vmem>>, vector<1x1x10x8xf32>
    tpu.vector_store %arg9[%c0_103, %c0_104, %c0_105, %c0_106], %75 {strides = array<i32>} : memref<1x10x10x8xf32, #tpu.memory_space<vmem>>, vector<1x1x10x8xf32>,
    %c0_107 = arith.constant 0 : index
    %c9 = arith.constant 9 : index
    %c0_108 = arith.constant 0 : index
    %c0_109 = arith.constant 0 : index
    %78 = vector.load %arg9[%c0_107, %c9, %c0_108, %c0_109] : memref<1x10x10x8xf32, #tpu.memory_space<vmem>>, vector<1x1x10x8xf32>
    tpu.vector_store %arg9[%c0_107, %c9, %c0_108, %c0_109], %75 {strides = array<i32>} : memref<1x10x10x8xf32, #tpu.memory_space<vmem>>, vector<1x1x10x8xf32>,
    %c0_110 = arith.constant 0 : index
    %c1_111 = arith.constant 1 : index
    %c0_112 = arith.constant 0 : index
    %c0_113 = arith.constant 0 : index
    %79 = vector.load %arg9[%c0_110, %c1_111, %c0_112, %c0_113] : memref<1x10x10x8xf32, #tpu.memory_space<vmem>>, vector<1x8x1x8xf32>
    tpu.vector_store %arg9[%c0_110, %c1_111, %c0_112, %c0_113], %76 {strides = array<i32>} : memref<1x10x10x8xf32, #tpu.memory_space<vmem>>, vector<1x8x1x8xf32>,
    %c0_114 = arith.constant 0 : index
    %c1_115 = arith.constant 1 : index
    %c9_116 = arith.constant 9 : index
    %c0_117 = arith.constant 0 : index
    %80 = vector.load %arg9[%c0_114, %c1_115, %c9_116, %c0_117] : memref<1x10x10x8xf32, #tpu.memory_space<vmem>>, vector<1x8x1x8xf32>
    tpu.vector_store %arg9[%c0_114, %c1_115, %c9_116, %c0_117], %76 {strides = array<i32>} : memref<1x10x10x8xf32, #tpu.memory_space<vmem>>, vector<1x8x1x8xf32>,
    %c0_118 = arith.constant 0 : index
    %c1_119 = arith.constant 1 : index
    %c1_120 = arith.constant 1 : index
    %c0_121 = arith.constant 0 : index
    %81 = vector.load %arg9[%c0_118, %c1_119, %c1_120, %c0_121] : memref<1x10x10x8xf32, #tpu.memory_space<vmem>>, vector<1x8x8x8xf32>
    tpu.vector_store %arg9[%c0_118, %c1_119, %c1_120, %c0_121], %74 {strides = array<i32>} : memref<1x10x10x8xf32, #tpu.memory_space<vmem>>, vector<1x8x8x8xf32>,
    %c0_122 = arith.constant 0 : index
    %c0_123 = arith.constant 0 : index
    %c0_124 = arith.constant 0 : index
    %c0_125 = arith.constant 0 : index
    %82 = vector.load %arg9[%c0_122, %c0_123, %c0_124, %c0_125] : memref<1x10x10x8xf32, #tpu.memory_space<vmem>>, vector<1x8x8x8xf32>
    %83 = vector.shape_cast %82 : vector<1x8x8x8xf32> to vector<64x8xf32>
    %c0_126 = arith.constant 0 : index
    %c0_127 = arith.constant 0 : index
    %c0_128 = arith.constant 0 : index
    %84 = vector.load %arg4[%c0_126, %c0_127, %c0_128] : memref<9x8x16xf32, #tpu.memory_space<vmem>>, vector<1x8x16xf32>
    %85 = vector.shape_cast %84 : vector<1x8x16xf32> to vector<8x16xf32>
    %cst_129 = arith.constant dense<0.000000e+00> : vector<64x16xf32>
    %86 = tpu.matmul %83, %85, %cst_129 {dimension_numbers = #tpu.dot_dimension_numbers<[1], [0], [0], [1], [0, 0, 1, 1], [], []>} : vector<64x8xf32>, vector<8x16xf32>, vector<64x16xf32> -> vector<64x16xf32>
    %c0_130 = arith.constant 0 : index
    %c0_131 = arith.constant 0 : index
    %c1_132 = arith.constant 1 : index
    %c0_133 = arith.constant 0 : index
    %87 = vector.load %arg9[%c0_130, %c0_131, %c1_132, %c0_133] : memref<1x10x10x8xf32, #tpu.memory_space<vmem>>, vector<1x8x8x8xf32>
    %88 = vector.shape_cast %87 : vector<1x8x8x8xf32> to vector<64x8xf32>
    %c1_134 = arith.constant 1 : index
    %c0_135 = arith.constant 0 : index
    %c0_136 = arith.constant 0 : index
    %89 = vector.load %arg4[%c1_134, %c0_135, %c0_136] : memref<9x8x16xf32, #tpu.memory_space<vmem>>, vector<1x8x16xf32>
    %90 = vector.shape_cast %89 : vector<1x8x16xf32> to vector<8x16xf32>
    %cst_137 = arith.constant dense<0.000000e+00> : vector<64x16xf32>
    %91 = tpu.matmul %88, %90, %cst_137 {dimension_numbers = #tpu.dot_dimension_numbers<[1], [0], [0], [1], [0, 0, 1, 1], [], []>} : vector<64x8xf32>, vector<8x16xf32>, vector<64x16xf32> -> vector<64x16xf32>
    %92 = arith.addf %86, %91 : vector<64x16xf32>
    %c0_138 = arith.constant 0 : index
    %c0_139 = arith.constant 0 : index
    %c2_140 = arith.constant 2 : index
    %c0_141 = arith.constant 0 : index
    %93 = vector.load %arg9[%c0_138, %c0_139, %c2_140, %c0_141] : memref<1x10x10x8xf32, #tpu.memory_space<vmem>>, vector<1x8x8x8xf32>
    %94 = vector.shape_cast %93 : vector<1x8x8x8xf32> to vector<64x8xf32>
    %c2_142 = arith.constant 2 : index
    %c0_143 = arith.constant 0 : index
    %c0_144 = arith.constant 0 : index
    %95 = vector.load %arg4[%c2_142, %c0_143, %c0_144] : memref<9x8x16xf32, #tpu.memory_space<vmem>>, vector<1x8x16xf32>
    %96 = vector.shape_cast %95 : vector<1x8x16xf32> to vector<8x16xf32>
    %cst_145 = arith.constant dense<0.000000e+00> : vector<64x16xf32>
    %97 = tpu.matmul %94, %96, %cst_145 {dimension_numbers = #tpu.dot_dimension_numbers<[1], [0], [0], [1], [0, 0, 1, 1], [], []>} : vector<64x8xf32>, vector<8x16xf32>, vector<64x16xf32> -> vector<64x16xf32>
    %98 = arith.addf %92, %97 : vector<64x16xf32>
    %c0_146 = arith.constant 0 : index
    %c1_147 = arith.constant 1 : index
    %c0_148 = arith.constant 0 : index
    %c0_149 = arith.constant 0 : index
    %99 = vector.load %arg9[%c0_146, %c1_147, %c0_148, %c0_149] : memref<1x10x10x8xf32, #tpu.memory_space<vmem>>, vector<1x8x8x8xf32>
    %100 = vector.shape_cast %99 : vector<1x8x8x8xf32> to vector<64x8xf32>
    %c3_150 = arith.constant 3 : index
    %c0_151 = arith.constant 0 : index
    %c0_152 = arith.constant 0 : index
    %101 = vector.load %arg4[%c3_150, %c0_151, %c0_152] : memref<9x8x16xf32, #tpu.memory_space<vmem>>, vector<1x8x16xf32>
    %102 = vector.shape_cast %101 : vector<1x8x16xf32> to vector<8x16xf32>
    %cst_153 = arith.constant dense<0.000000e+00> : vector<64x16xf32>
    %103 = tpu.matmul %100, %102, %cst_153 {dimension_numbers = #tpu.dot_dimension_numbers<[1], [0], [0], [1], [0, 0, 1, 1], [], []>} : vector<64x8xf32>, vector<8x16xf32>, vector<64x16xf32> -> vector<64x16xf32>
    %104 = arith.addf %98, %103 : vector<64x16xf32>
    %c0_154 = arith.constant 0 : index
    %c1_155 = arith.constant 1 : index
    %c1_156 = arith.constant 1 : index
    %c0_157 = arith.constant 0 : index
    %105 = vector.load %arg9[%c0_154, %c1_155, %c1_156, %c0_157] : memref<1x10x10x8xf32, #tpu.memory_space<vmem>>, vector<1x8x8x8xf32>
    %106 = vector.shape_cast %105 : vector<1x8x8x8xf32> to vector<64x8xf32>
    %c4_158 = arith.constant 4 : index
    %c0_159 = arith.constant 0 : index
    %c0_160 = arith.constant 0 : index
    %107 = vector.load %arg4[%c4_158, %c0_159, %c0_160] : memref<9x8x16xf32, #tpu.memory_space<vmem>>, vector<1x8x16xf32>
    %108 = vector.shape_cast %107 : vector<1x8x16xf32> to vector<8x16xf32>
    %cst_161 = arith.constant dense<0.000000e+00> : vector<64x16xf32>
    %109 = tpu.matmul %106, %108, %cst_161 {dimension_numbers = #tpu.dot_dimension_numbers<[1], [0], [0], [1], [0, 0, 1, 1], [], []>} : vector<64x8xf32>, vector<8x16xf32>, vector<64x16xf32> -> vector<64x16xf32>
    %110 = arith.addf %104, %109 : vector<64x16xf32>
    %c0_162 = arith.constant 0 : index
    %c1_163 = arith.constant 1 : index
    %c2_164 = arith.constant 2 : index
    %c0_165 = arith.constant 0 : index
    %111 = vector.load %arg9[%c0_162, %c1_163, %c2_164, %c0_165] : memref<1x10x10x8xf32, #tpu.memory_space<vmem>>, vector<1x8x8x8xf32>
    %112 = vector.shape_cast %111 : vector<1x8x8x8xf32> to vector<64x8xf32>
    %c5_166 = arith.constant 5 : index
    %c0_167 = arith.constant 0 : index
    %c0_168 = arith.constant 0 : index
    %113 = vector.load %arg4[%c5_166, %c0_167, %c0_168] : memref<9x8x16xf32, #tpu.memory_space<vmem>>, vector<1x8x16xf32>
    %114 = vector.shape_cast %113 : vector<1x8x16xf32> to vector<8x16xf32>
    %cst_169 = arith.constant dense<0.000000e+00> : vector<64x16xf32>
    %115 = tpu.matmul %112, %114, %cst_169 {dimension_numbers = #tpu.dot_dimension_numbers<[1], [0], [0], [1], [0, 0, 1, 1], [], []>} : vector<64x8xf32>, vector<8x16xf32>, vector<64x16xf32> -> vector<64x16xf32>
    %116 = arith.addf %110, %115 : vector<64x16xf32>
    %c0_170 = arith.constant 0 : index
    %c2_171 = arith.constant 2 : index
    %c0_172 = arith.constant 0 : index
    %c0_173 = arith.constant 0 : index
    %117 = vector.load %arg9[%c0_170, %c2_171, %c0_172, %c0_173] : memref<1x10x10x8xf32, #tpu.memory_space<vmem>>, vector<1x8x8x8xf32>
    %118 = vector.shape_cast %117 : vector<1x8x8x8xf32> to vector<64x8xf32>
    %c6_174 = arith.constant 6 : index
    %c0_175 = arith.constant 0 : index
    %c0_176 = arith.constant 0 : index
    %119 = vector.load %arg4[%c6_174, %c0_175, %c0_176] : memref<9x8x16xf32, #tpu.memory_space<vmem>>, vector<1x8x16xf32>
    %120 = vector.shape_cast %119 : vector<1x8x16xf32> to vector<8x16xf32>
    %cst_177 = arith.constant dense<0.000000e+00> : vector<64x16xf32>
    %121 = tpu.matmul %118, %120, %cst_177 {dimension_numbers = #tpu.dot_dimension_numbers<[1], [0], [0], [1], [0, 0, 1, 1], [], []>} : vector<64x8xf32>, vector<8x16xf32>, vector<64x16xf32> -> vector<64x16xf32>
    %122 = arith.addf %116, %121 : vector<64x16xf32>
    %c0_178 = arith.constant 0 : index
    %c2_179 = arith.constant 2 : index
    %c1_180 = arith.constant 1 : index
    %c0_181 = arith.constant 0 : index
    %123 = vector.load %arg9[%c0_178, %c2_179, %c1_180, %c0_181] : memref<1x10x10x8xf32, #tpu.memory_space<vmem>>, vector<1x8x8x8xf32>
    %124 = vector.shape_cast %123 : vector<1x8x8x8xf32> to vector<64x8xf32>
    %c7_182 = arith.constant 7 : index
    %c0_183 = arith.constant 0 : index
    %c0_184 = arith.constant 0 : index
    %125 = vector.load %arg4[%c7_182, %c0_183, %c0_184] : memref<9x8x16xf32, #tpu.memory_space<vmem>>, vector<1x8x16xf32>
    %126 = vector.shape_cast %125 : vector<1x8x16xf32> to vector<8x16xf32>
    %cst_185 = arith.constant dense<0.000000e+00> : vector<64x16xf32>
    %127 = tpu.matmul %124, %126, %cst_185 {dimension_numbers = #tpu.dot_dimension_numbers<[1], [0], [0], [1], [0, 0, 1, 1], [], []>} : vector<64x8xf32>, vector<8x16xf32>, vector<64x16xf32> -> vector<64x16xf32>
    %128 = arith.addf %122, %127 : vector<64x16xf32>
    %c0_186 = arith.constant 0 : index
    %c2_187 = arith.constant 2 : index
    %c2_188 = arith.constant 2 : index
    %c0_189 = arith.constant 0 : index
    %129 = vector.load %arg9[%c0_186, %c2_187, %c2_188, %c0_189] : memref<1x10x10x8xf32, #tpu.memory_space<vmem>>, vector<1x8x8x8xf32>
    %130 = vector.shape_cast %129 : vector<1x8x8x8xf32> to vector<64x8xf32>
    %c8_190 = arith.constant 8 : index
    %c0_191 = arith.constant 0 : index
    %c0_192 = arith.constant 0 : index
    %131 = vector.load %arg4[%c8_190, %c0_191, %c0_192] : memref<9x8x16xf32, #tpu.memory_space<vmem>>, vector<1x8x16xf32>
    %132 = vector.shape_cast %131 : vector<1x8x16xf32> to vector<8x16xf32>
    %cst_193 = arith.constant dense<0.000000e+00> : vector<64x16xf32>
    %133 = tpu.matmul %130, %132, %cst_193 {dimension_numbers = #tpu.dot_dimension_numbers<[1], [0], [0], [1], [0, 0, 1, 1], [], []>} : vector<64x8xf32>, vector<8x16xf32>, vector<64x16xf32> -> vector<64x16xf32>
    %134 = arith.addf %128, %133 : vector<64x16xf32>
    %c0_194 = arith.constant 0 : index
    %c0_195 = arith.constant 0 : index
    %135 = vector.load %arg5[%c0_194, %c0_195] : memref<1x16xf32, #tpu.memory_space<vmem>>, vector<1x16xf32>
    %136 = vector.broadcast %135 : vector<1x16xf32> to vector<64x16xf32>
    %137 = arith.addf %134, %136 : vector<64x16xf32>
    %138 = vector.shape_cast %137 : vector<64x16xf32> to vector<1x8x8x16xf32>
    %139 = vector.shape_cast %138 : vector<1x8x8x16xf32> to vector<1x4x2x8x16xf32>
    %140 = vector.extract_strided_slice %139 {offsets = [0, 0, 0, 0, 0], sizes = [1, 4, 1, 8, 16], strides = [1, 1, 1, 1, 1]} : vector<1x4x2x8x16xf32> to vector<1x4x1x8x16xf32>
    %141 = vector.shape_cast %140 : vector<1x4x1x8x16xf32> to vector<1x4x8x16xf32>
    %142 = vector.extract_strided_slice %139 {offsets = [0, 0, 1, 0, 0], sizes = [1, 4, 1, 8, 16], strides = [1, 1, 1, 1, 1]} : vector<1x4x2x8x16xf32> to vector<1x4x1x8x16xf32>
    %143 = vector.shape_cast %142 : vector<1x4x1x8x16xf32> to vector<1x4x8x16xf32>
    %144 = arith.maximumf %141, %143 : vector<1x4x8x16xf32>
    %c0_196 = arith.constant 0 : index
    %c0_197 = arith.constant 0 : index
    %c0_198 = arith.constant 0 : index
    %c0_199 = arith.constant 0 : index
    %145 = vector.load %arg10[%c0_196, %c0_197, %c0_198, %c0_199] : memref<1x4x8x16xf32, #tpu.memory_space<vmem>>, vector<1x4x8x16xf32>
    tpu.vector_store %arg10[%c0_196, %c0_197, %c0_198, %c0_199], %144 {strides = array<i32>} : memref<1x4x8x16xf32, #tpu.memory_space<vmem>>, vector<1x4x8x16xf32>,
    %c0_200 = arith.constant 0 : index
    %c0_201 = arith.constant 0 : index
    %c0_202 = arith.constant 0 : index
    %c0_203 = arith.constant 0 : index
    %146 = tpu.strided_load %arg10[%c0_200, %c0_201, %c0_202, %c0_203] {strides = array<i32: 1, 1, 2, 1>} : memref<1x4x8x16xf32, #tpu.memory_space<vmem>>, vector<1x4x4x16xf32>
    %c0_204 = arith.constant 0 : index
    %c0_205 = arith.constant 0 : index
    %c1_206 = arith.constant 1 : index
    %c0_207 = arith.constant 0 : index
    %147 = tpu.strided_load %arg10[%c0_204, %c0_205, %c1_206, %c0_207] {strides = array<i32: 1, 1, 2, 1>} : memref<1x4x8x16xf32, #tpu.memory_space<vmem>>, vector<1x4x4x16xf32>
    %148 = arith.maximumf %146, %147 : vector<1x4x4x16xf32>
    %c0_208 = arith.constant 0 : index
    %c0_209 = arith.constant 0 : index
    %c0_210 = arith.constant 0 : index
    %c0_211 = arith.constant 0 : index
    %149 = vector.load %arg6[%c0_208, %c0_209, %c0_210, %c0_211] : memref<1x4x4x16xf32, #tpu.memory_space<vmem>>, vector<1x4x4x16xf32>
    tpu.vector_store %arg6[%c0_208, %c0_209, %c0_210, %c0_211], %148 {strides = array<i32>} : memref<1x4x4x16xf32, #tpu.memory_space<vmem>>, vector<1x4x4x16xf32>,
    return
  }
  func.func @transform_0(%arg0: i32) -> (i32, i32, i32, i32) {
    %c0_i32 = arith.constant 0 : i32
    %c0_i32_0 = arith.constant 0 : i32
    %c0_i32_1 = arith.constant 0 : i32
    %c0_i32_2 = arith.constant 0 : i32
    return %arg0, %c0_i32, %c0_i32_0, %c0_i32_1 : i32, i32, i32, i32
  }
  func.func @transform_1(%arg0: i32) -> (i32, i32, i32) {
    %c0_i32 = arith.constant 0 : i32
    %c0_i32_0 = arith.constant 0 : i32
    %c0_i32_1 = arith.constant 0 : i32
    %c0_i32_2 = arith.constant 0 : i32
    return %c0_i32, %c0_i32_0, %c0_i32_1 : i32, i32, i32
  }
  func.func @transform_2(%arg0: i32) -> (i32, i32) {
    %c0_i32 = arith.constant 0 : i32
    %c0_i32_0 = arith.constant 0 : i32
    %c0_i32_1 = arith.constant 0 : i32
    return %c0_i32, %c0_i32_0 : i32, i32
  }
  func.func @transform_3(%arg0: i32) -> (i32, i32, i32) {
    %c0_i32 = arith.constant 0 : i32
    %c0_i32_0 = arith.constant 0 : i32
    %c0_i32_1 = arith.constant 0 : i32
    %c0_i32_2 = arith.constant 0 : i32
    return %c0_i32, %c0_i32_0, %c0_i32_1 : i32, i32, i32
  }
  func.func @transform_4(%arg0: i32) -> (i32, i32) {
    %c0_i32 = arith.constant 0 : i32
    %c0_i32_0 = arith.constant 0 : i32
    %c0_i32_1 = arith.constant 0 : i32
    return %c0_i32, %c0_i32_0 : i32, i32
  }
  func.func @transform_5(%arg0: i32) -> (i32, i32, i32, i32) {
    %c0_i32 = arith.constant 0 : i32
    %c0_i32_0 = arith.constant 0 : i32
    %c0_i32_1 = arith.constant 0 : i32
    %c0_i32_2 = arith.constant 0 : i32
    return %arg0, %c0_i32, %c0_i32_0, %c0_i32_1 : i32, i32, i32, i32
  }
}

</mosaic_0001>

<bundles_post_ra>
// kernel: _convlayers_forward.1
= control target key start
LH: loop header
LB: loop body
LE: loop exit
PB: predicated region body
PF: predicated region fallthrough
CT: control target
= control target key end

     0   :  { %s6736_s18 = smov 0   ;;  %s8603_s0 = inlined_call_operand.vmem [shape: f32[2,16,16,4], index: 0, kind: input, shape index: {}]   ;;  %s8604_s1 = inlined_call_operand.vmem [shape: f32[9,4,8], index: 1, kind: input, shape index: {}]   ;;  %s8605_s2 = inlined_call_operand.vmem [shape: f32[1,8], index: 2, kind: input, shape index: {}]   ;;  %s8606_s3 = inlined_call_operand.vmem [shape: f32[9,8,16], index: 3, kind: input, shape index: {}]   ;;  %s8607_s4 = inlined_call_operand.vmem [shape: f32[1,16], index: 4, kind: input, shape index: {}]   ;;  %s8608_s5 = inlined_call_operand.vmem [shape: f32[2,4,4,16], index: 5, kind: output, shape index: {}]  }
   0x1 LB: > { %s5332_s19 = sadd.s32 4294967295, %s6703_s18   ;;  %p5336_p0 = scmp.ge.s32.totalorder %s6703_s18, 1  ;;  %s6703_s18 = sphi %s6736_s18, %s15_s18  }
   0x2   : > { %p187_p1 = scmp.lt.s32.totalorder %s6703_s18, 3 }
   0x4   : > { %p188_p2 = pnand %p5336_p0, %p187_p1 }
   0x6   : > { %191 = sbr.rel (%p188_p2) target bundleno = 849 (0x351), region = 40 }
   0xb   : > { %v5341_v0 = vld [vmem:[%s8604_s1 + $0x4] sm:$0xf]  ;;  %vm495_vm0 = vcmask 1043456   ;;  %vm257_vm1 = vcmask 31744   ;;  %vm260_vm2 = vcmask 25600   ;;  %v8609_v1 = vmov 0.0  }
   0xc   : > { %6110 = vmatprep.subr.msk.mxu0 %vm495_vm0, %v5341_v0  ;;  %258 = vst.msk [vmem:[#allocation2] sm:$0xff] %vm257_vm1, %v8609_v1  ;;  %259 = vst.msk [vmem:[#allocation2 + $0x8] sm:$0xff] %vm257_vm1, %v8609_v1  ;;  %v6761_v2 = vld [vmem:[%s8604_s1 + $0x8] sm:$0xf]  ;;  %6686 = vmatprep.subr.msk.mxu1 %vm495_vm0, %v5341_v0  ;;  %p6766_p3 = scmp.lt.s32.totalorder %s5332_s19, 1  ;;  %vm267_vm3 = vcmask 24576  }
   0xd   : > { %263 = vst.msk [vmem:[#allocation2 + $0x198] sm:$0xff] %vm257_vm1, %v8609_v1  ;;  %264 = vst.msk [vmem:[#allocation2 + $0x1a0] sm:$0xff] %vm257_vm1, %v8609_v1  ;;  %v6773_v3 = vld [vmem:[%s8604_s1] sm:$0xf]  ;;  %6111 = vmatpush3.msk.msra.mxu0 %vm495_vm0, %v5341_v0  ;;  %6687 = vmatpush3.msk.msra.mxu1 %vm495_vm0, %v5341_v0  ;;  %v6863_v7 = vld [vmem:[%s8604_s1 + $0x10] sm:$0xf] }
   0xe   : > { %261 = vst.msk [vmem:[#allocation2 + $0x10] sm:$0x3] %vm260_vm2, %v8609_v1  ;;  %265 = vst.msk [vmem:[#allocation2 + $0x1a8] sm:$0x3] %vm260_vm2, %v8609_v1  ;;  %6210 = vmatprep.subr.msk.mxu0 %vm495_vm0, %v6761_v2  ;;  %s8849_s19 = smov (!%p6766_p3, %s5332_s19), 1  ;;  %6160 = vmatprep.subr.msk.mxu1 %vm495_vm0, %v6773_v3  ;;  %vm3834_vm4 = vcmask 64512  }
   0xf   : > { %268 = vst.msk [vmem:[#allocation2 + $0x18] sm:$0x1] %vm267_vm3, %v8609_v1  ;;  %269 = vst.msk [vmem:[#allocation2 + $0x30] sm:$0x1] %vm267_vm3, %v8609_v1  ;;  %s5730_s27 = sshll.u32 %s8849_s19, 8  ;;  %vm3891_vm5 = vcmask 58368  }
  0x10   : > { %270 = vst.msk [vmem:[#allocation2 + $0x48] sm:$0x1] %vm267_vm3, %v8609_v1  ;;  %271 = vst.msk [vmem:[#allocation2 + $0x60] sm:$0x1] %vm267_vm3, %v8609_v1  ;;  %s6855_s30 = scalar_lea.vmem %s8603_s0, %s5730_s27  ;;  %v5442_v33 = vld [vmem:[%s8604_s1 + $0xc] sm:$0xf] }
  0x11   : > { %272 = vst.msk [vmem:[#allocation2 + $0x78] sm:$0x1] %vm267_vm3, %v8609_v1  ;;  %273 = vst.msk [vmem:[#allocation2 + $0x90] sm:$0x1] %vm267_vm3, %v8609_v1  ;;  %v225_v4 = vld [vmem:[%s6855_s30] sm:$0xff]  ;;  %v251_v5 = vld [vmem:[%s6855_s30 + $0xd0] sm:$0xff] }
  0x12   : > { %274 = vst.msk [vmem:[#allocation2 + $0xa8] sm:$0x1] %vm267_vm3, %v8609_v1  ;;  %275 = vst.msk [vmem:[#allocation2 + $0xc0] sm:$0x1] %vm267_vm3, %v8609_v1  ;;  %v226_v6 = vld [vmem:[%s6855_s30 + $0x8] sm:$0xff]  ;;  %v252_v10 = vld [vmem:[%s6855_s30 + $0xd8] sm:$0xff] }
  0x13   : > { %276 = vst.msk [vmem:[#allocation2 + $0xd8] sm:$0x1] %vm267_vm3, %v8609_v1  ;;  %277 = vst.msk [vmem:[#allocation2 + $0xf0] sm:$0x1] %vm267_vm3, %v8609_v1  ;;  %v365_v8 = vld [vmem:[#allocation2 + $0x1] sm:$0xff]  ;;  %v227_v11 = vld [vmem:[%s6855_s30 + $0x10] sm:$0xff] }
  0x14   : > { %278 = vst.msk [vmem:[#allocation2 + $0x108] sm:$0x1] %vm267_vm3, %v8609_v1  ;;  %279 = vst.msk [vmem:[#allocation2 + $0x120] sm:$0x1] %vm267_vm3, %v8609_v1  ;;  %6112 = vmatprep.mubr.msk.f32.mxu0 %vm257_vm1, %v365_v8  ;;  %v253_v12 = vld [vmem:[%s6855_s30 + $0xe0] sm:$0xff]  ;;  %v228_v13 = vld [vmem:[%s6855_s30 + $0x18] sm:$0xff] }
  0x15   : > { %280 = vst.msk [vmem:[#allocation2 + $0x138] sm:$0x1] %vm267_vm3, %v8609_v1  ;;  %281 = vst.msk [vmem:[#allocation2 + $0x150] sm:$0x1] %vm267_vm3, %v8609_v1  ;;  %v366_v9 = vld [vmem:[#allocation2 + $0x9] sm:$0xff]  ;;  %v229_v15 = vld [vmem:[%s6855_s30 + $0x20] sm:$0xff] }
  0x16   : > { %282 = vst.msk [vmem:[#allocation2 + $0x168] sm:$0x1] %vm267_vm3, %v8609_v1  ;;  %283 = vst.msk [vmem:[#allocation2 + $0x180] sm:$0x1] %vm267_vm3, %v8609_v1  ;;  %6113 = vmatmul.mubr.msk.f32.vlgmr.msra.gmra.mxu0 %vm257_vm1, %v366_v9  ;;  %v254_v14 = vld [vmem:[%s6855_s30 + $0xe8] sm:$0xff]  ;;  %v231_v17 = vld [vmem:[%s6855_s30 + $0x30] sm:$0xff] }
  0x17   : > { %284 = vst.msk [vmem:[#allocation2 + $0x29] sm:$0x1] %vm267_vm3, %v8609_v1  ;;  %285 = vst.msk [vmem:[#allocation2 + $0x41] sm:$0x1] %vm267_vm3, %v8609_v1  ;;  %6211 = vmatpush3.msk.msra.mxu0 %vm495_vm0, %v6761_v2  ;;  %v230_v16 = vld [vmem:[%s6855_s30 + $0x28] sm:$0xff]  ;;  %v232_v18 = vld [vmem:[%s6855_s30 + $0x38] sm:$0xff] }
  0x18   : > { %286 = vst.msk [vmem:[#allocation2 + $0x59] sm:$0x1] %vm267_vm3, %v8609_v1  ;;  %287 = vst.msk [vmem:[#allocation2 + $0x71] sm:$0x1] %vm267_vm3, %v8609_v1  ;;  %v233_v19 = vld [vmem:[%s6855_s30 + $0x40] sm:$0xff]  ;;  %v234_v20 = vld [vmem:[%s6855_s30 + $0x48] sm:$0xff]  ;;  %6310 = vmatprep.subr.msk.mxu0 %vm495_vm0, %v6863_v7 }
  0x19   : > { %288 = vst.msk [vmem:[#allocation2 + $0x89] sm:$0x1] %vm267_vm3, %v8609_v1  ;;  %289 = vst.msk [vmem:[#allocation2 + $0xa1] sm:$0x1] %vm267_vm3, %v8609_v1  ;;  %v235_v21 = vld [vmem:[%s6855_s30 + $0x50] sm:$0xff]  ;;  %v236_v22 = vld [vmem:[%s6855_s30 + $0x58] sm:$0xff] }
  0x1a   : > { %290 = vst.msk [vmem:[#allocation2 + $0xb9] sm:$0x1] %vm267_vm3, %v8609_v1  ;;  %291 = vst.msk [vmem:[#allocation2 + $0xd1] sm:$0x1] %vm267_vm3, %v8609_v1  ;;  %v237_v23 = vld [vmem:[%s6855_s30 + $0x60] sm:$0xff]  ;;  %v238_v24 = vld [vmem:[%s6855_s30 + $0x68] sm:$0xff] }
  0x1b   : > { %292 = vst.msk [vmem:[#allocation2 + $0xe9] sm:$0x1] %vm267_vm3, %v8609_v1  ;;  %293 = vst.msk [vmem:[#allocation2 + $0x101] sm:$0x1] %vm267_vm3, %v8609_v1  ;;  %v239_v25 = vld [vmem:[%s6855_s30 + $0x70] sm:$0xff]  ;;  %v240_v26 = vld [vmem:[%s6855_s30 + $0x78] sm:$0xff] }
  0x1c   : > { %294 = vst.msk [vmem:[#allocation2 + $0x119] sm:$0x1] %vm267_vm3, %v8609_v1  ;;  %295 = vst.msk [vmem:[#allocation2 + $0x131] sm:$0x1] %vm267_vm3, %v8609_v1  ;;  %v332_v37 = vld [vmem:[#allocation2] sm:$0xff]  ;;  %v333_v39 = vld [vmem:[#allocation2 + $0x8] sm:$0xff] }
  0x1d   : > { %296 = vst.msk [vmem:[#allocation2 + $0x149] sm:$0x1] %vm267_vm3, %v8609_v1  ;;  %297 = vst.msk [vmem:[#allocation2 + $0x161] sm:$0x1] %vm267_vm3, %v8609_v1  ;;  %v6960_v42 = vld [vmem:[%s8604_s1 + $0x14] sm:$0xf] }
  0x1e   : > { %298 = vst.msk [vmem:[#allocation2 + $0x179] sm:$0x1] %vm267_vm3, %v8609_v1  ;;  %299 = vst.msk [vmem:[#allocation2 + $0x191] sm:$0x1] %vm267_vm3, %v8609_v1  ;;  %v241_v44 = vld [vmem:[%s6855_s30 + $0x80] sm:$0xff]  ;;  %v242_v45 = vld [vmem:[%s6855_s30 + $0x88] sm:$0xff] }
  0x1f   : > { %300 = vst.msk [vmem:[#allocation2 + $0x19] sm:$0xff] %vm257_vm1, %v225_v4  ;;  %326 = vst.msk [vmem:[#allocation2 + $0x151] sm:$0xff] %vm257_vm1, %v251_v5  ;;  %v243_v48 = vld [vmem:[%s6855_s30 + $0x90] sm:$0xff]  ;;  %v244_v50 = vld [vmem:[%s6855_s30 + $0x98] sm:$0xff]  ;;  %vm3897_vm6 = vcmask 57344   ;;  %vm5248_vm7 = vcmask 130048  }
  0x20   : > { %301 = vst.msk [vmem:[#allocation2 + $0x21] sm:$0xff] %vm257_vm1, %v226_v6  ;;  %327 = vst.msk [vmem:[#allocation2 + $0x159] sm:$0xff] %vm257_vm1, %v252_v10  ;;  %v245_v51 = vld [vmem:[%s6855_s30 + $0xa0] sm:$0xff]  ;;  %v246_v52 = vld [vmem:[%s6855_s30 + $0xa8] sm:$0xff]  ;;  %s5731_s17 = sshll.u32 %s8849_s19, 4  ;;  %vm5272_vm8 = vcmask 125952  }
  0x21   : > { %302 = vst.msk [vmem:[#allocation2 + $0x31] sm:$0xff] %vm257_vm1, %v227_v11  ;;  %328 = vst.msk [vmem:[#allocation2 + $0x169] sm:$0xff] %vm257_vm1, %v253_v12  ;;  %v247_v53 = vld [vmem:[%s6855_s30 + $0xb0] sm:$0xff]  ;;  %v248_v54 = vld [vmem:[%s6855_s30 + $0xb8] sm:$0xff]  ;;  %s224_s22 = scalar_lea.vmem %s8608_s5, %s5731_s17 }
  0x22   : > { %303 = vst.msk [vmem:[#allocation2 + $0x39] sm:$0xff] %vm257_vm1, %v228_v13  ;;  %329 = vst.msk [vmem:[#allocation2 + $0x171] sm:$0xff] %vm257_vm1, %v254_v14  ;;  %v249_v55 = vld [vmem:[%s6855_s30 + $0xc0] sm:$0xff]  ;;  %v250_v58 = vld [vmem:[%s6855_s30 + $0xc8] sm:$0xff] }
  0x23   : > { %304 = vst.msk [vmem:[#allocation2 + $0x49] sm:$0xff] %vm257_vm1, %v229_v15  ;;  %305 = vst.msk [vmem:[#allocation2 + $0x51] sm:$0xff] %vm257_vm1, %v230_v16  ;;  %v255_v15 = vld [vmem:[%s6855_s30 + $0xf0] sm:$0xff]  ;;  %v256_v16 = vld [vmem:[%s6855_s30 + $0xf8] sm:$0xff] }
  0x24   : > { %306 = vst.msk [vmem:[#allocation2 + $0x61] sm:$0xff] %vm257_vm1, %v231_v17  ;;  %307 = vst.msk [vmem:[#allocation2 + $0x69] sm:$0xff] %vm257_vm1, %v232_v18 }
  0x25   : > { %308 = vst.msk [vmem:[#allocation2 + $0x79] sm:$0xff] %vm257_vm1, %v233_v19  ;;  %309 = vst.msk [vmem:[#allocation2 + $0x81] sm:$0xff] %vm257_vm1, %v234_v20 }
  0x26   : > { %310 = vst.msk [vmem:[#allocation2 + $0x91] sm:$0xff] %vm257_vm1, %v235_v21  ;;  %311 = vst.msk [vmem:[#allocation2 + $0x99] sm:$0xff] %vm257_vm1, %v236_v22  ;;  %v6905_v27 = vld [vmem:[#allocation2 + $0x19] sm:$0xff]  ;;  %v6907_v28 = vld [vmem:[#allocation2 + $0x151] sm:$0xff] }
  0x27   : > { %312 = vst.msk [vmem:[#allocation2 + $0xa9] sm:$0xff] %vm257_vm1, %v237_v23  ;;  %8661 = vst [vmem:[#allocation6_spill] sm:$0xff] %v6907_v28  ;;  %v6909_v29 = vld [vmem:[#allocation2 + $0x21] sm:$0xff]  ;;  %6115 = vmatprep.mubr.msk.f32.mxu0 %vm257_vm1, %v6905_v27  ;;  %6154 = vmatprep.mubr.msk.f32.mxu1 %vm257_vm1, %v6907_v28  ;;  %v6918_v30 = vld [vmem:[#allocation2 + $0x159] sm:$0xff] }
  0x28   : > { %313 = vst.msk [vmem:[#allocation2 + $0xb1] sm:$0xff] %vm257_vm1, %v238_v24  ;;  %314 = vst.msk [vmem:[#allocation2 + $0xc1] sm:$0xff] %vm257_vm1, %v239_v25  ;;  %6116 = vmatmul.mubr.msk.f32.gmra.mxu0 %vm257_vm1, %v6909_v29  ;;  %6155 = vmatmul.mubr.msk.f32.vlgmr.msra.gmra.mxu1 %vm257_vm1, %v6918_v30  ;;  %v6924_v31 = vld [vmem:[#allocation2 + $0x31] sm:$0xff]  ;;  %v6926_v32 = vld [vmem:[#allocation2 + $0x169] sm:$0xff] }
  0x29   : > { %315 = vst.msk [vmem:[#allocation2 + $0xc9] sm:$0xff] %vm257_vm1, %v240_v26  ;;  %8662 = vst [vmem:[#allocation7_spill] sm:$0xff] %v6918_v30  ;;  %6118 = vmatprep.mubr.msk.f32.mxu0 %vm257_vm1, %v6924_v31  ;;  %6157 = vmatprep.mubr.msk.f32.mxu1 %vm257_vm1, %v6926_v32  ;;  %v6935_v34 = vld [vmem:[#allocation2 + $0x39] sm:$0xff]  ;;  %v6937_v35 = vld [vmem:[#allocation2 + $0x171] sm:$0xff] }
  0x2a   : > { %8663 = vst [vmem:[#allocation8_spill] sm:$0xff] %v6926_v32  ;;  %8664 = vst [vmem:[#allocation9_spill] sm:$0xff] %v6937_v35  ;;  %v6939_v36 = vld [vmem:[#allocation2 + $0x49] sm:$0xff]  ;;  %6161 = vmatpush3.msk.msra.mxu1 %vm495_vm0, %v6773_v3  ;;  %v6951_v38 = vld [vmem:[#allocation2 + $0x51] sm:$0xff] }
  0x2b   : > { %6260 = vmatprep.subr.msk.mxu1 %vm495_vm0, %v5442_v33  ;;  %v6953_v40 = vld [vmem:[#allocation2 + $0x61] sm:$0xff]  ;;  %v6955_v41 = vld [vmem:[#allocation2 + $0x18] sm:$0xff]  ;;  %v6973_v46 = vld [vmem:[#allocation2 + $0x69] sm:$0xff]  ;;  %316 = vst.msk [vmem:[#allocation2 + $0xd9] sm:$0xff] %vm257_vm1, %v241_v44 }
  0x2c   : > { %6119 = vmatmul.mubr.msk.f32.gmra.mxu0 %vm257_vm1, %v6935_v34  ;;  %6158 = vmatmul.mubr.msk.f32.gmra.mxu1 %vm257_vm1, %v6937_v35  ;;  %v6965_v43 = vld [vmem:[#allocation2 + $0x20] sm:$0xff]  ;;  %v6975_v47 = vld [vmem:[#allocation2 + $0x30] sm:$0xff]  ;;  %317 = vst.msk [vmem:[#allocation2 + $0xe1] sm:$0xff] %vm257_vm1, %v242_v45  ;;  %318 = vst.msk [vmem:[#allocation2 + $0xf1] sm:$0xff] %vm257_vm1, %v243_v48 }
  0x2d   : > { %6121 = vmatprep.mubr.msk.f32.mxu0 %vm257_vm1, %v6939_v36  ;;  %6162 = vmatprep.mubr.msk.f32.mxu1 %vm257_vm1, %v332_v37  ;;  %8665 = vst [vmem:[#allocation10_spill] sm:$0xff] %v6975_v47  ;;  %v6980_v49 = vld [vmem:[#allocation2 + $0x79] sm:$0xff]  ;;  %319 = vst.msk [vmem:[#allocation2 + $0xf9] sm:$0xff] %vm257_vm1, %v244_v50  ;;  %v7003_v56 = vld [vmem:[#allocation2 + $0x81] sm:$0xff] }
  0x2e   : > { %320 = vst.msk [vmem:[#allocation2 + $0x109] sm:$0xff] %vm257_vm1, %v245_v51  ;;  %321 = vst.msk [vmem:[#allocation2 + $0x111] sm:$0xff] %vm257_vm1, %v246_v52  ;;  %v7005_v57 = vld [vmem:[#allocation2 + $0x38] sm:$0xff]  ;;  %v7013_v60 = vld [vmem:[#allocation2 + $0x48] sm:$0xff] }
  0x2f   : > { %8666 = vst [vmem:[#allocation11_spill] sm:$0xff] %v7005_v57  ;;  %322 = vst.msk [vmem:[#allocation2 + $0x121] sm:$0xff] %vm257_vm1, %v247_v53  ;;  %v7011_v59 = vld [vmem:[#allocation2 + $0x91] sm:$0xff]  ;;  %v7024_v61 = vld [vmem:[#allocation2 + $0x99] sm:$0xff] }
  0x30   : > { %6122 = vmatmul.mubr.msk.f32.gmra.mxu0 %vm257_vm1, %v6951_v38  ;;  %6163 = vmatmul.mubr.msk.f32.vlgmr.msra.gmra.mxu1 %vm257_vm1, %v333_v39  ;;  %323 = vst.msk [vmem:[#allocation2 + $0x129] sm:$0xff] %vm257_vm1, %v248_v54  ;;  %324 = vst.msk [vmem:[#allocation2 + $0x139] sm:$0xff] %vm257_vm1, %v249_v55  ;;  %v7026_v62 = vld [vmem:[#allocation2 + $0x50] sm:$0xff]  ;;  %v7030_v0 = vld [vmem:[#allocation2 + $0x60] sm:$0xff] }
  0x31   : > { %6124 = vmatprep.mubr.msk.f32.mxu0 %vm257_vm1, %v6953_v40  ;;  %6165 = vmatprep.mubr.msk.f32.mxu1 %vm257_vm1, %v6955_v41  ;;  %8667 = vst [vmem:[#allocation12_spill] sm:$0xff] %v7013_v60  ;;  %325 = vst.msk [vmem:[#allocation2 + $0x141] sm:$0xff] %vm257_vm1, %v250_v58  ;;  %v7028_v63 = vld [vmem:[#allocation2 + $0xa9] sm:$0xff]  ;;  %v7040_v2 = vld [vmem:[#allocation2 + $0xb1] sm:$0xff] }
  0x32   : > { %6261 = vmatpush3.msk.msra.mxu1 %vm495_vm0, %v5442_v33  ;;  %8668 = vst [vmem:[#allocation13_spill] sm:$0xff] %v7026_v62  ;;  %8669 = vst [vmem:[#allocation14_spill] sm:$0xff] %v7030_v0  ;;  %v7042_v3 = vld [vmem:[#allocation2 + $0x68] sm:$0xff]  ;;  %v7046_v5 = vld [vmem:[#allocation2 + $0x78] sm:$0xff] }
  0x33   : > { %6360 = vmatprep.subr.msk.mxu1 %vm495_vm0, %v6960_v42  ;;  %8670 = vst [vmem:[#allocation15_spill] sm:$0xff] %v7042_v3  ;;  %v7044_v4 = vld [vmem:[#allocation2 + $0xc1] sm:$0xff]  ;;  %8671 = vst [vmem:[#allocation16_spill] sm:$0xff] %v7046_v5  ;;  %v7056_v6 = vld [vmem:[#allocation2 + $0xc9] sm:$0xff] }
  0x34   : > { %6125 = vmatmul.mubr.msk.f32.gmra.mxu0 %vm257_vm1, %v6973_v46  ;;  %6166 = vmatmul.mubr.msk.f32.gmra.mxu1 %vm257_vm1, %v6965_v43  ;;  %v7058_v8 = vld [vmem:[#allocation2 + $0x80] sm:$0xff]  ;;  %v7062_v10 = vld [vmem:[#allocation2 + $0x90] sm:$0xff]  ;;  %v7074_v12 = vld [vmem:[#allocation2 + $0x98] sm:$0xff]  ;;  %330 = vst.msk [vmem:[#allocation2 + $0x181] sm:$0xff] %vm257_vm1, %v255_v15 }
  0x35   : > { %6127 = vmatprep.mubr.msk.f32.mxu0 %vm257_vm1, %v6980_v49  ;;  %6168 = vmatprep.mubr.msk.f32.mxu1 %vm257_vm1, %v6975_v47  ;;  %8672 = vst [vmem:[#allocation17_spill] sm:$0xff] %v7058_v8  ;;  %v7060_v9 = vld [vmem:[#allocation2 + $0xd9] sm:$0xff]  ;;  %8673 = vst [vmem:[#allocation18_spill] sm:$0xff] %v7062_v10  ;;  %v7072_v11 = vld [vmem:[#allocation2 + $0xe1] sm:$0xff] }
  0x36   : > { %8674 = vst [vmem:[#allocation19_spill] sm:$0xff] %v7074_v12  ;;  %v7076_v13 = vld [vmem:[#allocation2 + $0xf1] sm:$0xff]  ;;  %v7078_v14 = vld [vmem:[#allocation2 + $0xa8] sm:$0xff]  ;;  %v7090_v17 = vld [vmem:[#allocation2 + $0xf9] sm:$0xff] }
  0x37   : > { %8675 = vst [vmem:[#allocation20_spill] sm:$0xff] %v7078_v14  ;;  %8676 = vst [vmem:[#allocation21_spill] sm:$0xff] %v7090_v17  ;;  %v7092_v18 = vld [vmem:[#allocation2 + $0xb0] sm:$0xff]  ;;  %v7098_v20 = vld [vmem:[#allocation2 + $0xc0] sm:$0xff] }
  0x38   : > { %6128 = vmatmul.mubr.msk.f32.gmra.mxu0 %vm257_vm1, %v7003_v56  ;;  %6169 = vmatmul.mubr.msk.f32.gmra.mxu1 %vm257_vm1, %v7005_v57  ;;  %8677 = vst [vmem:[#allocation22_spill] sm:$0xff] %v7092_v18  ;;  %331 = vst.msk [vmem:[#allocation2 + $0x189] sm:$0xff] %vm257_vm1, %v256_v16  ;;  %v7096_v19 = vld [vmem:[#allocation2 + $0x109] sm:$0xff]  ;;  %v7108_v21 = vld [vmem:[#allocation2 + $0x111] sm:$0xff] }
  0x39   : > { %6130 = vmatprep.mubr.msk.f32.mxu0 %vm257_vm1, %v7011_v59  ;;  %6171 = vmatprep.mubr.msk.f32.mxu1 %vm257_vm1, %v7013_v60  ;;  %8678 = vst [vmem:[#allocation23_spill] sm:$0xff] %v7096_v19  ;;  %8679 = vst [vmem:[#allocation24_spill] sm:$0xff] %v7098_v20  ;;  %v7110_v22 = vld [vmem:[#allocation2 + $0xc8] sm:$0xff]  ;;  %v7114_v24 = vld [vmem:[#allocation2 + $0xd8] sm:$0xff] }
  0x3a   : > { %8680 = vst [vmem:[#allocation25_spill] sm:$0xff] %v7108_v21  ;;  %8681 = vst [vmem:[#allocation26_spill] sm:$0xff] %v7110_v22  ;;  %v7112_v23 = vld [vmem:[#allocation2 + $0x121] sm:$0xff]  ;;  %v7124_v25 = vld [vmem:[#allocation2 + $0x129] sm:$0xff] }
  0x3b   : > { %8682 = vst [vmem:[#allocation27_spill] sm:$0xff] %v7112_v23  ;;  %8683 = vst [vmem:[#allocation28_spill] sm:$0xff] %v7124_v25  ;;  %v7126_v26 = vld [vmem:[#allocation2 + $0xe0] sm:$0xff]  ;;  %v7130_v37 = vld [vmem:[#allocation2 + $0xf0] sm:$0xff] }
  0x3c   : > { %6131 = vmatmul.mubr.msk.f32.gmra.mxu0 %vm257_vm1, %v7024_v61  ;;  %6172 = vmatmul.mubr.msk.f32.gmra.mxu1 %vm257_vm1, %v7026_v62  ;;  %8684 = vst [vmem:[#allocation29_spill] sm:$0xff] %v7126_v26  ;;  %v7128_v33 = vld [vmem:[#allocation2 + $0x139] sm:$0xff]  ;;  %v7140_v39 = vld [vmem:[#allocation2 + $0x141] sm:$0xff]  ;;  %v7153_v50 = vld [vmem:[#allocation2 + $0x110] sm:$0xff] }
  0x3d   : > { %6133 = vmatprep.mubr.msk.f32.mxu0 %vm257_vm1, %v7028_v63  ;;  %6174 = vmatprep.mubr.msk.f32.mxu1 %vm257_vm1, %v7030_v0  ;;  %8685 = vst [vmem:[#allocation30_spill] sm:$0xff] %v7128_v33  ;;  %8686 = vst [vmem:[#allocation31_spill] sm:$0xff] %v7140_v39  ;;  %v7142_v44 = vld [vmem:[#allocation2 + $0xf8] sm:$0xff]  ;;  %v7144_v45 = vld [vmem:[#allocation2 + $0x108] sm:$0xff] }
  0x3e   : > { %8687 = vst [vmem:[#allocation32_spill] sm:$0xff] %v7142_v44  ;;  %v1048_v48 = vld [vmem:[#allocation2 + $0x2] sm:$0xff]  ;;  %v1049_v51 = vld [vmem:[#allocation2 + $0xa] sm:$0xff]  ;;  %v7157_v53 = vld [vmem:[#allocation2 + $0x1a] sm:$0xff] }
  0x3f   : > { %v7155_v52 = vld [vmem:[#allocation2 + $0x120] sm:$0xff]  ;;  %v7162_v54 = vld [vmem:[%s8604_s1 + $0x18] sm:$0xf]  ;;  %v7171_v55 = vld [vmem:[#allocation2 + $0x128] sm:$0xff] }
  0x40   : > { %6134 = vmatmul.mubr.msk.f32.gmra.mxu0 %vm257_vm1, %v7040_v2  ;;  %6175 = vmatmul.mubr.msk.f32.gmra.mxu1 %vm257_vm1, %v7042_v3  ;;  %v7173_v58 = vld [vmem:[#allocation2 + $0x22] sm:$0xff]  ;;  %v7177_v15 = vld [vmem:[#allocation2 + $0x138] sm:$0xff]  ;;  %v7197_v1 = vld [vmem:[#allocation2 + $0x4a] sm:$0xff] }
  0x41   : > { %6136 = vmatprep.mubr.msk.f32.mxu0 %vm257_vm1, %v7044_v4  ;;  %6177 = vmatprep.mubr.msk.f32.mxu1 %vm257_vm1, %v7046_v5  ;;  %v7179_v16 = vld [vmem:[#allocation2 + $0x32] sm:$0xff]  ;;  %v7211_v30 = vld [vmem:[#allocation2 + $0x168] sm:$0xff] }
  0x42   : > { %v7207_v35 = vld [vmem:[#allocation2 + $0x158] sm:$0xff]  ;;  %v7213_v28 = vld [vmem:[#allocation2 + $0x62] sm:$0xff] }
  0x43   : > { %v7209_v32 = vld [vmem:[#allocation2 + $0x52] sm:$0xff] }
  0x44   : > { %6137 = vmatmul.mubr.msk.f32.gmra.mxu0 %vm257_vm1, %v7056_v6  ;;  %6178 = vmatmul.mubr.msk.f32.gmra.mxu1 %vm257_vm1, %v7058_v8 }
  0x45   : > { %6139 = vmatprep.mubr.msk.f32.mxu0 %vm257_vm1, %v7060_v9  ;;  %6180 = vmatprep.mubr.msk.f32.mxu1 %vm257_vm1, %v7062_v10 }
  0x48   : > { %6140 = vmatmul.mubr.msk.f32.gmra.mxu0 %vm257_vm1, %v7072_v11  ;;  %6181 = vmatmul.mubr.msk.f32.gmra.mxu1 %vm257_vm1, %v7074_v12 }
  0x49   : > { %6142 = vmatprep.mubr.msk.f32.mxu0 %vm257_vm1, %v7076_v13  ;;  %6183 = vmatprep.mubr.msk.f32.mxu1 %vm257_vm1, %v7078_v14 }
  0x4c   : > { %6143 = vmatmul.mubr.msk.f32.gmra.mxu0 %vm257_vm1, %v7090_v17  ;;  %6184 = vmatmul.mubr.msk.f32.gmra.mxu1 %vm257_vm1, %v7092_v18  ;;  %v7256_v17 = vld [vmem:[#allocation2 + $0xaa] sm:$0xff] }
  0x4d   : > { %6145 = vmatprep.mubr.msk.f32.mxu0 %vm257_vm1, %v7096_v19  ;;  %6186 = vmatprep.mubr.msk.f32.mxu1 %vm257_vm1, %v7098_v20  ;;  %v7248_v19 = vld [vmem:[%s8604_s1 + $0x1c] sm:$0xf]  ;;  %8692 = vst [vmem:[#allocation37_spill] sm:$0xff] %v7256_v17 }
  0x50   : > { %6146 = vmatmul.mubr.msk.f32.gmra.mxu0 %vm257_vm1, %v7108_v21  ;;  %6187 = vmatmul.mubr.msk.f32.gmra.mxu1 %vm257_vm1, %v7110_v22  ;;  %v7239_v21 = vld [vmem:[#allocation2 + $0x92] sm:$0xff] }
  0x51   : > { %6148 = vmatprep.mubr.msk.f32.mxu0 %vm257_vm1, %v7112_v23  ;;  %6189 = vmatprep.mubr.msk.f32.mxu1 %vm257_vm1, %v7114_v24  ;;  %v7237_v23 = vld [vmem:[#allocation2 + $0x82] sm:$0xff]  ;;  %8690 = vst [vmem:[#allocation35_spill] sm:$0xff] %v7239_v21 }
  0x52   : > { %8689 = vst [vmem:[#allocation34_spill] sm:$0xff] %v7237_v23 }
  0x54   : > { %6149 = vmatmul.mubr.msk.f32.gmra.mxu0 %vm257_vm1, %v7124_v25  ;;  %6190 = vmatmul.mubr.msk.f32.gmra.mxu1 %vm257_vm1, %v7126_v26  ;;  %v7227_v25 = vld [vmem:[#allocation2 + $0x7a] sm:$0xff] }
  0x55   : > { %6151 = vmatprep.mubr.msk.f32.mxu0 %vm257_vm1, %v7128_v33  ;;  %6192 = vmatprep.mubr.msk.f32.mxu1 %vm257_vm1, %v7130_v37  ;;  %v7225_v33 = vld [vmem:[#allocation2 + $0x6a] sm:$0xff]  ;;  %8688 = vst [vmem:[#allocation33_spill] sm:$0xff] %v7227_v25 }
  0x58   : > { %6152 = vmatmul.mubr.msk.f32.gmra.mxu0 %vm257_vm1, %v7140_v39  ;;  %6193 = vmatmul.mubr.msk.f32.gmra.mxu1 %vm257_vm1, %v7142_v44  ;;  %v7223_v39 = vld [vmem:[#allocation2 + $0x170] sm:$0xff] }
  0x59   : > { %6195 = vmatprep.mubr.msk.f32.mxu1 %vm257_vm1, %v7144_v45  ;;  %6212 = vmatprep.mubr.msk.f32.mxu0 %vm257_vm1, %v1048_v48  ;;  %v7193_v48 = vld [vmem:[#allocation2 + $0x3a] sm:$0xff] }
  0x5c   : > { %6196 = vmatmul.mubr.msk.f32.gmra.mxu1 %vm257_vm1, %v7153_v50  ;;  %6213 = vmatmul.mubr.msk.f32.vlgmr.msra.gmra.mxu0 %vm257_vm1, %v1049_v51  ;;  %v7195_v51 = vld [vmem:[#allocation2 + $0x150] sm:$0xff] }
  0x5d   : > { %6311 = vmatpush3.msk.msra.mxu0 %vm495_vm0, %v6863_v7  ;;  %6198 = vmatprep.mubr.msk.f32.mxu1 %vm257_vm1, %v7155_v52  ;;  %v7191_v7 = vld [vmem:[#allocation2 + $0x140] sm:$0xff] }
  0x5e   : > { %6215 = vmatprep.mubr.msk.f32.mxu0 %vm257_vm1, %v7157_v53  ;;  %6410 = vmatprep.subr.msk.mxu0 %vm495_vm0, %v7162_v54 }
  0x60   : > { %6199 = vmatmul.mubr.msk.f32.gmra.mxu1 %vm257_vm1, %v7171_v55  ;;  %6216 = vmatmul.mubr.msk.f32.gmra.mxu0 %vm257_vm1, %v7173_v58 }
  0x61   : > { %6201 = vmatprep.mubr.msk.f32.mxu1 %vm257_vm1, %v7177_v15  ;;  %6218 = vmatprep.mubr.msk.f32.mxu0 %vm257_vm1, %v7179_v16 }
  0x64   : > { %6202 = vmatmul.mubr.msk.f32.gmra.mxu1 %vm257_vm1, %v7191_v7  ;;  %6219 = vmatmul.mubr.msk.f32.gmra.mxu0 %vm257_vm1, %v7193_v48 }
  0x65   : > { %6204 = vmatprep.mubr.msk.f32.mxu1 %vm257_vm1, %v7195_v51  ;;  %6221 = vmatprep.mubr.msk.f32.mxu0 %vm257_vm1, %v7197_v1 }
  0x68   : > { %6205 = vmatmul.mubr.msk.f32.gmra.mxu1 %vm257_vm1, %v7207_v35  ;;  %6222 = vmatmul.mubr.msk.f32.gmra.mxu0 %vm257_vm1, %v7209_v32 }
  0x69   : > { %6207 = vmatprep.mubr.msk.f32.mxu1 %vm257_vm1, %v7211_v30  ;;  %6224 = vmatprep.mubr.msk.f32.mxu0 %vm257_vm1, %v7213_v28 }
  0x6c   : > { %6208 = vmatmul.mubr.msk.f32.gmra.mxu1 %vm257_vm1, %v7223_v39  ;;  %6225 = vmatmul.mubr.msk.f32.gmra.mxu0 %vm257_vm1, %v7225_v33 }
  0x6d   : > { %6227 = vmatprep.mubr.msk.f32.mxu0 %vm257_vm1, %v7227_v25  ;;  %6262 = vmatprep.mubr.msk.f32.mxu1 %vm257_vm1, %v6955_v41  ;;  %v7254_v41 = vld [vmem:[#allocation2 + $0x9a] sm:$0xff] }
  0x6e   : > { %8691 = vst [vmem:[#allocation36_spill] sm:$0xff] %v7254_v41 }
  0x70   : > { %6228 = vmatmul.mubr.msk.f32.gmra.mxu0 %vm257_vm1, %v7237_v23  ;;  %6263 = vmatmul.mubr.msk.f32.vlgmr.msra.gmra.mxu1 %vm257_vm1, %v6965_v43  ;;  %v7270_v43 = vld [vmem:[#allocation2 + $0xb2] sm:$0xff] }
  0x71   : > { %6230 = vmatprep.mubr.msk.f32.mxu0 %vm257_vm1, %v7239_v21  ;;  %6265 = vmatprep.mubr.msk.f32.mxu1 %vm257_vm1, %v6975_v47  ;;  %8693 = vst [vmem:[#allocation38_spill] sm:$0xff] %v7270_v43  ;;  %v7272_v47 = vld [vmem:[#allocation2 + $0xc2] sm:$0xff] }
  0x72   : > { %6361 = vmatpush3.msk.msra.mxu1 %vm495_vm0, %v6960_v42  ;;  %8694 = vst [vmem:[#allocation39_spill] sm:$0xff] %v7272_v47  ;;  %v7282_v42 = vld [vmem:[#allocation2 + $0xca] sm:$0xff] }
  0x73   : > { %6460 = vmatprep.subr.msk.mxu1 %vm495_vm0, %v7248_v19  ;;  %8695 = vst [vmem:[#allocation40_spill] sm:$0xff] %v7282_v42 }
  0x74   : > { %6231 = vmatmul.mubr.msk.f32.gmra.mxu0 %vm257_vm1, %v7254_v41  ;;  %6266 = vmatmul.mubr.msk.f32.gmra.mxu1 %vm257_vm1, %v7005_v57  ;;  %v7284_v57 = vld [vmem:[#allocation2 + $0xda] sm:$0xff] }
  0x75   : > { %6233 = vmatprep.mubr.msk.f32.mxu0 %vm257_vm1, %v7256_v17  ;;  %6268 = vmatprep.mubr.msk.f32.mxu1 %vm257_vm1, %v7013_v60  ;;  %8696 = vst [vmem:[#allocation41_spill] sm:$0xff] %v7284_v57  ;;  %v7296_v60 = vld [vmem:[#allocation2 + $0xf2] sm:$0xff] }
  0x76   : > { %8698 = vst [vmem:[#allocation43_spill] sm:$0xff] %v7296_v60 }
  0x78   : > { %6234 = vmatmul.mubr.msk.f32.gmra.mxu0 %vm257_vm1, %v7270_v43  ;;  %6269 = vmatmul.mubr.msk.f32.gmra.mxu1 %vm257_vm1, %v7026_v62  ;;  %v7294_v62 = vld [vmem:[#allocation2 + $0xe2] sm:$0xff] }
  0x79   : > { %6236 = vmatprep.mubr.msk.f32.mxu0 %vm257_vm1, %v7272_v47  ;;  %6271 = vmatprep.mubr.msk.f32.mxu1 %vm257_vm1, %v7030_v0  ;;  %8697 = vst [vmem:[#allocation42_spill] sm:$0xff] %v7294_v62  ;;  %v7308_v0 = vld [vmem:[#allocation2 + $0x10a] sm:$0xff] }
  0x7c   : > { %6237 = vmatmul.mubr.msk.f32.gmra.mxu0 %vm257_vm1, %v7282_v42  ;;  %6272 = vmatmul.mubr.msk.f32.gmra.mxu1 %vm257_vm1, %v7042_v3  ;;  %v7306_v3 = vld [vmem:[#allocation2 + $0xfa] sm:$0xff] }
  0x7d   : > { %6239 = vmatprep.mubr.msk.f32.mxu0 %vm257_vm1, %v7284_v57  ;;  %6274 = vmatprep.mubr.msk.f32.mxu1 %vm257_vm1, %v7046_v5  ;;  %v7320_v5 = vld [vmem:[#allocation2 + $0x122] sm:$0xff] }
  0x80   : > { %6240 = vmatmul.mubr.msk.f32.gmra.mxu0 %vm257_vm1, %v7294_v62  ;;  %6275 = vmatmul.mubr.msk.f32.gmra.mxu1 %vm257_vm1, %v7058_v8  ;;  %v7318_v8 = vld [vmem:[#allocation2 + $0x112] sm:$0xff] }
  0x81   : > { %6242 = vmatprep.mubr.msk.f32.mxu0 %vm257_vm1, %v7296_v60  ;;  %6277 = vmatprep.mubr.msk.f32.mxu1 %vm257_vm1, %v7062_v10  ;;  %v7332_v10 = vld [vmem:[#allocation2 + $0x13a] sm:$0xff] }
  0x84   : > { %6243 = vmatmul.mubr.msk.f32.gmra.mxu0 %vm257_vm1, %v7306_v3  ;;  %6278 = vmatmul.mubr.msk.f32.gmra.mxu1 %vm257_vm1, %v7074_v12  ;;  %v7330_v12 = vld [vmem:[#allocation2 + $0x12a] sm:$0xff] }
  0x85   : > { %6245 = vmatprep.mubr.msk.f32.mxu0 %vm257_vm1, %v7308_v0  ;;  %6280 = vmatprep.mubr.msk.f32.mxu1 %vm257_vm1, %v7078_v14  ;;  %v7344_v14 = vld [vmem:[#allocation2 + $0x152] sm:$0xff] }
  0x88   : > { %6246 = vmatmul.mubr.msk.f32.gmra.mxu0 %vm257_vm1, %v7318_v8  ;;  %6281 = vmatmul.mubr.msk.f32.gmra.mxu1 %vm257_vm1, %v7092_v18  ;;  %v7342_v18 = vld [vmem:[#allocation2 + $0x142] sm:$0xff] }
  0x89   : > { %6248 = vmatprep.mubr.msk.f32.mxu0 %vm257_vm1, %v7320_v5  ;;  %6283 = vmatprep.mubr.msk.f32.mxu1 %vm257_vm1, %v7098_v20  ;;  %v7356_v20 = vld [vmem:[#allocation2 + $0x16a] sm:$0xff] }
  0x8c   : > { %6249 = vmatmul.mubr.msk.f32.gmra.mxu0 %vm257_vm1, %v7330_v12  ;;  %6284 = vmatmul.mubr.msk.f32.gmra.mxu1 %vm257_vm1, %v7110_v22  ;;  %v7354_v22 = vld [vmem:[#allocation2 + $0x15a] sm:$0xff] }
  0x8d   : > { %6251 = vmatprep.mubr.msk.f32.mxu0 %vm257_vm1, %v7332_v10  ;;  %6286 = vmatprep.mubr.msk.f32.mxu1 %vm257_vm1, %v7114_v24 }
  0x90   : > { %6252 = vmatmul.mubr.msk.f32.gmra.mxu0 %vm257_vm1, %v7342_v18  ;;  %6287 = vmatmul.mubr.msk.f32.gmra.mxu1 %vm257_vm1, %v7126_v26  ;;  %v7366_v26 = vld [vmem:[#allocation2 + $0x172] sm:$0xff] }
  0x91   : > { %6254 = vmatprep.mubr.msk.f32.mxu0 %vm257_vm1, %v7344_v14  ;;  %6289 = vmatprep.mubr.msk.f32.mxu1 %vm257_vm1, %v7130_v37 }
  0x94   : > { %6255 = vmatmul.mubr.msk.f32.gmra.mxu0 %vm257_vm1, %v7354_v22  ;;  %6290 = vmatmul.mubr.msk.f32.gmra.mxu1 %vm257_vm1, %v7142_v44  ;;  %v7379_v44 = vld [vmem:[%s8604_s1 + $0x20] sm:$0xf] }
  0x95   : > { %6257 = vmatprep.mubr.msk.f32.mxu0 %vm257_vm1, %v7356_v20  ;;  %6292 = vmatprep.mubr.msk.f32.mxu1 %vm257_vm1, %v7144_v45 }
  0x98   : > { %6258 = vmatmul.mubr.msk.f32.gmra.mxu0 %vm257_vm1, %v7366_v26  ;;  %6293 = vmatmul.mubr.msk.f32.gmra.mxu1 %vm257_vm1, %v7153_v50 }
  0x99   : > { %6295 = vmatprep.mubr.msk.f32.mxu1 %vm257_vm1, %v7155_v52  ;;  %6312 = vmatprep.mubr.msk.f32.mxu0 %vm257_vm1, %v6905_v27  ;;  %v7409_v27 = vld [vmem:[#allocation2 + $0x180] sm:$0xff] }
  0x9c   : > { %6296 = vmatmul.mubr.msk.f32.gmra.mxu1 %vm257_vm1, %v7171_v55  ;;  %6313 = vmatmul.mubr.msk.f32.vlgmr.msra.gmra.mxu0 %vm257_vm1, %v6909_v29  ;;  %v7419_v29 = vld [vmem:[#allocation2 + $0x188] sm:$0xff] }
  0x9d   : > { %6411 = vmatpush3.msk.msra.mxu0 %vm495_vm0, %v7162_v54  ;;  %6298 = vmatprep.mubr.msk.f32.mxu1 %vm257_vm1, %v7177_v15  ;;  %v8701_v54 = vld [vmem:[#allocation25_spill] sm:$0xff] }
  0x9e   : > { %6315 = vmatprep.mubr.msk.f32.mxu0 %vm257_vm1, %v6924_v31  ;;  %6510 = vmatprep.subr.msk.mxu0 %vm495_vm0, %v7379_v44 }
  0xa0   : > { %6299 = vmatmul.mubr.msk.f32.gmra.mxu1 %vm257_vm1, %v7191_v7  ;;  %6316 = vmatmul.mubr.msk.f32.gmra.mxu0 %vm257_vm1, %v6935_v34 }
  0xa1   : > { %6301 = vmatprep.mubr.msk.f32.mxu1 %vm257_vm1, %v7195_v51  ;;  %6318 = vmatprep.mubr.msk.f32.mxu0 %vm257_vm1, %v6939_v36 }
  0xa4   : > { %6302 = vmatmul.mubr.msk.f32.gmra.mxu1 %vm257_vm1, %v7207_v35  ;;  %6319 = vmatmul.mubr.msk.f32.gmra.mxu0 %vm257_vm1, %v6951_v38 }
  0xa5   : > { %6304 = vmatprep.mubr.msk.f32.mxu1 %vm257_vm1, %v7211_v30  ;;  %6321 = vmatprep.mubr.msk.f32.mxu0 %vm257_vm1, %v6953_v40 }
  0xa8   : > { %6305 = vmatmul.mubr.msk.f32.gmra.mxu1 %vm257_vm1, %v7223_v39  ;;  %6322 = vmatmul.mubr.msk.f32.gmra.mxu0 %vm257_vm1, %v6973_v46 }
  0xa9   : > { %6307 = vmatprep.mubr.msk.f32.mxu1 %vm257_vm1, %v7409_v27  ;;  %6324 = vmatprep.mubr.msk.f32.mxu0 %vm257_vm1, %v6980_v49 }
  0xac   : > { %6308 = vmatmul.mubr.msk.f32.gmra.mxu1 %vm257_vm1, %v7419_v29  ;;  %6325 = vmatmul.mubr.msk.f32.gmra.mxu0 %vm257_vm1, %v7003_v56 }
  0xad   : > { %6327 = vmatprep.mubr.msk.f32.mxu0 %vm257_vm1, %v7011_v59  ;;  %6362 = vmatprep.mubr.msk.f32.mxu1 %vm257_vm1, %v7157_v53  ;;  %v8700_v53 = vld [vmem:[#allocation23_spill] sm:$0xff] }
  0xb0   : > { %6328 = vmatmul.mubr.msk.f32.gmra.mxu0 %vm257_vm1, %v7024_v61  ;;  %6363 = vmatmul.mubr.msk.f32.vlgmr.msra.gmra.mxu1 %vm257_vm1, %v7173_v58  ;;  %v8702_v58 = vld [vmem:[#allocation27_spill] sm:$0xff] }
  0xb1   : > { %6330 = vmatprep.mubr.msk.f32.mxu0 %vm257_vm1, %v7028_v63  ;;  %6365 = vmatprep.mubr.msk.f32.mxu1 %vm257_vm1, %v7179_v16 }
  0xb2   : > { %6461 = vmatpush3.msk.msra.mxu1 %vm495_vm0, %v7248_v19  ;;  %v8699_v19 = vld [vmem:[#allocation21_spill] sm:$0xff] }
  0xb4   : > { %6331 = vmatmul.mubr.msk.f32.gmra.mxu0 %vm257_vm1, %v7040_v2  ;;  %6366 = vmatmul.mubr.msk.f32.gmra.mxu1 %vm257_vm1, %v7193_v48 }
  0xb5   : > { %6333 = vmatprep.mubr.msk.f32.mxu0 %vm257_vm1, %v7044_v4  ;;  %6368 = vmatprep.mubr.msk.f32.mxu1 %vm257_vm1, %v7197_v1 }
  0xb8   : > { %6334 = vmatmul.mubr.msk.f32.gmra.mxu0 %vm257_vm1, %v7056_v6  ;;  %6369 = vmatmul.mubr.msk.f32.gmra.mxu1 %vm257_vm1, %v7209_v32 }
  0xb9   : > { %6336 = vmatprep.mubr.msk.f32.mxu0 %vm257_vm1, %v7060_v9  ;;  %6371 = vmatprep.mubr.msk.f32.mxu1 %vm257_vm1, %v7213_v28 }
  0xbc   : > { %6337 = vmatmul.mubr.msk.f32.gmra.mxu0 %vm257_vm1, %v7072_v11  ;;  %6372 = vmatmul.mubr.msk.f32.gmra.mxu1 %vm257_vm1, %v7225_v33 }
  0xbd   : > { %6339 = vmatprep.mubr.msk.f32.mxu0 %vm257_vm1, %v7076_v13  ;;  %6374 = vmatprep.mubr.msk.f32.mxu1 %vm257_vm1, %v7227_v25  ;;  %v8703_v25 = vld [vmem:[#allocation28_spill] sm:$0xff] }
  0xc0   : > { %6340 = vmatmul.mubr.msk.f32.gmra.mxu0 %vm257_vm1, %v8699_v19  ;;  %6375 = vmatmul.mubr.msk.f32.gmra.mxu1 %vm257_vm1, %v7237_v23  ;;  %v8704_v23 = vld [vmem:[#allocation30_spill] sm:$0xff] }
  0xc1   : > { %6342 = vmatprep.mubr.msk.f32.mxu0 %vm257_vm1, %v8700_v53  ;;  %6377 = vmatprep.mubr.msk.f32.mxu1 %vm257_vm1, %v7239_v21  ;;  %v8705_v21 = vld [vmem:[#allocation31_spill] sm:$0xff] }
  0xc4   : > { %6343 = vmatmul.mubr.msk.f32.gmra.mxu0 %vm257_vm1, %v8701_v54  ;;  %6378 = vmatmul.mubr.msk.f32.gmra.mxu1 %vm257_vm1, %v7254_v41  ;;  %v8706_v41 = vld [vmem:[#allocation6_spill] sm:$0xff] }
  0xc5   : > { %6345 = vmatprep.mubr.msk.f32.mxu0 %vm257_vm1, %v8702_v58  ;;  %6380 = vmatprep.mubr.msk.f32.mxu1 %vm257_vm1, %v7256_v17  ;;  %v8707_v17 = vld [vmem:[#allocation7_spill] sm:$0xff] }
  0xc8   : > { %6346 = vmatmul.mubr.msk.f32.gmra.mxu0 %vm257_vm1, %v8703_v25  ;;  %6381 = vmatmul.mubr.msk.f32.gmra.mxu1 %vm257_vm1, %v7270_v43  ;;  %v8708_v43 = vld [vmem:[#allocation8_spill] sm:$0xff] }
  0xc9   : > { %6348 = vmatprep.mubr.msk.f32.mxu0 %vm257_vm1, %v8704_v23  ;;  %6383 = vmatprep.mubr.msk.f32.mxu1 %vm257_vm1, %v7272_v47  ;;  %v7503_v47 = vld [vmem:[#allocation2 + $0x181] sm:$0xff] }
  0xcc   : > { %6349 = vmatmul.mubr.msk.f32.gmra.mxu0 %vm257_vm1, %v8705_v21  ;;  %6384 = vmatmul.mubr.msk.f32.gmra.mxu1 %vm257_vm1, %v7282_v42  ;;  %v8709_v42 = vld [vmem:[#allocation9_spill] sm:$0xff] }
  0xcd   : > { %6351 = vmatprep.mubr.msk.f32.mxu0 %vm257_vm1, %v8706_v41  ;;  %6386 = vmatprep.mubr.msk.f32.mxu1 %vm257_vm1, %v7284_v57  ;;  %v8710_v41 = vld [vmem:[#allocation10_spill] sm:$0xff] }
  0xce   : > { %v8727_v57 = vld [vmem:[#allocation26_spill] sm:$0xff] }
  0xd0   : > { %6352 = vmatmul.mubr.msk.f32.gmra.mxu0 %vm257_vm1, %v8707_v17  ;;  %6387 = vmatmul.mubr.msk.f32.gmra.mxu1 %vm257_vm1, %v7294_v62  ;;  %v7513_v17 = vld [vmem:[#allocation2 + $0x189] sm:$0xff] }
  0xd1   : > { %6354 = vmatprep.mubr.msk.f32.mxu0 %vm257_vm1, %v8708_v43  ;;  %6389 = vmatprep.mubr.msk.f32.mxu1 %vm257_vm1, %v7296_v60  ;;  %v7549_v43 = vld [vmem:[#allocation2 + $0x182] sm:$0xff] }
  0xd2   : > { %8717 = vst [vmem:[#allocation21_spill] sm:$0xff] %v7549_v43 }
  0xd4   : > { %6355 = vmatmul.mubr.msk.f32.gmra.mxu0 %vm257_vm1, %v8709_v42  ;;  %6390 = vmatmul.mubr.msk.f32.gmra.mxu1 %vm257_vm1, %v7306_v3  ;;  %v8711_v3 = vld [vmem:[#allocation11_spill] sm:$0xff] }
  0xd5   : > { %6357 = vmatprep.mubr.msk.f32.mxu0 %vm257_vm1, %v7503_v47  ;;  %6392 = vmatprep.mubr.msk.f32.mxu1 %vm257_vm1, %v7308_v0  ;;  %v8712_v0 = vld [vmem:[#allocation12_spill] sm:$0xff] }
  0xd8   : > { %6358 = vmatmul.mubr.msk.f32.gmra.mxu0 %vm257_vm1, %v7513_v17  ;;  %6393 = vmatmul.mubr.msk.f32.gmra.mxu1 %vm257_vm1, %v7318_v8  ;;  %v8714_v8 = vld [vmem:[#allocation14_spill] sm:$0xff] }
  0xd9   : > { %6395 = vmatprep.mubr.msk.f32.mxu1 %vm257_vm1, %v7320_v5  ;;  %6412 = vmatprep.mubr.msk.f32.mxu0 %vm257_vm1, %v8710_v41  ;;  %v8713_v5 = vld [vmem:[#allocation13_spill] sm:$0xff] }
  0xda   : > { %v8718_v41 = vld [vmem:[#allocation17_spill] sm:$0xff] }
  0xdc   : > { %6396 = vmatmul.mubr.msk.f32.gmra.mxu1 %vm257_vm1, %v7330_v12  ;;  %6413 = vmatmul.mubr.msk.f32.vlgmr.msra.gmra.mxu0 %vm257_vm1, %v8711_v3  ;;  %v6114_v12 = vpop.f32.mrf.mxu0 }
  0xdd   : > { %6511 = vmatpush3.msk.msra.mxu0 %vm495_vm0, %v7379_v44  ;;  %6398 = vmatprep.mubr.msk.f32.mxu1 %vm257_vm1, %v7332_v10  ;;  %v8715_v10 = vld [vmem:[#allocation15_spill] sm:$0xff] }
  0xde   : > { %6415 = vmatprep.mubr.msk.f32.mxu0 %vm257_vm1, %v8712_v0  ;;  %v565_v44 = vpop.f32.mrf.mxu0 }
  0xe0   : > { %6399 = vmatmul.mubr.msk.f32.gmra.mxu1 %vm257_vm1, %v7342_v18  ;;  %6416 = vmatmul.mubr.msk.f32.gmra.mxu0 %vm257_vm1, %v8713_v5  ;;  %v8716_v18 = vld [vmem:[#allocation16_spill] sm:$0xff] }
  0xe1   : > { %6401 = vmatprep.mubr.msk.f32.mxu1 %vm257_vm1, %v7344_v14  ;;  %6418 = vmatprep.mubr.msk.f32.mxu0 %vm257_vm1, %v8714_v8 }
  0xe4   : > { %6402 = vmatmul.mubr.msk.f32.gmra.mxu1 %vm257_vm1, %v7354_v22  ;;  %6419 = vmatmul.mubr.msk.f32.gmra.mxu0 %vm257_vm1, %v8715_v10  ;;  %v8719_v22 = vld [vmem:[#allocation18_spill] sm:$0xff]  ;;  %v8723_v10 = vld [vmem:[#allocation20_spill] sm:$0xff] }
  0xe5   : > { %6404 = vmatprep.mubr.msk.f32.mxu1 %vm257_vm1, %v7356_v20  ;;  %6421 = vmatprep.mubr.msk.f32.mxu0 %vm257_vm1, %v8716_v18  ;;  %v7561_v20 = vld [vmem:[#allocation2 + $0x18a] sm:$0xff] }
  0xe6   : > { %8720 = vst [vmem:[#allocation23_spill] sm:$0xff] %v7561_v20 }
  0xe8   : > { %v6117_v14 = vpop.f32.mrf.mxu0  ;;  %v7551_v42 = vpop.f32.mrf.mxu1  ;;  %6405 = vmatmul.mubr.msk.f32.gmra.mxu1 %vm257_vm1, %v7366_v26  ;;  %6422 = vmatmul.mubr.msk.f32.gmra.mxu0 %vm257_vm1, %v8718_v41  ;;  %v8722_v26 = vld [vmem:[#allocation19_spill] sm:$0xff] }
  0xe9   : > { %6407 = vmatprep.mubr.msk.f32.mxu1 %vm257_vm1, %v7549_v43  ;;  %6424 = vmatprep.mubr.msk.f32.mxu0 %vm257_vm1, %v8719_v22  ;;  %v8725_v43 = vld [vmem:[#allocation22_spill] sm:$0xff] }
  0xea   : > { %v575_v3 = vpop.f32.mrf.mxu0  ;;  %v7563_v0 = vpop.f32.mrf.mxu1 }
  0xeb   : > { %8721 = vst [vmem:[#allocation25_spill] sm:$0xff] %v7563_v0 }
  0xec   : > { %v6120_v5 = vpop.f32.mrf.mxu0  ;;  %v7565_v8 = vpop.f32.mrf.mxu1  ;;  %6408 = vmatmul.mubr.msk.f32.gmra.mxu1 %vm257_vm1, %v7561_v20  ;;  %6425 = vmatmul.mubr.msk.f32.gmra.mxu0 %vm257_vm1, %v8722_v26  ;;  %v8726_v26 = vld [vmem:[#allocation24_spill] sm:$0xff] }
  0xed   : > { %6427 = vmatprep.mubr.msk.f32.mxu0 %vm257_vm1, %v8723_v10  ;;  %6462 = vmatprep.mubr.msk.f32.mxu1 %vm257_vm1, %v6924_v31 }
  0xee   : > { %v585_v18 = vpop.f32.mrf.mxu0  ;;  %v7575_v41 = vpop.f32.mrf.mxu1 }
  0xef   : > { %8724 = vst [vmem:[#allocation27_spill] sm:$0xff] %v7575_v41 }
  0xf0   : > { %v6123_v22 = vpop.f32.mrf.mxu0  ;;  %v6164_v0 = vpop.f32.mrf.mxu1  ;;  %6428 = vmatmul.mubr.msk.f32.gmra.mxu0 %vm257_vm1, %v8725_v43  ;;  %6463 = vmatmul.mubr.msk.f32.vlgmr.msra.gmra.mxu1 %vm257_vm1, %v6935_v34 }
  0xf1   : > { %v7581_v20 = vadd.f32 %v6164_v0, %v6114_v12  ;;  %6430 = vmatprep.mubr.msk.f32.mxu0 %vm257_vm1, %v8726_v26  ;;  %6465 = vmatprep.mubr.msk.f32.mxu1 %vm257_vm1, %v6939_v36  ;;  %v8728_v26 = vld [vmem:[#allocation29_spill] sm:$0xff] }
  0xf2   : > { %v595_v31 = vpop.f32.mrf.mxu0  ;;  %v889_v10 = vpop.f32.mrf.mxu1 }
  0xf3   : > { %v7587_v60 = vadd.f32 %v889_v10, %v565_v44 }
  0xf4   : > { %v6126_v41 = vpop.f32.mrf.mxu0  ;;  %v6167_v62 = vpop.f32.mrf.mxu1  ;;  %6431 = vmatmul.mubr.msk.f32.gmra.mxu0 %vm257_vm1, %v8727_v57  ;;  %6466 = vmatmul.mubr.msk.f32.gmra.mxu1 %vm257_vm1, %v6951_v38 }
  0xf5   : > { %v7593_v34 = vadd.f32 %v6167_v62, %v6117_v14  ;;  %6433 = vmatprep.mubr.msk.f32.mxu0 %vm257_vm1, %v7114_v24  ;;  %6468 = vmatprep.mubr.msk.f32.mxu1 %vm257_vm1, %v6953_v40 }
  0xf6   : > { %v605_v36 = vpop.f32.mrf.mxu0  ;;  %v899_v12 = vpop.f32.mrf.mxu1 }
  0xf7   : > { %v7599_v44 = vadd.f32 %v899_v12, %v575_v3  ;;  %v8729_v3 = vld [vmem:[#allocation32_spill] sm:$0xff] }
  0xf8   : > { %v6129_v43 = vpop.f32.mrf.mxu0  ;;  %v6170_v0 = vpop.f32.mrf.mxu1  ;;  %6434 = vmatmul.mubr.msk.f32.gmra.mxu0 %vm257_vm1, %v8728_v26  ;;  %6469 = vmatmul.mubr.msk.f32.gmra.mxu1 %vm257_vm1, %v6973_v46 }
  0xf9   : > { %v7605_v38 = vadd.f32 %v6170_v0, %v6120_v5  ;;  %6436 = vmatprep.mubr.msk.f32.mxu0 %vm257_vm1, %v7130_v37  ;;  %6471 = vmatprep.mubr.msk.f32.mxu1 %vm257_vm1, %v6980_v49 }
  0xfa   : > { %v615_v40 = vpop.f32.mrf.mxu0  ;;  %v909_v57 = vpop.f32.mrf.mxu1 }
  0xfb   : > { %v7611_v62 = vadd.f32 %v909_v57, %v585_v18 }
  0xfc   : > { %v6132_v24 = vpop.f32.mrf.mxu0  ;;  %v6173_v14 = vpop.f32.mrf.mxu1  ;;  %6437 = vmatmul.mubr.msk.f32.gmra.mxu0 %vm257_vm1, %v8729_v3  ;;  %6472 = vmatmul.mubr.msk.f32.gmra.mxu1 %vm257_vm1, %v7003_v56 }
  0xfd   : > { %v7617_v46 = vadd.f32 %v6173_v14, %v6123_v22  ;;  %6439 = vmatprep.mubr.msk.f32.mxu0 %vm257_vm1, %v7144_v45  ;;  %6474 = vmatprep.mubr.msk.f32.mxu1 %vm257_vm1, %v7011_v59 }
  0xfe   : > { %v625_v49 = vpop.f32.mrf.mxu0  ;;  %v919_v37 = vpop.f32.mrf.mxu1 }
  0xff   : > { %v7623_v5 = vadd.f32 %v919_v37, %v595_v31 }
 0x100   : > { %v6135_v18 = vpop.f32.mrf.mxu0  ;;  %v6176_v10 = vpop.f32.mrf.mxu1  ;;  %6440 = vmatmul.mubr.msk.f32.gmra.mxu0 %vm257_vm1, %v7153_v50  ;;  %6475 = vmatmul.mubr.msk.f32.gmra.mxu1 %vm257_vm1, %v7024_v61 }
 0x101   : > { %v7629_v56 = vadd.f32 %v6176_v10, %v6126_v41  ;;  %6442 = vmatprep.mubr.msk.f32.mxu0 %vm257_vm1, %v7155_v52  ;;  %6477 = vmatprep.mubr.msk.f32.mxu1 %vm257_vm1, %v7028_v63 }
 0x102   : > { %v635_v59 = vpop.f32.mrf.mxu0  ;;  %v929_v45 = vpop.f32.mrf.mxu1 }
 0x103   : > { %v7635_v22 = vadd.f32 %v929_v45, %v605_v36  ;;  %v3025_v45 = vld [vmem:[#allocation2 + $0x169] sm:$0xff] }
 0x104   : > { %v6138_v31 = vpop.f32.mrf.mxu0  ;;  %v6179_v12 = vpop.f32.mrf.mxu1  ;;  %6443 = vmatmul.mubr.msk.f32.gmra.mxu0 %vm257_vm1, %v7171_v55  ;;  %6478 = vmatmul.mubr.msk.f32.gmra.mxu1 %vm257_vm1, %v7040_v2 }
 0x105   : > { %v7641_v61 = vadd.f32 %v6179_v12, %v6129_v43  ;;  %6445 = vmatprep.mubr.msk.f32.mxu0 %vm257_vm1, %v7177_v15  ;;  %6480 = vmatprep.mubr.msk.f32.mxu1 %vm257_vm1, %v7044_v4 }
 0x106   : > { %v7647_v63 = vpop.f32.mrf.mxu0  ;;  %v939_v50 = vpop.f32.mrf.mxu1 }
 0x107   : > { %v7649_v52 = vadd.f32 %v939_v50, %v615_v40 }
 0x108   : > { %v6141_v41 = vpop.f32.mrf.mxu0  ;;  %v6182_v36 = vpop.f32.mrf.mxu1  ;;  %6446 = vmatmul.mubr.msk.f32.gmra.mxu0 %vm257_vm1, %v7191_v7  ;;  %6481 = vmatmul.mubr.msk.f32.gmra.mxu1 %vm257_vm1, %v7056_v6 }
 0x109   : > { %v7655_v2 = vadd.f32 %v6182_v36, %v6132_v24  ;;  %6448 = vmatprep.mubr.msk.f32.mxu0 %vm257_vm1, %v7195_v51  ;;  %6483 = vmatprep.mubr.msk.f32.mxu1 %vm257_vm1, %v7060_v9 }
 0x10a   : > { %v7661_v4 = vpop.f32.mrf.mxu0  ;;  %v949_v55 = vpop.f32.mrf.mxu1 }
 0x10b   : > { %v7663_v15 = vadd.f32 %v949_v55, %v625_v49  ;;  %v3023_v49 = vld [vmem:[#allocation2 + $0x151] sm:$0xff] }
 0x10c   : > { %v6144_v43 = vpop.f32.mrf.mxu0  ;;  %v6185_v0 = vpop.f32.mrf.mxu1  ;;  %6449 = vmatmul.mubr.msk.f32.gmra.mxu0 %vm257_vm1, %v7207_v35  ;;  %6484 = vmatmul.mubr.msk.f32.gmra.mxu1 %vm257_vm1, %v7072_v11 }
 0x10d   : > { %v7669_v6 = vadd.f32 %v6185_v0, %v6135_v18  ;;  %6451 = vmatprep.mubr.msk.f32.mxu0 %vm257_vm1, %v7211_v30  ;;  %6486 = vmatprep.mubr.msk.f32.mxu1 %vm257_vm1, %v7076_v13  ;;  %v2639_v13 = vld [vmem:[#allocation2 + $0x198] sm:$0xff] }
 0x10e   : > { %v7675_v9 = vpop.f32.mrf.mxu0  ;;  %v959_v7 = vpop.f32.mrf.mxu1  ;;  %v3029_v0 = vld [vmem:[#allocation2 + $0x199] sm:$0xff] }
 0x10f   : > { %v7677_v51 = vadd.f32 %v959_v7, %v635_v59 }
 0x110   : > { %v6147_v26 = vpop.f32.mrf.mxu0  ;;  %v6188_v40 = vpop.f32.mrf.mxu1  ;;  %6452 = vmatmul.mubr.msk.f32.gmra.mxu0 %vm257_vm1, %v7223_v39  ;;  %6487 = vmatmul.mubr.msk.f32.gmra.mxu1 %vm257_vm1, %v8699_v19 }
 0x111   : > { %v7683_v35 = vadd.f32 %v6188_v40, %v6138_v31  ;;  %6454 = vmatprep.mubr.msk.f32.mxu0 %vm257_vm1, %v7409_v27  ;;  %6489 = vmatprep.mubr.msk.f32.mxu1 %vm257_vm1, %v8700_v53  ;;  %v2640_v27 = vld [vmem:[#allocation2 + $0x1a0] sm:$0xff] }
 0x112   : > { %v7689_v30 = vpop.f32.mrf.mxu0  ;;  %v7691_v11 = vpop.f32.mrf.mxu1 }
 0x114   : > { %v6150_v57 = vpop.f32.mrf.mxu0  ;;  %v6191_v24 = vpop.f32.mrf.mxu1  ;;  %6455 = vmatmul.mubr.msk.f32.gmra.mxu0 %vm257_vm1, %v7419_v29  ;;  %6490 = vmatmul.mubr.msk.f32.gmra.mxu1 %vm257_vm1, %v8701_v54 }
 0x115   : > { %v7697_v39 = vadd.f32 %v6191_v24, %v6141_v41  ;;  %6457 = vmatprep.mubr.msk.f32.mxu0 %vm257_vm1, %v2639_v13  ;;  %6492 = vmatprep.mubr.msk.f32.mxu1 %vm257_vm1, %v8702_v58  ;;  %v8733_v13 = vld [vmem:[#allocation35_spill] sm:$0xff] }
 0x116   : > { %v7702_v19 = vpop.f32.mrf.mxu0  ;;  %v7704_v53 = vpop.f32.mrf.mxu1 }
 0x118   : > { %v6153_v14 = vpop.f32.mrf.mxu0  ;;  %v6194_v3 = vpop.f32.mrf.mxu1  ;;  %6458 = vmatmul.mubr.msk.f32.gmra.mxu0 %vm257_vm1, %v2640_v27  ;;  %6493 = vmatmul.mubr.msk.f32.gmra.mxu1 %vm257_vm1, %v8703_v25 }
 0x119   : > { %v7709_v29 = vadd.f32 %v6194_v3, %v6144_v43  ;;  %6495 = vmatprep.mubr.msk.f32.mxu1 %vm257_vm1, %v8704_v23  ;;  %6512 = vmatprep.mubr.msk.f32.mxu0 %vm257_vm1, %v7179_v16  ;;  %v3024_v16 = vld [vmem:[#allocation2 + $0x159] sm:$0xff] }
 0x11a   : > { %v7715_v54 = vpop.f32.mrf.mxu0  ;;  %v7717_v58 = vpop.f32.mrf.mxu1 }
 0x11c   : > { %v6197_v37 = vpop.f32.mrf.mxu1  ;;  %v6214_v18 = vpop.f32.mrf.mxu0  ;;  %6496 = vmatmul.mubr.msk.f32.gmra.mxu1 %vm257_vm1, %v8705_v21  ;;  %6513 = vmatmul.mubr.msk.f32.vlgmr.msra.gmra.mxu0 %vm257_vm1, %v7193_v48 }
 0x11d   : > { %v7723_v25 = vadd.f32 %v6197_v37, %v6147_v26  ;;  %v1407_v23 = vadd.f32 %v6214_v18, %v7581_v20  ;;  %6498 = vmatprep.mubr.msk.f32.mxu1 %vm257_vm1, %v3023_v49  ;;  %6515 = vmatprep.mubr.msk.f32.mxu0 %vm257_vm1, %v7197_v1  ;;  %v3026_v1 = vld [vmem:[#allocation2 + $0x171] sm:$0xff]  ;;  %v8737_v49 = vld [vmem:[#allocation37_spill] sm:$0xff] }
 0x11e   : > { %v7729_v10 = vpop.f32.mrf.mxu1  ;;  %v1247_v59 = vpop.f32.mrf.mxu0 }
 0x11f   : > { %v7732_v31 = vadd.f32 %v1247_v59, %v7587_v60 }
 0x120   : > { %v6200_v21 = vpop.f32.mrf.mxu1  ;;  %v6217_v12 = vpop.f32.mrf.mxu0  ;;  %6499 = vmatmul.mubr.msk.f32.gmra.mxu1 %vm257_vm1, %v3024_v16  ;;  %6516 = vmatmul.mubr.msk.f32.gmra.mxu0 %vm257_vm1, %v7209_v32 }
 0x121   : > { %v7737_v48 = vadd.f32 %v6200_v21, %v6150_v57  ;;  %v1409_v20 = vadd.f32 %v6217_v12, %v7593_v34  ;;  %6501 = vmatprep.mubr.msk.f32.mxu1 %vm257_vm1, %v3025_v45  ;;  %6518 = vmatprep.mubr.msk.f32.mxu0 %vm257_vm1, %v7213_v28  ;;  %v8731_v28 = vld [vmem:[#allocation33_spill] sm:$0xff]  ;;  %v8739_v45 = vld [vmem:[#allocation38_spill] sm:$0xff]  ;;  %v8740_v12 = vld [vmem:[#allocation39_spill] sm:$0xff] }
 0x122   : > { %v7743_v50 = vpop.f32.mrf.mxu1  ;;  %v1257_v60 = vpop.f32.mrf.mxu0 }
 0x123   : > { %v7746_v41 = vadd.f32 %v1257_v60, %v7599_v44 }
 0x124   : > { %v6203_v36 = vpop.f32.mrf.mxu1  ;;  %v6220_v55 = vpop.f32.mrf.mxu0  ;;  %6502 = vmatmul.mubr.msk.f32.gmra.mxu1 %vm257_vm1, %v3026_v1  ;;  %6519 = vmatmul.mubr.msk.f32.gmra.mxu0 %vm257_vm1, %v7225_v33  ;;  %v8732_v33 = vld [vmem:[#allocation34_spill] sm:$0xff] }
 0x125   : > { %8730 = vst [vmem:[#allocation28_spill] sm:$0xff] %v7746_v41  ;;  %v7751_v32 = vadd.f32 %v6203_v36, %v6153_v14  ;;  %v1411_v34 = vadd.f32 %v6220_v55, %v7605_v38  ;;  %6504 = vmatprep.mubr.msk.f32.mxu1 %vm257_vm1, %v7503_v47  ;;  %6521 = vmatprep.mubr.msk.f32.mxu0 %vm257_vm1, %v8731_v28  ;;  %v8741_v55 = vld [vmem:[#allocation40_spill] sm:$0xff] }
 0x126   : > { %v7758_v43 = vpop.f32.mrf.mxu1  ;;  %v1267_v44 = vpop.f32.mrf.mxu0 }
 0x127   : > { %v7761_v7 = vadd.f32 %v1267_v44, %v7611_v62  ;;  %v3030_v62 = vld [vmem:[#allocation2 + $0x1a1] sm:$0xff] }
 0x128   : > { %v6206_v26 = vpop.f32.mrf.mxu1  ;;  %v6223_v40 = vpop.f32.mrf.mxu0  ;;  %6505 = vmatmul.mubr.msk.f32.gmra.mxu1 %vm257_vm1, %v7513_v17  ;;  %6522 = vmatmul.mubr.msk.f32.gmra.mxu0 %vm257_vm1, %v8732_v33  ;;  %v8744_v33 = vld [vmem:[#allocation42_spill] sm:$0xff] }
 0x129   : > { %v7768_v47 = vadd.f32 %v6206_v26, %v7551_v42  ;;  %v1413_v38 = vadd.f32 %v6223_v40, %v7617_v46  ;;  %6507 = vmatprep.mubr.msk.f32.mxu1 %vm257_vm1, %v3029_v0  ;;  %6524 = vmatprep.mubr.msk.f32.mxu0 %vm257_vm1, %v8733_v13  ;;  %v8736_v42 = vld [vmem:[#allocation36_spill] sm:$0xff] }
 0x12a   : > { %v7774_v57 = vpop.f32.mrf.mxu1  ;;  %v1277_v24 = vpop.f32.mrf.mxu0 }
 0x12b   : > { %8734 = vst [vmem:[#allocation30_spill] sm:$0xff] %v7774_v57  ;;  %v7777_v27 = vadd.f32 %v1277_v24, %v7623_v5 }
 0x12c   : > { %v6209_v17 = vpop.f32.mrf.mxu1  ;;  %v6226_v14 = vpop.f32.mrf.mxu0  ;;  %6508 = vmatmul.mubr.msk.f32.gmra.mxu1 %vm257_vm1, %v3030_v62  ;;  %6525 = vmatmul.mubr.msk.f32.gmra.mxu0 %vm257_vm1, %v8736_v42 }
 0x12d   : > { %8735 = vst [vmem:[#allocation31_spill] sm:$0xff] %v7777_v27  ;;  %v7783_v46 = vadd.f32 %v6209_v17, %v7565_v8  ;;  %v1415_v3 = vadd.f32 %v6226_v14, %v7629_v56  ;;  %6527 = vmatprep.mubr.msk.f32.mxu0 %vm257_vm1, %v8737_v49  ;;  %v3407_v14 = vld [vmem:[#allocation2 + $0x10a] sm:$0xff] }
 0x12e   : > { %v7788_v37 = vpop.f32.mrf.mxu1  ;;  %v1287_v18 = vpop.f32.mrf.mxu0 }
 0x12f   : > { %8738 = vst [vmem:[#allocation6_spill] sm:$0xff] %v7788_v37  ;;  %v7791_v5 = vadd.f32 %v1287_v18, %v7635_v22 }
 0x130   : > { %v6229_v16 = vpop.f32.mrf.mxu0  ;;  %v6264_v59 = vpop.f32.mrf.mxu1  ;;  %6528 = vmatmul.mubr.msk.f32.gmra.mxu0 %vm257_vm1, %v8739_v45  ;;  %v3409_v45 = vld [vmem:[#allocation2 + $0x122] sm:$0xff] }
 0x131   : > { %v1417_v21 = vadd.f32 %v6229_v16, %v7641_v61  ;;  %v7796_v8 = vadd.f32 %v6264_v59, %v1407_v23  ;;  %6530 = vmatprep.mubr.msk.f32.mxu0 %vm257_vm1, %v8740_v12  ;;  %v8742_v61 = vld [vmem:[#allocation41_spill] sm:$0xff] }
 0x132   : > { %v1297_v56 = vpop.f32.mrf.mxu0  ;;  %v7800_v1 = vpop.f32.mrf.mxu1 }
 0x133   : > { %v7803_v60 = vadd.f32 %v1297_v56, %v7649_v52 }
 0x134   : > { %v6232_v22 = vpop.f32.mrf.mxu0  ;;  %v6267_v36 = vpop.f32.mrf.mxu1  ;;  %6531 = vmatmul.mubr.msk.f32.gmra.mxu0 %vm257_vm1, %v8741_v55  ;;  %v3411_v55 = vld [vmem:[#allocation2 + $0x13a] sm:$0xff] }
 0x135   : > { %v1419_v28 = vadd.f32 %v6232_v22, %v7655_v2  ;;  %v7808_v44 = vadd.f32 %v6267_v36, %v1409_v20  ;;  %6533 = vmatprep.mubr.msk.f32.mxu0 %vm257_vm1, %v8742_v61  ;;  %v8745_v2 = vld [vmem:[#allocation43_spill] sm:$0xff] }
 0x136   : > { %v1307_v23 = vpop.f32.mrf.mxu0  ;;  %v7812_v0 = vpop.f32.mrf.mxu1  ;;  %v3406_v20 = vld [vmem:[#allocation2 + $0xfa] sm:$0xff] }
 0x137   : > { %8743 = vst [vmem:[#allocation7_spill] sm:$0xff] %v7812_v0  ;;  %v7815_v26 = vadd.f32 %v1307_v23, %v7663_v15 }
 0x138   : > { %v6235_v52 = vpop.f32.mrf.mxu0  ;;  %v6270_v40 = vpop.f32.mrf.mxu1  ;;  %6534 = vmatmul.mubr.msk.f32.gmra.mxu0 %vm257_vm1, %v8744_v33 }
 0x139   : > { %v1421_v13 = vadd.f32 %v6235_v52, %v7669_v6  ;;  %v7820_v62 = vadd.f32 %v6270_v40, %v1411_v34  ;;  %6536 = vmatprep.mubr.msk.f32.mxu0 %vm257_vm1, %v8745_v2  ;;  %v3408_v34 = vld [vmem:[#allocation2 + $0x112] sm:$0xff] }
 0x13a   : > { %v1317_v24 = vpop.f32.mrf.mxu0  ;;  %v7824_v17 = vpop.f32.mrf.mxu1  ;;  %v3413_v2 = vld [vmem:[#allocation2 + $0x152] sm:$0xff] }
 0x13b   : > { %v7827_v15 = vadd.f32 %v1317_v24, %v7677_v51 }
 0x13c   : > { %v6238_v42 = vpop.f32.mrf.mxu0  ;;  %v6273_v49 = vpop.f32.mrf.mxu1  ;;  %6537 = vmatmul.mubr.msk.f32.gmra.mxu0 %vm257_vm1, %v3406_v20 }
 0x13d   : > { %v1423_v18 = vadd.f32 %v6238_v42, %v7683_v35  ;;  %v7831_v6 = vadd.f32 %v6273_v49, %v1413_v38  ;;  %6539 = vmatprep.mubr.msk.f32.mxu0 %vm257_vm1, %v3407_v14  ;;  %v3410_v35 = vld [vmem:[#allocation2 + $0x12a] sm:$0xff] }
 0x13e   : > { %v7834_v16 = vpop.f32.mrf.mxu0  ;;  %v7836_v59 = vpop.f32.mrf.mxu1 }
 0x13f   : > { %8746 = vst [vmem:[#allocation8_spill] sm:$0xff] %v7836_v59 }
 0x140   : > { %v6241_v12 = vpop.f32.mrf.mxu0  ;;  %v6276_v56 = vpop.f32.mrf.mxu1  ;;  %6540 = vmatmul.mubr.msk.f32.gmra.mxu0 %vm257_vm1, %v3408_v34  ;;  %v3415_v34 = vld [vmem:[#allocation2 + $0x16a] sm:$0xff] }
 0x141   : > { %v1425_v51 = vadd.f32 %v6241_v12, %v7697_v39  ;;  %v7840_v22 = vadd.f32 %v6276_v56, %v1415_v3  ;;  %6542 = vmatprep.mubr.msk.f32.mxu0 %vm257_vm1, %v3409_v45  ;;  %v3412_v39 = vld [vmem:[#allocation2 + $0x142] sm:$0xff] }
 0x142   : > { %v7843_v38 = vpop.f32.mrf.mxu0  ;;  %v7845_v36 = vpop.f32.mrf.mxu1 }
 0x144   : > { %v6244_v61 = vpop.f32.mrf.mxu0  ;;  %v6279_v23 = vpop.f32.mrf.mxu1  ;;  %6543 = vmatmul.mubr.msk.f32.gmra.mxu0 %vm257_vm1, %v3410_v35 }
 0x145   : > { %v1427_v52 = vadd.f32 %v6244_v61, %v7709_v29  ;;  %v7849_v40 = vadd.f32 %v6279_v23, %v1417_v21  ;;  %6545 = vmatprep.mubr.msk.f32.mxu0 %vm257_vm1, %v3411_v55  ;;  %v3414_v29 = vld [vmem:[#allocation2 + $0x15a] sm:$0xff] }
 0x146   : > { %v7852_v3 = vpop.f32.mrf.mxu0  ;;  %v7854_v33 = vpop.f32.mrf.mxu1 }
 0x148   : > { %v6247_v20 = vpop.f32.mrf.mxu0  ;;  %v6282_v24 = vpop.f32.mrf.mxu1  ;;  %6546 = vmatmul.mubr.msk.f32.gmra.mxu0 %vm257_vm1, %v3412_v39 }
 0x149   : > { %v1429_v14 = vadd.f32 %v6247_v20, %v7723_v25  ;;  %v7858_v42 = vadd.f32 %v6282_v24, %v1419_v28  ;;  %6548 = vmatprep.mubr.msk.f32.mxu0 %vm257_vm1, %v3413_v2  ;;  %v3416_v25 = vld [vmem:[#allocation2 + $0x172] sm:$0xff]  ;;  %v8747_v20 = vld [vmem:[#allocation21_spill] sm:$0xff]  ;;  %v3419_v24 = vld [vmem:[#allocation2 + $0x19a] sm:$0xff] }
 0x14a   : > { %v7861_v21 = vpop.f32.mrf.mxu0  ;;  %v7863_v49 = vpop.f32.mrf.mxu1 }
 0x14c   : > { %v6250_v45 = vpop.f32.mrf.mxu0  ;;  %v6285_v12 = vpop.f32.mrf.mxu1  ;;  %6549 = vmatmul.mubr.msk.f32.gmra.mxu0 %vm257_vm1, %v3414_v29 }
 0x14d   : > { %v1431_v56 = vadd.f32 %v6250_v45, %v7737_v48  ;;  %v7867_v35 = vadd.f32 %v6285_v12, %v1421_v13  ;;  %6551 = vmatprep.mubr.msk.f32.mxu0 %vm257_vm1, %v3415_v34  ;;  %v8748_v45 = vld [vmem:[#allocation23_spill] sm:$0xff] }
 0x14e   : > { %v7870_v28 = vpop.f32.mrf.mxu0  ;;  %v7872_v55 = vpop.f32.mrf.mxu1 }
 0x150   : > { %v6253_v61 = vpop.f32.mrf.mxu0  ;;  %v6288_v23 = vpop.f32.mrf.mxu1  ;;  %6552 = vmatmul.mubr.msk.f32.gmra.mxu0 %vm257_vm1, %v3416_v25 }
 0x151   : > { %v1433_v39 = vadd.f32 %v6253_v61, %v7751_v32  ;;  %v7876_v2 = vadd.f32 %v6288_v23, %v1423_v18  ;;  %6554 = vmatprep.mubr.msk.f32.mxu0 %vm257_vm1, %v8747_v20  ;;  %v3420_v32 = vld [vmem:[#allocation2 + $0x1a2] sm:$0xff] }
 0x152   : > { %v7880_v48 = vpop.f32.mrf.mxu0  ;;  %v7882_v13 = vpop.f32.mrf.mxu1 }
 0x154   : > { %v6256_v29 = vpop.f32.mrf.mxu0  ;;  %v6291_v34 = vpop.f32.mrf.mxu1  ;;  %6555 = vmatmul.mubr.msk.f32.gmra.mxu0 %vm257_vm1, %v8748_v45 }
 0x155   : > { %v1435_v12 = vadd.f32 %v6256_v29, %v7768_v47  ;;  %v7887_v25 = vadd.f32 %v6291_v34, %v1425_v51  ;;  %6557 = vmatprep.mubr.msk.f32.mxu0 %vm257_vm1, %v3419_v24 }
 0x156   : > { %v7890_v18 = vpop.f32.mrf.mxu0  ;;  %v7892_v61 = vpop.f32.mrf.mxu1 }
 0x157   : > { %8749 = vst [vmem:[#allocation9_spill] sm:$0xff] %v7890_v18 }
 0x158   : > { %v6259_v23 = vpop.f32.mrf.mxu0  ;;  %v6294_v20 = vpop.f32.mrf.mxu1  ;;  %6558 = vmatmul.mubr.msk.f32.gmra.mxu0 %vm257_vm1, %v3420_v32 }
 0x159   : > { %v1437_v59 = vadd.f32 %v6259_v23, %v7783_v46  ;;  %v7896_v27 = vadd.f32 %v6294_v20, %v1427_v52  ;;  %v5647_v52 = vld [vmem:[%s8606_s3 + $0x8] sm:$0xff] }
 0x15a   : > { %v7898_v45 = vpop.f32.mrf.mxu0  ;;  %v7900_v47 = vpop.f32.mrf.mxu1  ;;  %6560 = vmatprep.subr.mxu1 %v5647_v52 }
 0x15b   : > { %8750 = vst [vmem:[#allocation10_spill] sm:$0xff] %v7898_v45  ;;  %6561 = vmatpush3.msra.mxu1 %v5647_v52  ;;  %v1804_v45 = vadd.f32 %v7845_v36, %v7791_v5 }
 0x15c   : > { %v6297_v51 = vpop.f32.mrf.mxu1  ;;  %v6314_v29 = vpop.f32.mrf.mxu0 }
 0x15d   : > { %v7902_v24 = vadd.f32 %v6297_v51, %v1429_v14  ;;  %v2187_v34 = vadd.f32 %v6314_v29, %v7796_v8 }
 0x15e   : > { %v7905_v0 = vpop.f32.mrf.mxu1  ;;  %v2027_v41 = vpop.f32.mrf.mxu0 }
 0x160   : > { %v6300_v37 = vpop.f32.mrf.mxu1  ;;  %v6317_v18 = vpop.f32.mrf.mxu0 }
 0x161   : > { %v7907_v32 = vadd.f32 %v6300_v37, %v1431_v56  ;;  %v7910_v46 = vadd.f32 %v6317_v18, %v7808_v44  ;;  %v8755_v18 = vmov 0.0  }
 0x162   : > { %v7915_v23 = vpop.f32.mrf.mxu1  ;;  %v7917_v14 = vpop.f32.mrf.mxu0  ;;  %3890 = vst.msk [vmem:[#allocation4] sm:$0xff] %vm3834_vm4, %v8755_v18  ;;  %3894 = vst.msk [vmem:[#allocation4 + $0x90] sm:$0xff] %vm3834_vm4, %v8755_v18 }
 0x163   : > { %8751 = vst [vmem:[#allocation11_spill] sm:$0xff] %v7910_v46  ;;  %8752 = vst [vmem:[#allocation12_spill] sm:$0xff] %v7917_v14 }
 0x164   : > { %v6303_v8 = vpop.f32.mrf.mxu1  ;;  %v6320_v20 = vpop.f32.mrf.mxu0  ;;  %3892 = vst.msk [vmem:[#allocation4 + $0x8] sm:$0x3] %vm3891_vm5, %v8755_v18  ;;  %3895 = vst.msk [vmem:[#allocation4 + $0x98] sm:$0x3] %vm3891_vm5, %v8755_v18 }
 0x165   : > { %v7919_v51 = vadd.f32 %v6303_v8, %v1433_v39  ;;  %v7922_v37 = vadd.f32 %v6320_v20, %v7820_v62  ;;  %3898 = vst.msk [vmem:[#allocation4 + $0x10] sm:$0x1] %vm3897_vm6, %v8755_v18  ;;  %3899 = vst.msk [vmem:[#allocation4 + $0x20] sm:$0x1] %vm3897_vm6, %v8755_v18 }
 0x166   : > { %v7924_v44 = vpop.f32.mrf.mxu1  ;;  %v2047_v56 = vpop.f32.mrf.mxu0  ;;  %3900 = vst.msk [vmem:[#allocation4 + $0x30] sm:$0x1] %vm3897_vm6, %v8755_v18  ;;  %3901 = vst.msk [vmem:[#allocation4 + $0x40] sm:$0x1] %vm3897_vm6, %v8755_v18 }
 0x167   : > { %8753 = vst [vmem:[#allocation13_spill] sm:$0xff] %v7919_v51  ;;  %8754 = vst [vmem:[#allocation14_spill] sm:$0xff] %v7924_v44 }
 0x168   : > { %v6306_v29 = vpop.f32.mrf.mxu1  ;;  %v6323_v46 = vpop.f32.mrf.mxu0  ;;  %3902 = vst.msk [vmem:[#allocation4 + $0x50] sm:$0x1] %vm3897_vm6, %v8755_v18  ;;  %3903 = vst.msk [vmem:[#allocation4 + $0x60] sm:$0x1] %vm3897_vm6, %v8755_v18 }
 0x169   : > { %v7930_v52 = vadd.f32 %v6306_v29, %v1435_v12  ;;  %v7933_v39 = vadd.f32 %v6323_v46, %v7831_v6  ;;  %v1796_v6 = vadd.f32 %v7800_v1, %v7732_v31  ;;  %v1806_v29 = vadd.f32 %v7854_v33, %v7803_v60  ;;  %3904 = vst.msk [vmem:[#allocation4 + $0x70] sm:$0x1] %vm3897_vm6, %v8755_v18 }
 0x16a   : > { %v7935_v8 = vpop.f32.mrf.mxu1  ;;  %v7937_v62 = vpop.f32.mrf.mxu0  ;;  %3905 = vst.msk [vmem:[#allocation4 + $0x80] sm:$0x1] %vm3897_vm6, %v8755_v18  ;;  %3906 = vst.msk [vmem:[#allocation4 + $0x19] sm:$0x1] %vm3897_vm6, %v8755_v18 }
 0x16b   : > { %8756 = vst [vmem:[#allocation15_spill] sm:$0xff] %v7930_v52  ;;  %8757 = vst [vmem:[#allocation16_spill] sm:$0xff] %v7933_v39  ;;  %v2186_v52 = vadd.f32 %v2027_v41, %v1796_v6 }
 0x16c   : > { %8758 = vst [vmem:[#allocation17_spill] sm:$0xff] %v7937_v62  ;;  %v6309_v20 = vpop.f32.mrf.mxu1  ;;  %v6326_v14 = vpop.f32.mrf.mxu0  ;;  %3907 = vst.msk [vmem:[#allocation4 + $0x29] sm:$0x1] %vm3897_vm6, %v8755_v18 }
 0x16d   : > { %v7941_v51 = vadd.f32 %v6309_v20, %v1437_v59  ;;  %v7944_v44 = vadd.f32 %v6326_v14, %v7840_v22  ;;  %3908 = vst.msk [vmem:[#allocation4 + $0x39] sm:$0x1] %vm3897_vm6, %v8755_v18  ;;  %3909 = vst.msk [vmem:[#allocation4 + $0x49] sm:$0x1] %vm3897_vm6, %v8755_v18  ;;  %v1800_v14 = vadd.f32 %v7824_v17, %v7761_v7 }
 0x16e   : > { %v7946_v57 = vpop.f32.mrf.mxu1  ;;  %v2067_v12 = vpop.f32.mrf.mxu0  ;;  %3910 = vst.msk [vmem:[#allocation4 + $0x59] sm:$0x1] %vm3897_vm6, %v8755_v18  ;;  %3911 = vst.msk [vmem:[#allocation4 + $0x69] sm:$0x1] %vm3897_vm6, %v8755_v18  ;;  %v1810_v20 = vadd.f32 %v7872_v55, %v7827_v15 }
 0x16f   : > { %v7950_v46 = vadd.f32 %v2067_v12, %v1804_v45  ;;  %3912 = vst.msk [vmem:[#allocation4 + $0x79] sm:$0x1] %vm3897_vm6, %v8755_v18  ;;  %3913 = vst.msk [vmem:[#allocation4 + $0x89] sm:$0x1] %vm3897_vm6, %v8755_v18  ;;  %v2190_v12 = vadd.f32 %v2047_v56, %v1800_v14  ;;  %v990_v14 = vadd.f32 %v7717_v58, %v7675_v9 }
 0x170   : > { %v6329_v39 = vpop.f32.mrf.mxu0  ;;  %v6364_v62 = vpop.f32.mrf.mxu1 }
 0x171   : > { %v7955_v5 = vadd.f32 %v6329_v39, %v7849_v40  ;;  %v7957_v59 = vadd.f32 %v6364_v62, %v2187_v34  ;;  %v1808_v40 = vadd.f32 %v7863_v49, %v7815_v26  ;;  %v970_v39 = vadd.f32 %v7691_v11, %v7647_v63  ;;  %v3931_v49 = vld [vmem:[#allocation4 + $0x1] sm:$0xff] }
 0x172   : > { %v2077_v22 = vpop.f32.mrf.mxu0  ;;  %v2417_v36 = vpop.f32.mrf.mxu1  ;;  %6562 = vmatprep.mubr.msk.f32.mxu1 %vm3834_vm4, %v3931_v49 }
 0x173   : > { %v7961_v31 = vadd.f32 %v2077_v22, %v1806_v29  ;;  %v7963_v1 = vadd.f32 %v2417_v36, %v2186_v52  ;;  %v1422_v7 = vadd.f32 %v7834_v16, %v970_v39  ;;  %v1426_v39 = vadd.f32 %v7852_v3, %v990_v14 }
 0x174   : > { %v6332_v41 = vpop.f32.mrf.mxu0  ;;  %v7997_v60 = vpop.f32.mrf.mxu1 }
 0x175   : > { %v2199_v33 = vadd.f32 %v6332_v41, %v7858_v42  ;;  %v1812_v55 = vadd.f32 %v7882_v13, %v1422_v7 }
 0x176   : > { %v2087_v45 = vpop.f32.mrf.mxu0  ;;  %v8002_v34 = vpop.f32.mrf.mxu1 }
 0x177   : > { %v2198_v52 = vadd.f32 %v2087_v45, %v1808_v40  ;;  %v5682_v45 = vld [vmem:[%s8606_s3 + $0x20] sm:$0xff] }
 0x178   : > { %v6335_v62 = vpop.f32.mrf.mxu0  ;;  %v6370_v18 = vpop.f32.mrf.mxu1  ;;  %6616 = vmatprep.subr.mxu0 %v5682_v45 }
 0x179   : > { %v8011_v26 = vadd.f32 %v6335_v62, %v7867_v35  ;;  %v8014_v42 = vadd.f32 %v6370_v18, %v7922_v37  ;;  %v980_v35 = vadd.f32 %v7704_v53, %v7661_v4  ;;  %6617 = vmatpush3.msra.mxu0 %v5682_v45  ;;  %v8762_v45 = vld [vmem:[#allocation30_spill] sm:$0xff] }
 0x17a   : > { %v2097_v6 = vpop.f32.mrf.mxu0  ;;  %v2437_v29 = vpop.f32.mrf.mxu1 }
 0x17b   : > { %v8018_v63 = vadd.f32 %v2097_v6, %v1810_v20  ;;  %v8020_v11 = vadd.f32 %v2437_v29, %v2190_v12  ;;  %v1424_v36 = vadd.f32 %v7843_v38, %v980_v35 }
 0x17c   : > { %v6338_v17 = vpop.f32.mrf.mxu0  ;;  %v8022_v15 = vpop.f32.mrf.mxu1 }
 0x17d   : > { %v2203_v37 = vadd.f32 %v6338_v17, %v7876_v2  ;;  %v1814_v4 = vadd.f32 %v7892_v61, %v1424_v36  ;;  %v1816_v61 = vadd.f32 %v7900_v47, %v1426_v39 }
 0x17e   : > { %v2107_v56 = vpop.f32.mrf.mxu0  ;;  %v8028_v22 = vpop.f32.mrf.mxu1 }
 0x17f   : > { %v2202_v16 = vadd.f32 %v2107_v56, %v1812_v55 }
 0x180   : > { %v6341_v41 = vpop.f32.mrf.mxu0  ;;  %v6376_v40 = vpop.f32.mrf.mxu1 }
 0x181   : > { %v8038_v53 = vadd.f32 %v6341_v41, %v7887_v25  ;;  %v8041_v2 = vadd.f32 %v6376_v40, %v7944_v44  ;;  %v1000_v25 = vadd.f32 %v7729_v10, %v7689_v30 }
 0x182   : > { %v2117_v38 = vpop.f32.mrf.mxu0  ;;  %v2457_v13 = vpop.f32.mrf.mxu1 }
 0x183   : > { %v8044_v62 = vadd.f32 %v2117_v38, %v1814_v4  ;;  %v8047_v18 = vadd.f32 %v2457_v13, %v7950_v46  ;;  %v1428_v3 = vadd.f32 %v7861_v21, %v1000_v25  ;;  %v1010_v46 = vadd.f32 %v7743_v50, %v7702_v19  ;;  %v8763_v4 = vld [vmem:[#allocation14_spill] sm:$0xff]  ;;  %v8764_v13 = vld [vmem:[#allocation13_spill] sm:$0xff] }
 0x184   : > { %v6344_v9 = vpop.f32.mrf.mxu0  ;;  %v8049_v58 = vpop.f32.mrf.mxu1  ;;  %v1020_v19 = vadd.f32 %v7758_v43, %v7715_v54 }
 0x185   : > { %v2207_v44 = vadd.f32 %v6344_v9, %v7896_v27  ;;  %v1818_v7 = vadd.f32 %v7905_v0, %v1428_v3  ;;  %v1430_v47 = vadd.f32 %v7870_v28, %v1010_v46  ;;  %v8768_v3 = vld [vmem:[#allocation27_spill] sm:$0xff] }
 0x186   : > { %v2127_v20 = vpop.f32.mrf.mxu0  ;;  %v8055_v12 = vpop.f32.mrf.mxu1  ;;  %v1432_v36 = vadd.f32 %v7880_v48, %v1020_v19 }
 0x187   : > { %v2206_v49 = vadd.f32 %v2127_v20, %v1816_v61  ;;  %v1820_v50 = vadd.f32 %v7915_v23, %v1430_v47  ;;  %v8766_v23 = vld [vmem:[#allocation9_spill] sm:$0xff]  ;;  %v8771_v47 = vld [vmem:[#allocation10_spill] sm:$0xff] }
 0x188   : > { %v6347_v6 = vpop.f32.mrf.mxu0  ;;  %v6382_v29 = vpop.f32.mrf.mxu1  ;;  %v1822_v38 = vadd.f32 %v8763_v4, %v1432_v36 }
 0x189   : > { %v8062_v17 = vadd.f32 %v6347_v6, %v7902_v24  ;;  %v8064_v30 = vadd.f32 %v6382_v29, %v2199_v33  ;;  %v8769_v6 = vld [vmem:[#allocation6_spill] sm:$0xff] }
 0x18a   : > { %v2137_v10 = vpop.f32.mrf.mxu0  ;;  %v2477_v27 = vpop.f32.mrf.mxu1  ;;  %v1040_v29 = vadd.f32 %v8769_v6, %v8768_v3 }
 0x18b   : > { %8759 = vst [vmem:[#allocation18_spill] sm:$0xff] %v8062_v17  ;;  %v8067_v35 = vadd.f32 %v2137_v10, %v1818_v7  ;;  %v8069_v21 = vadd.f32 %v2477_v27, %v2198_v52  ;;  %v8761_v52 = vld [vmem:[#allocation25_spill] sm:$0xff]  ;;  %v8770_v7 = vld [vmem:[#allocation15_spill] sm:$0xff] }
 0x18c   : > { %v6350_v55 = vpop.f32.mrf.mxu0  ;;  %v8071_v56 = vpop.f32.mrf.mxu1  ;;  %v1030_v14 = vadd.f32 %v8762_v45, %v8761_v52 }
 0x18d   : > { %8760 = vst [vmem:[#allocation19_spill] sm:$0xff] %v8067_v35  ;;  %v2211_v0 = vadd.f32 %v6350_v55, %v7907_v32  ;;  %v1436_v55 = vadd.f32 %v8771_v47, %v1040_v29 }
 0x18e   : > { %v2147_v24 = vpop.f32.mrf.mxu0  ;;  %v8077_v33 = vpop.f32.mrf.mxu1  ;;  %v1434_v9 = vadd.f32 %v8766_v23, %v1030_v14 }
 0x18f   : > { %v2210_v28 = vadd.f32 %v2147_v24, %v1820_v50 }
 0x190   : > { %v6353_v41 = vpop.f32.mrf.mxu0  ;;  %v6388_v40 = vpop.f32.mrf.mxu1  ;;  %v1824_v46 = vadd.f32 %v7935_v8, %v1434_v9 }
 0x191   : > { %v8084_v39 = vadd.f32 %v6353_v41, %v8764_v13  ;;  %v8086_v54 = vadd.f32 %v6388_v40, %v2203_v37 }
 0x192   : > { %v2157_v43 = vpop.f32.mrf.mxu0  ;;  %v2497_v32 = vpop.f32.mrf.mxu1 }
 0x193   : > { %8765 = vst [vmem:[#allocation20_spill] sm:$0xff] %v8084_v39  ;;  %v8089_v25 = vadd.f32 %v2157_v43, %v1822_v38  ;;  %v8091_v48 = vadd.f32 %v2497_v32, %v2202_v16  ;;  %v1826_v16 = vadd.f32 %v7946_v57, %v1436_v55  ;;  %v8143_v55 = vld [vmem:[%s8606_s3] sm:$0xff] }
 0x194   : > { %v6356_v61 = vpop.f32.mrf.mxu0  ;;  %v8093_v20 = vpop.f32.mrf.mxu1  ;;  %8778 = vst [vmem:[#allocation35_spill] sm:$0xff] %v8143_v55  ;;  %6574 = vmatprep.subr.mxu1 %v8143_v55 }
 0x195   : > { %8767 = vst [vmem:[#allocation22_spill] sm:$0xff] %v8089_v25  ;;  %v2215_v10 = vadd.f32 %v6356_v61, %v8770_v7 }
 0x196   : > { %v2167_v37 = vpop.f32.mrf.mxu0  ;;  %v8099_v27 = vpop.f32.mrf.mxu1 }
 0x197   : > { %v2214_v19 = vadd.f32 %v2167_v37, %v1824_v46 }
 0x198   : > { %v6359_v50 = vpop.f32.mrf.mxu0  ;;  %v6394_v24 = vpop.f32.mrf.mxu1 }
 0x199   : > { %v8104_v36 = vadd.f32 %v6359_v50, %v7941_v51  ;;  %v8106_v41 = vadd.f32 %v6394_v24, %v2207_v44 }
 0x19a   : > { %v2177_v40 = vpop.f32.mrf.mxu0  ;;  %v2517_v52 = vpop.f32.mrf.mxu1 }
 0x19b   : > { %8772 = vst [vmem:[#allocation24_spill] sm:$0xff] %v8104_v36  ;;  %v8108_v8 = vadd.f32 %v2177_v40, %v1826_v16  ;;  %v8110_v45 = vadd.f32 %v2517_v52, %v2206_v49 }
 0x19c   : > { %v8112_v14 = vpop.f32.mrf.mxu1  ;;  %v6414_v4 = vpop.f32.mrf.mxu0 }
 0x19d   : > { %8773 = vst [vmem:[#allocation26_spill] sm:$0xff] %v8108_v8  ;;  %8774 = vst [vmem:[#allocation29_spill] sm:$0xff] %v8112_v14  ;;  %v8115_v38 = vadd.f32 %v6414_v4, %v7957_v59 }
 0x19e   : > { %v8117_v13 = vpop.f32.mrf.mxu1  ;;  %v2808_v57 = vpop.f32.mrf.mxu0 }
 0x19f   : > { %8775 = vst [vmem:[#allocation32_spill] sm:$0xff] %v8117_v13  ;;  %v8120_v51 = vadd.f32 %v2808_v57, %v7963_v1 }
 0x1a0   : > { %v6400_v44 = vpop.f32.mrf.mxu1  ;;  %v8122_v43 = vpop.f32.mrf.mxu0 }
 0x1a1   : > { %v2601_v32 = vadd.f32 %v6400_v44, %v2211_v0 }
 0x1a2   : > { %v2537_v23 = vpop.f32.mrf.mxu1  ;;  %v8124_v9 = vpop.f32.mrf.mxu0 }
 0x1a3   : > { %v2600_v49 = vadd.f32 %v2537_v23, %v2210_v28  ;;  %v8163_v23 = vld [vmem:[%s8606_s3 + $0x30] sm:$0xff] }
 0x1a4   : > { %v8126_v61 = vpop.f32.mrf.mxu1  ;;  %v6420_v3 = vpop.f32.mrf.mxu0  ;;  %8781 = vst [vmem:[#allocation38_spill] sm:$0xff] %v8163_v23  ;;  %6644 = vmatprep.subr.mxu0 %v8163_v23 }
 0x1a5   : > { %8776 = vst [vmem:[#allocation33_spill] sm:$0xff] %v8126_v61  ;;  %v8129_v59 = vadd.f32 %v6420_v3, %v8014_v42 }
 0x1a6   : > { %v8131_v6 = vpop.f32.mrf.mxu1  ;;  %v2828_v29 = vpop.f32.mrf.mxu0 }
 0x1a7   : > { %8777 = vst [vmem:[#allocation34_spill] sm:$0xff] %v8131_v6  ;;  %v8134_v1 = vadd.f32 %v2828_v29, %v8020_v11 }
 0x1a8   : > { %v6406_v46 = vpop.f32.mrf.mxu1  ;;  %v8136_v7 = vpop.f32.mrf.mxu0 }
 0x1a9   : > { %v2605_v0 = vadd.f32 %v6406_v46, %v2215_v10 }
 0x1aa   : > { %v2557_v37 = vpop.f32.mrf.mxu1  ;;  %v8138_v47 = vpop.f32.mrf.mxu0 }
 0x1ab   : > { %v2604_v28 = vadd.f32 %v2557_v37, %v2214_v19 }
 0x1ac   : > { %v8145_v42 = vpop.f32.mrf.mxu1  ;;  %v6426_v50 = vpop.f32.mrf.mxu0 }
 0x1ad   : > { %8779 = vst [vmem:[#allocation36_spill] sm:$0xff] %v8145_v42  ;;  %v8149_v11 = vadd.f32 %v6426_v50, %v8041_v2 }
 0x1ae   : > { %v8151_v24 = vpop.f32.mrf.mxu1  ;;  %v2848_v10 = vpop.f32.mrf.mxu0 }
 0x1af   : > { %8780 = vst [vmem:[#allocation37_spill] sm:$0xff] %v8151_v24  ;;  %v8154_v16 = vadd.f32 %v2848_v10, %v8047_v18 }
 0x1b0   : > { %v8156_v19 = vpop.f32.mrf.mxu0  ;;  %v6464_v40 = vpop.f32.mrf.mxu1 }
 0x1b2   : > { %v8158_v52 = vpop.f32.mrf.mxu0  ;;  %v3198_v4 = vpop.f32.mrf.mxu1 }
 0x1b4   : > { %v6432_v57 = vpop.f32.mrf.mxu0  ;;  %v6467_v44 = vpop.f32.mrf.mxu1 }
 0x1b5   : > { %v8166_v2 = vadd.f32 %v6432_v57, %v8064_v30 }
 0x1b6   : > { %v2868_v18 = vpop.f32.mrf.mxu0  ;;  %v3208_v3 = vpop.f32.mrf.mxu1 }
 0x1b7   : > { %v8170_v29 = vadd.f32 %v2868_v18, %v8069_v21 }
 0x1b8   : > { %v8172_v46 = vpop.f32.mrf.mxu0  ;;  %v8174_v37 = vpop.f32.mrf.mxu1 }
 0x1ba   : > { %v8176_v50 = vpop.f32.mrf.mxu0  ;;  %v8178_v10 = vpop.f32.mrf.mxu1 }
 0x1bc   : > { %v6438_v24 = vpop.f32.mrf.mxu0  ;;  %v8180_v8 = vpop.f32.mrf.mxu1 }
 0x1bd   : > { %v8183_v30 = vadd.f32 %v6438_v24, %v8086_v54 }
 0x1be   : > { %v2888_v57 = vpop.f32.mrf.mxu0  ;;  %v8185_v42 = vpop.f32.mrf.mxu1 }
 0x1bf   : > { %8782 = vst [vmem:[#allocation39_spill] sm:$0xff] %v8183_v30  ;;  %v8188_v21 = vadd.f32 %v2888_v57, %v8091_v48 }
 0x1c0   : > { %v8190_v18 = vpop.f32.mrf.mxu0  ;;  %v8192_v36 = vpop.f32.mrf.mxu1 }
 0x1c1   : > { %8783 = vst [vmem:[#allocation40_spill] sm:$0xff] %v8188_v21  ;;  %8784 = vst [vmem:[#allocation41_spill] sm:$0xff] %v8190_v18 }
 0x1c2   : > { %v8194_v6 = vpop.f32.mrf.mxu0  ;;  %v8196_v25 = vpop.f32.mrf.mxu1 }
 0x1c3   : > { %8785 = vst [vmem:[#allocation42_spill] sm:$0xff] %v8194_v6 }
 0x1c4   : > { %v6444_v61 = vpop.f32.mrf.mxu0  ;;  %v8198_v39 = vpop.f32.mrf.mxu1 }
 0x1c5   : > { %v8201_v54 = vadd.f32 %v6444_v61, %v8106_v41 }
 0x1c6   : > { %v2908_v24 = vpop.f32.mrf.mxu0  ;;  %v8203_v23 = vpop.f32.mrf.mxu1 }
 0x1c7   : > { %8786 = vst [vmem:[#allocation43_spill] sm:$0xff] %v8201_v54  ;;  %v8206_v48 = vadd.f32 %v2908_v24, %v8110_v45 }
 0x1c8   : > { %v8208_v57 = vpop.f32.mrf.mxu0  ;;  %v8210_v13 = vpop.f32.mrf.mxu1 }
 0x1c9   : > { %8787 = vst [vmem:[#allocation21_spill] sm:$0xff] %v8206_v48  ;;  %8788 = vst [vmem:[#allocation23_spill] sm:$0xff] %v8208_v57 }
 0x1ca   : > { %v8212_v35 = vpop.f32.mrf.mxu0  ;;  %v8216_v21 = vpop.f32.mrf.mxu1 }
 0x1cb   : > { %8789 = vst [vmem:[#allocation25_spill] sm:$0xff] %v8212_v35 }
 0x1cc   : > { %v6450_v14 = vpop.f32.mrf.mxu0  ;;  %v8222_v54 = vpop.f32.mrf.mxu1 }
 0x1cd   : > { %v8214_v17 = vadd.f32 %v6450_v14, %v2601_v32  ;;  %v8797_v32 = vld [vmem:[#allocation28_spill] sm:$0xff] }
 0x1ce   : > { %v2928_v6 = vpop.f32.mrf.mxu0  ;;  %v8228_v57 = vpop.f32.mrf.mxu1 }
 0x1cf   : > { %8790 = vst [vmem:[#allocation30_spill] sm:$0xff] %v8214_v17  ;;  %v8218_v41 = vadd.f32 %v2928_v6, %v2600_v49  ;;  %v8798_v17 = vld [vmem:[#allocation7_spill] sm:$0xff] }
 0x1d0   : > { %v8220_v61 = vpop.f32.mrf.mxu0  ;;  %v1798_v49 = vadd.f32 %v8798_v17, %v8797_v32  ;;  %v8236_v6 = vpop.f32.mrf.mxu1  ;;  %v3357_v32 = vadd.f32 %v3198_v4, %v8120_v51 }
 0x1d1   : > { %8791 = vst [vmem:[#allocation14_spill] sm:$0xff] %v8218_v41  ;;  %8792 = vst [vmem:[#allocation13_spill] sm:$0xff] %v8220_v61  ;;  %v8801_v61 = vld [vmem:[#allocation12_spill] sm:$0xff] }
 0x1d2   : > { %v8224_v45 = vpop.f32.mrf.mxu0  ;;  %8799 = vst [vmem:[#allocation10_spill] sm:$0xff] %v8236_v6  ;;  %v2188_v55 = vadd.f32 %v8801_v61, %v1798_v49  ;;  %v8803_v61 = vld [vmem:[#allocation31_spill] sm:$0xff]  ;;  %v8804_v49 = vld [vmem:[#allocation8_spill] sm:$0xff] }
 0x1d3   : > { %8793 = vst [vmem:[#allocation9_spill] sm:$0xff] %v8224_v45  ;;  %v8802_v45 = vld [vmem:[#allocation11_spill] sm:$0xff]  ;;  %v1802_v18 = vadd.f32 %v8804_v49, %v8803_v61  ;;  %v3361_v61 = vadd.f32 %v8178_v10, %v8134_v1 }
 0x1d4   : > { %v6456_v24 = vpop.f32.mrf.mxu0 }
 0x1d5   : > { %v8226_v48 = vadd.f32 %v6456_v24, %v2605_v0  ;;  %v2579_v0 = vadd.f32 %v7997_v60, %v8802_v45  ;;  %v8255_v60 = vld [vmem:[%s8605_s2] ss:$0 sm:$0xff] }
 0x1d6   : > { %v2948_v35 = vpop.f32.mrf.mxu0 }
 0x1d7   : > { %8794 = vst [vmem:[#allocation27_spill] sm:$0xff] %v8226_v48  ;;  %v8230_v30 = vadd.f32 %v2948_v35, %v2604_v28  ;;  %v2578_v48 = vadd.f32 %v8002_v34, %v2188_v55  ;;  %v2970_v35 = vadd.f32 %v8122_v43, %v2579_v0  ;;  %v3358_v28 = vadd.f32 %v6464_v40, %v8115_v38  ;;  %v8805_v40 = vld [vmem:[#allocation17_spill] sm:$0xff]  ;;  %v8806_v0 = vld [vmem:[#allocation16_spill] sm:$0xff] }
 0x1d8   : > { %v8232_v14 = vpop.f32.mrf.mxu0  ;;  %v2192_v45 = vadd.f32 %v8805_v40, %v1802_v18  ;;  %v2586_v40 = vadd.f32 %v8055_v12, %v7961_v31 }
 0x1d9   : > { %8795 = vst [vmem:[#allocation6_spill] sm:$0xff] %v8230_v30  ;;  %8796 = vst [vmem:[#allocation15_spill] sm:$0xff] %v8232_v14  ;;  %v8246_v30 = vpop.f32.mrf.mxu1  ;;  %v2969_v17 = vadd.f32 %v8124_v9, %v2578_v48  ;;  %v2583_v9 = vadd.f32 %v8022_v15, %v8806_v0  ;;  %v3366_v0 = vadd.f32 %v8192_v36, %v8149_v11 }
 0x1da   : > { %v8238_v41 = vpop.f32.mrf.mxu0 }
 0x1db   : > { %8800 = vst [vmem:[#allocation28_spill] sm:$0xff] %v8238_v41  ;;  %v3360_v41 = vadd.f32 %v6467_v44, %v2970_v35  ;;  %v3359_v43 = vadd.f32 %v3208_v3, %v2969_v17  ;;  %v8260_v51 = vpop.f32.mrf.mxu1  ;;  %v2582_v35 = vadd.f32 %v8028_v22, %v2192_v45 }
 0x1dc   : > { %v6514_v24 = vpop.f32.mrf.mxu0 }
 0x1dd   : > { %v3748_v6 = vadd.f32 %v6514_v24, %v3358_v28  ;;  %v2974_v28 = vadd.f32 %v8136_v7, %v2583_v9  ;;  %v2973_v17 = vadd.f32 %v8138_v47, %v2582_v35  ;;  %v2587_v47 = vadd.f32 %v8049_v58, %v7955_v5 }
 0x1de   : > { %v3588_v14 = vpop.f32.mrf.mxu0 }
 0x1df   : > { %v3747_v38 = vadd.f32 %v3588_v14, %v3357_v32  ;;  %v3787_v44 = vadd.f32 %v8255_v60, %v3748_v6  ;;  %v8271_v32 = vpop.f32.mrf.mxu1  ;;  %v3364_v22 = vadd.f32 %v8180_v8, %v2974_v28 }
 0x1e0   : > { %v6517_v34 = vpop.f32.mrf.mxu0 }
 0x1e1   : > { %v3750_v55 = vadd.f32 %v6517_v34, %v3360_v41  ;;  %v3362_v41 = vadd.f32 %v8174_v37, %v8129_v59  ;;  %v3786_v18 = vadd.f32 %v8255_v60, %v3747_v38  ;;  %v3363_v37 = vadd.f32 %v8185_v42, %v2973_v17  ;;  %v8281_v38 = vpop.f32.mrf.mxu1 }
 0x1e2   : > { %v3598_v4 = vpop.f32.mrf.mxu0  ;;  %v2978_v42 = vadd.f32 %v8156_v19, %v2587_v47 }
 0x1e3   : > { %v3789_v48 = vadd.f32 %v8255_v60, %v3750_v55  ;;  %v3749_v24 = vadd.f32 %v3598_v4, %v3359_v43  ;;  %v2977_v4 = vadd.f32 %v8158_v52, %v2586_v40 }
 0x1e4   : > { %v6520_v3 = vpop.f32.mrf.mxu0  ;;  %v3368_v31 = vadd.f32 %v8198_v39, %v2978_v42 }
 0x1e5   : > { %v3819_v14 = vmax.f32 %v3787_v44, %v3789_v48  ;;  %v3788_v15 = vadd.f32 %v8255_v60, %v3749_v24  ;;  %v3752_v49 = vadd.f32 %v6520_v3, %v3362_v41  ;;  %v8293_v44 = vpop.f32.mrf.mxu1  ;;  %v3365_v24 = vadd.f32 %v8196_v25, %v8154_v16 }
 0x1e6   : > { %v3608_v6 = vpop.f32.mrf.mxu0  ;;  %v3367_v28 = vadd.f32 %v8203_v23, %v2977_v4  ;;  %v2590_v23 = vadd.f32 %v8077_v33, %v8018_v63 }
 0x1e7   : > { %3836 = vst.msk [vmem:[#allocation3 + $0x8] sm:$0xff] %vm3834_vm4, %v3819_v14  ;;  %v3818_v7 = vmax.f32 %v3786_v18, %v3788_v15  ;;  %v3751_v34 = vadd.f32 %v3608_v6, %v3361_v61  ;;  %v3791_v1 = vadd.f32 %v8255_v60, %v3752_v49  ;;  %v2591_v18 = vadd.f32 %v8071_v56, %v8011_v26  ;;  %v8303_v25 = vpop.f32.mrf.mxu1 }
 0x1e8   : > { %v6523_v59 = vpop.f32.mrf.mxu0  ;;  %v3370_v61 = vadd.f32 %v8210_v13, %v8166_v2 }
 0x1e9   : > { %3835 = vst.msk [vmem:[#allocation3] sm:$0xff] %vm3834_vm4, %v3818_v7  ;;  %v3754_v43 = vadd.f32 %v6523_v59, %v3364_v22  ;;  %v3790_v9 = vadd.f32 %v8255_v60, %v3751_v34  ;;  %v2982_v17 = vadd.f32 %v8172_v46, %v2591_v18  ;;  %v2981_v7 = vadd.f32 %v8176_v50, %v2590_v23  ;;  %v8316_v49 = vpop.f32.mrf.mxu1  ;;  %v8814_v23 = vld [vmem:[#allocation29_spill] sm:$0xff] }
 0x1ea   : > { %v3618_v55 = vpop.f32.mrf.mxu0 }
 0x1eb   : > { %v3793_v8 = vadd.f32 %v8255_v60, %v3754_v43  ;;  %v3753_v10 = vadd.f32 %v3618_v55, %v3363_v37  ;;  %v3369_v37 = vadd.f32 %v8216_v21, %v8170_v29  ;;  %v3372_v63 = vadd.f32 %v8222_v54, %v2982_v17  ;;  %v8326_v29 = vpop.f32.mrf.mxu1 }
 0x1ec   : > { %v6526_v45 = vpop.f32.mrf.mxu0  ;;  %v3371_v43 = vadd.f32 %v8228_v57, %v2981_v7  ;;  %v8816_v7 = vld [vmem:[#allocation32_spill] sm:$0xff] }
 0x1ed   : > { %v3821_v5 = vmax.f32 %v3791_v1, %v3793_v8  ;;  %v3792_v58 = vadd.f32 %v8255_v60, %v3753_v10  ;;  %v3756_v19 = vadd.f32 %v6526_v45, %v3366_v0  ;;  %v2595_v1 = vadd.f32 %v8093_v20, %v8038_v53  ;;  %v8331_v8 = vld [vmem:[%s8606_s3 + $0x10] sm:$0xff]  ;;  %v8807_v20 = vld [vmem:[#allocation41_spill] sm:$0xff]  ;;  %v8808_v0 = vld [vmem:[#allocation35_spill] sm:$0xff] }
 0x1ee   : > { %v3628_v48 = vpop.f32.mrf.mxu0  ;;  %v2594_v53 = vadd.f32 %v8099_v27, %v8044_v62  ;;  %v8812_v27 = vld [vmem:[#allocation40_spill] sm:$0xff] }
 0x1ef   : > { %3838 = vst.msk [vmem:[#allocation3 + $0x18] sm:$0xff] %vm3834_vm4, %v3821_v5  ;;  %v3820_v12 = vmax.f32 %v3790_v9, %v3792_v58  ;;  %v3755_v52 = vadd.f32 %v3628_v48, %v3365_v24  ;;  %v3795_v16 = vadd.f32 %v8255_v60, %v3756_v19  ;;  %v2986_v42 = vadd.f32 %v8807_v20, %v2595_v1  ;;  %v8809_v9 = vld [vmem:[#allocation39_spill] sm:$0xff]  ;;  %v8810_v5 = vld [vmem:[#allocation10_spill] sm:$0xff]  ;;  %v8348_v19 = vpop.f32.mrf.mxu1 }
 0x1f0   : > { %v3851_v36 = vld [vmem:[#allocation3] ss:$2 sm:$0xff]  ;;  %v3867_v11 = vld [vmem:[#allocation3 + $0x1] ss:$2 sm:$0xff]  ;;  %v6529_v35 = vpop.f32.mrf.mxu0  ;;  %v3374_v58 = vadd.f32 %v8810_v5, %v8809_v9 }
 0x1f1   : > { %v3882_v3 = vmax.f32 %v3851_v36, %v3867_v11  ;;  %3837 = vst.msk [vmem:[#allocation3 + $0x10] sm:$0xff] %vm3834_vm4, %v3820_v12  ;;  %v3758_v41 = vadd.f32 %v6529_v35, %v3368_v31  ;;  %v3794_v26 = vadd.f32 %v8255_v60, %v3755_v52  ;;  %v8811_v31 = vld [vmem:[#allocation42_spill] sm:$0xff]  ;;  %v3373_v36 = vadd.f32 %v8246_v30, %v8812_v27  ;;  %v6503_v30 = vpop.f32.mrf.mxu1 }
 0x1f2   : > { %v3638_v39 = vpop.f32.mrf.mxu0  ;;  %v2985_v12 = vadd.f32 %v8811_v31, %v2594_v53  ;;  %v3376_v11 = vadd.f32 %v8260_v51, %v2986_v42  ;;  %v8825_v27 = vld [vmem:[#allocation34_spill] sm:$0xff] }
 0x1f3   : > { %3914 = vst.msk [vmem:[#allocation4 + $0x11] sm:$0xff] %vm3834_vm4, %v3882_v3  ;;  %v3797_v14 = vadd.f32 %v8255_v60, %v3758_v41  ;;  %v3757_v15 = vadd.f32 %v3638_v39, %v3367_v28  ;;  %v3328_v1 = vpop.f32.mrf.mxu1 }
 0x1f4   : > { %v6532_v6 = vpop.f32.mrf.mxu0  ;;  %v3375_v18 = vadd.f32 %v8271_v32, %v2985_v12 }
 0x1f5   : > { %v3823_v56 = vmax.f32 %v3795_v16, %v3797_v14  ;;  %v3796_v22 = vadd.f32 %v8255_v60, %v3757_v15  ;;  %v3760_v46 = vadd.f32 %v6532_v6, %v3370_v61  ;;  %v8813_v15 = vld [vmem:[#allocation18_spill] sm:$0xff]  ;;  %v8363_v61 = vld [vmem:[%s8606_s3 + $0x40] sm:$0xff] }
 0x1f6   : > { %v3648_v59 = vpop.f32.mrf.mxu0  ;;  %v2599_v17 = vadd.f32 %v8814_v23, %v8813_v15 }
 0x1f7   : > { %3840 = vst.msk [vmem:[#allocation3 + $0x28] sm:$0xff] %vm3834_vm4, %v3823_v56  ;;  %v3822_v33 = vmax.f32 %v3794_v26, %v3796_v22  ;;  %v3759_v50 = vadd.f32 %v3648_v59, %v3369_v37  ;;  %v3799_v10 = vadd.f32 %v8255_v60, %v3760_v46  ;;  %v8815_v22 = vld [vmem:[#allocation19_spill] sm:$0xff]  ;;  %v8818_v46 = vld [vmem:[#allocation38_spill] sm:$0xff] }
 0x1f8   : > { %v6535_v13 = vpop.f32.mrf.mxu0  ;;  %v3853_v2 = vld [vmem:[#allocation3 + $0x10] ss:$2 sm:$0xff]  ;;  %v3869_v34 = vld [vmem:[#allocation3 + $0x11] ss:$2 sm:$0xff]  ;;  %v2598_v59 = vadd.f32 %v8816_v7, %v8815_v22  ;;  %v8817_v37 = vld [vmem:[#allocation23_spill] sm:$0xff] }
 0x1f9   : > { %3839 = vst.msk [vmem:[#allocation3 + $0x20] sm:$0xff] %vm3834_vm4, %v3822_v33  ;;  %v3762_v47 = vadd.f32 %v6535_v13, %v3372_v63  ;;  %v3883_v55 = vmax.f32 %v3853_v2, %v3869_v34  ;;  %v3798_v4 = vadd.f32 %v8255_v60, %v3759_v50  ;;  %v2990_v63 = vadd.f32 %v8817_v37, %v2599_v17  ;;  %v8819_v13 = vld [vmem:[#allocation43_spill] sm:$0xff]  ;;  %v8829_v17 = vld [vmem:[#allocation14_spill] sm:$0xff] }
 0x1fa   : > { %v3658_v21 = vpop.f32.mrf.mxu0  ;;  %v3932_v54 = vld [vmem:[#allocation4 + $0x11] sm:$0xff]  ;;  %v3378_v2 = vadd.f32 %v8281_v38, %v8819_v13 }
 0x1fb   : > { %v3801_v57 = vadd.f32 %v8255_v60, %v3762_v47  ;;  %v3761_v40 = vadd.f32 %v3658_v21, %v3371_v43  ;;  %6563 = vmatmul.mubr.msk.f32.vlgmr.msra.gmra.mxu1 %vm3834_vm4, %v3932_v54  ;;  %6618 = vmatprep.mubr.msk.f32.mxu0 %vm3834_vm4, %v3932_v54  ;;  %3915 = vst.msk [vmem:[#allocation4 + $0x21] sm:$0xff] %vm3834_vm4, %v3883_v55  ;;  %v8820_v47 = vld [vmem:[#allocation25_spill] sm:$0xff]  ;;  %v8831_v13 = vld [vmem:[#allocation36_spill] sm:$0xff] }
 0x1fc   : > { %v6538_v45 = vpop.f32.mrf.mxu0  ;;  %6575 = vmatpush3.msra.mxu1 %v8808_v0  ;;  %v2989_v55 = vadd.f32 %v8820_v47, %v2598_v59  ;;  %v8821_v54 = vld [vmem:[#allocation21_spill] sm:$0xff] }
 0x1fd   : > { %v3825_v48 = vmax.f32 %v3799_v10, %v3801_v57  ;;  %v3800_v24 = vadd.f32 %v8255_v60, %v3761_v40  ;;  %6588 = vmatprep.subr.mxu1 %v8331_v8  ;;  %v3764_v28 = vadd.f32 %v6538_v45, %v3374_v58  ;;  %v3377_v10 = vadd.f32 %v8293_v44, %v8821_v54  ;;  %v8822_v58 = vld [vmem:[#allocation20_spill] sm:$0xff]  ;;  %v6506_v44 = vpop.f32.mrf.mxu1  ;;  %v8834_v54 = vld [vmem:[#allocation15_spill] sm:$0xff] }
 0x1fe   : > { %v3668_v62 = vpop.f32.mrf.mxu0  ;;  %v3380_v57 = vadd.f32 %v8303_v25, %v2990_v63  ;;  %v3379_v45 = vadd.f32 %v8316_v49, %v2989_v55  ;;  %v8824_v49 = vld [vmem:[#allocation22_spill] sm:$0xff] }
 0x1ff   : > { %3842 = vst.msk [vmem:[#allocation3 + $0x38] sm:$0xff] %vm3834_vm4, %v3825_v48  ;;  %v3824_v35 = vmax.f32 %v3798_v4, %v3800_v24  ;;  %v3763_v16 = vadd.f32 %v3668_v62, %v3373_v36  ;;  %v3803_v32 = vadd.f32 %v8255_v60, %v3764_v28  ;;  %v8823_v4 = vld [vmem:[#allocation33_spill] sm:$0xff]  ;;  %v2602_v36 = vadd.f32 %v8825_v27, %v8824_v49  ;;  %v3338_v15 = vpop.f32.mrf.mxu1  ;;  %v8832_v55 = vld [vmem:[#allocation26_spill] sm:$0xff] }
 0x200   : > { %v3855_v3 = vld [vmem:[#allocation3 + $0x20] ss:$2 sm:$0xff]  ;;  %v3871_v52 = vld [vmem:[#allocation3 + $0x21] ss:$2 sm:$0xff]  ;;  %v6541_v41 = vpop.f32.mrf.mxu0  ;;  %v2603_v48 = vadd.f32 %v8823_v4, %v8822_v58 }
 0x201   : > { %v3884_v39 = vmax.f32 %v3855_v3, %v3871_v52  ;;  %3841 = vst.msk [vmem:[#allocation3 + $0x30] sm:$0xff] %vm3834_vm4, %v3824_v35  ;;  %v3766_v14 = vadd.f32 %v6541_v41, %v3376_v11  ;;  %v3802_v34 = vadd.f32 %v8255_v60, %v3763_v16  ;;  %v8826_v11 = vld [vmem:[#allocation13_spill] sm:$0xff]  ;;  %v8827_v3 = vld [vmem:[#allocation30_spill] sm:$0xff] }
 0x202   : > { %v3678_v6 = vpop.f32.mrf.mxu0  ;;  %v8358_v51 = vld [vmem:[#allocation4 + $0x21] sm:$0xff]  ;;  %v2994_v35 = vadd.f32 %v8826_v11, %v2603_v48  ;;  %v3382_v52 = vadd.f32 %v8326_v29, %v8827_v3  ;;  %v8828_v16 = vld [vmem:[#allocation9_spill] sm:$0xff] }
 0x203   : > { %3916 = vst.msk [vmem:[#allocation4 + $0x31] sm:$0xff] %vm3834_vm4, %v3884_v39  ;;  %v3805_v26 = vadd.f32 %v8255_v60, %v3766_v14  ;;  %v3765_v56 = vadd.f32 %v3678_v6, %v3375_v18  ;;  %6565 = vmatprep.mubr.msk.f32.mxu1 %vm3834_vm4, %v8358_v51  ;;  %6619 = vmatmul.mubr.msk.f32.vlgmr.msra.gmra.mxu0 %vm3834_vm4, %v8358_v51  ;;  %v8837_v58 = vld [vmem:[#allocation6_spill] sm:$0xff] }
 0x204   : > { %v6544_v33 = vpop.f32.mrf.mxu0  ;;  %6645 = vmatpush3.msra.mxu0 %v8818_v46  ;;  %v2993_v14 = vadd.f32 %v8828_v16, %v2602_v36  ;;  %v3381_v6 = vadd.f32 %v8348_v19, %v8829_v17  ;;  %v8830_v46 = vld [vmem:[#allocation24_spill] sm:$0xff]  ;;  %v3385_v4 = vadd.f32 %v3338_v15, %v8837_v58 }
 0x205   : > { %v3827_v43 = vmax.f32 %v3803_v32, %v3805_v26  ;;  %v3804_v50 = vadd.f32 %v8255_v60, %v3765_v56  ;;  %6672 = vmatprep.subr.mxu0 %v8363_v61  ;;  %v3768_v38 = vadd.f32 %v6544_v33, %v3378_v2  ;;  %v3384_v32 = vadd.f32 %v6503_v30, %v2994_v35 }
 0x206   : > { %v3688_v21 = vpop.f32.mrf.mxu0  ;;  %v3383_v59 = vadd.f32 %v3328_v1, %v2993_v14  ;;  %v2607_v2 = vadd.f32 %v8831_v13, %v8830_v46  ;;  %v8833_v1 = vld [vmem:[#allocation37_spill] sm:$0xff]  ;;  %v4199_v13 = vld [vmem:[#allocation4 + $0x2] sm:$0xff] }
 0x207   : > { %3844 = vst.msk [vmem:[#allocation3 + $0x48] sm:$0xff] %vm3834_vm4, %v3827_v43  ;;  %v3826_v40 = vmax.f32 %v3802_v34, %v3804_v50  ;;  %v3767_v0 = vadd.f32 %v3688_v21, %v3377_v10  ;;  %v3807_v31 = vadd.f32 %v8255_v60, %v3768_v38  ;;  %v6509_v34 = vpop.f32.mrf.mxu1  ;;  %v2606_v21 = vadd.f32 %v8833_v1, %v8832_v55 }
 0x208   : > { %v6547_v53 = vpop.f32.mrf.mxu0  ;;  %v3857_v20 = vld [vmem:[#allocation3 + $0x30] ss:$2 sm:$0xff]  ;;  %v3873_v42 = vld [vmem:[#allocation3 + $0x31] ss:$2 sm:$0xff]  ;;  %v2998_v10 = vadd.f32 %v8834_v54, %v2607_v2 }
 0x209   : > { %3843 = vst.msk [vmem:[#allocation3 + $0x40] sm:$0xff] %vm3834_vm4, %v3826_v40  ;;  %v3770_v9 = vadd.f32 %v6547_v53, %v3380_v57  ;;  %v3885_v5 = vmax.f32 %v3857_v20, %v3873_v42  ;;  %v3806_v41 = vadd.f32 %v8255_v60, %v3767_v0  ;;  %v8835_v40 = vld [vmem:[#allocation27_spill] sm:$0xff] }
 0x20a   : > { %v3698_v24 = vpop.f32.mrf.mxu0  ;;  %v8390_v25 = vld [vmem:[#allocation4 + $0x31] sm:$0xff]  ;;  %v3386_v38 = vadd.f32 %v6506_v44, %v8835_v40  ;;  %v3388_v48 = vadd.f32 %v6509_v34, %v2998_v10  ;;  %v5709_v10 = vld [vmem:[%s8606_s3 + $0x38] sm:$0xff] }
 0x20b   : > { %v3809_v12 = vadd.f32 %v8255_v60, %v3770_v9  ;;  %v3769_v62 = vadd.f32 %v3698_v24, %v3379_v45  ;;  %6566 = vmatmul.mubr.msk.f32.gmra.mxu1 %vm3834_vm4, %v8390_v25  ;;  %6621 = vmatprep.mubr.msk.f32.mxu0 %vm3834_vm4, %v8390_v25  ;;  %3917 = vst.msk [vmem:[#allocation4 + $0x41] sm:$0xff] %vm3834_vm4, %v3885_v5  ;;  %v8836_v45 = vld [vmem:[#allocation28_spill] sm:$0xff]  ;;  %v3348_v9 = vpop.f32.mrf.mxu1 }
 0x20c   : > { %v6550_v28 = vpop.f32.mrf.mxu0  ;;  %v2997_v0 = vadd.f32 %v8836_v45, %v2606_v21  ;;  %v4200_v34 = vld [vmem:[#allocation4 + $0x12] sm:$0xff] }
 0x20d   : > { %v3829_v18 = vmax.f32 %v3807_v31, %v3809_v12  ;;  %v3808_v39 = vadd.f32 %v8255_v60, %v3769_v62  ;;  %v3772_v56 = vadd.f32 %v6550_v28, %v3382_v52  ;;  %v5089_v40 = vld [vmem:[#allocation4 + $0x92] sm:$0xff] }
 0x20e   : > { %v3708_v23 = vpop.f32.mrf.mxu0  ;;  %v3387_v44 = vadd.f32 %v3348_v9, %v2997_v0 }
 0x20f   : > { %3846 = vst.msk [vmem:[#allocation3 + $0x58] sm:$0xff] %vm3834_vm4, %v3829_v18  ;;  %v3828_v26 = vmax.f32 %v3806_v41, %v3808_v39  ;;  %v3771_v63 = vadd.f32 %v3708_v23, %v3381_v6  ;;  %v3811_v30 = vadd.f32 %v8255_v60, %v3772_v56  ;;  %v3922_v56 = vld [vmem:[#allocation4] sm:$0xff] }
 0x210   : > { %v3859_v22 = vld [vmem:[#allocation3 + $0x40] ss:$2 sm:$0xff]  ;;  %v3875_v7 = vld [vmem:[#allocation3 + $0x41] ss:$2 sm:$0xff]  ;;  %v6553_v29 = vpop.f32.mrf.mxu0 }
 0x211   : > { %v3886_v37 = vmax.f32 %v3859_v22, %v3875_v7  ;;  %3845 = vst.msk [vmem:[#allocation3 + $0x50] sm:$0xff] %vm3834_vm4, %v3828_v26  ;;  %v3774_v33 = vadd.f32 %v6553_v29, %v3384_v32  ;;  %v3810_v53 = vadd.f32 %v8255_v60, %v3771_v63  ;;  %v3923_v7 = vld [vmem:[#allocation4 + $0x10] sm:$0xff]  ;;  %v5673_v29 = vld [vmem:[%s8606_s3 + $0x18] sm:$0xff] }
 0x212   : > { %v3718_v43 = vpop.f32.mrf.mxu0  ;;  %v8413_v19 = vld [vmem:[#allocation4 + $0x41] sm:$0xff] }
 0x213   : > { %3918 = vst.msk [vmem:[#allocation4 + $0x51] sm:$0xff] %vm3834_vm4, %v3886_v37  ;;  %v3813_v50 = vadd.f32 %v8255_v60, %v3774_v33  ;;  %v3773_v47 = vadd.f32 %v3718_v43, %v3383_v59  ;;  %6568 = vmatprep.mubr.msk.f32.mxu1 %vm3834_vm4, %v8413_v19  ;;  %6622 = vmatmul.mubr.msk.f32.gmra.mxu0 %vm3834_vm4, %v8413_v19  ;;  %v3924_v59 = vld [vmem:[#allocation4 + $0x20] sm:$0xff]  ;;  %v3925_v37 = vld [vmem:[#allocation4 + $0x30] sm:$0xff]  ;;  %v5691_v43 = vld [vmem:[%s8606_s3 + $0x28] sm:$0xff] }
 0x214   : > { %v6556_v57 = vpop.f32.mrf.mxu0  ;;  %v3926_v33 = vld [vmem:[#allocation4 + $0x40] sm:$0xff] }
 0x215   : > { %v3831_v20 = vmax.f32 %v3811_v30, %v3813_v50  ;;  %v3812_v42 = vadd.f32 %v8255_v60, %v3773_v47  ;;  %v3776_v31 = vadd.f32 %v6556_v57, %v3386_v38  ;;  %v4201_v30 = vld [vmem:[#allocation4 + $0x22] sm:$0xff]  ;;  %v4795_v50 = vld [vmem:[#allocation4 + $0x90] sm:$0xff] }
 0x216   : > { %v3728_v5 = vpop.f32.mrf.mxu0  ;;  %v4202_v47 = vld [vmem:[#allocation4 + $0x32] sm:$0xff]  ;;  %v4203_v55 = vld [vmem:[#allocation4 + $0x42] sm:$0xff] }
 0x217   : > { %3848 = vst.msk [vmem:[#allocation3 + $0x68] sm:$0xff] %vm3834_vm4, %v3831_v20  ;;  %v3830_v24 = vmax.f32 %v3810_v53, %v3812_v42  ;;  %v3775_v27 = vadd.f32 %v3728_v5, %v3385_v4  ;;  %v3815_v3 = vadd.f32 %v8255_v60, %v3776_v31  ;;  %v4942_v38 = vld [vmem:[#allocation4 + $0x91] sm:$0xff] }
 0x218   : > { %v6559_v12 = vpop.f32.mrf.mxu0  ;;  %v3861_v62 = vld [vmem:[#allocation3 + $0x50] ss:$2 sm:$0xff]  ;;  %v3877_v49 = vld [vmem:[#allocation3 + $0x51] ss:$2 sm:$0xff] }
 0x219   : > { %3847 = vst.msk [vmem:[#allocation3 + $0x60] sm:$0xff] %vm3834_vm4, %v3830_v24  ;;  %v3778_v36 = vadd.f32 %v6559_v12, %v3388_v48  ;;  %v3887_v11 = vmax.f32 %v3861_v62, %v3877_v49  ;;  %v3814_v18 = vadd.f32 %v8255_v60, %v3775_v27 }
 0x21a   : > { %v3738_v35 = vpop.f32.mrf.mxu0  ;;  %v8432_v28 = vld [vmem:[#allocation4 + $0x51] sm:$0xff] }
 0x21b   : > { %v3817_v52 = vadd.f32 %v8255_v60, %v3778_v36  ;;  %v3777_v41 = vadd.f32 %v3738_v35, %v3387_v44  ;;  %6569 = vmatmul.mubr.msk.f32.gmra.mxu1 %vm3834_vm4, %v8432_v28  ;;  %6624 = vmatprep.mubr.msk.f32.mxu0 %vm3834_vm4, %v8432_v28  ;;  %3919 = vst.msk [vmem:[#allocation4 + $0x61] sm:$0xff] %vm3834_vm4, %v3887_v11  ;;  %v3927_v46 = vld [vmem:[#allocation4 + $0x50] sm:$0xff] }
 0x21c   : > { %v4204_v1 = vld [vmem:[#allocation4 + $0x52] sm:$0xff] }
 0x21d   : > { %v3833_v39 = vmax.f32 %v3815_v3, %v3817_v52  ;;  %v3816_v16 = vadd.f32 %v8255_v60, %v3777_v41 }
 0x21f   : > { %3850 = vst.msk [vmem:[#allocation3 + $0x78] sm:$0xff] %vm3834_vm4, %v3833_v39  ;;  %v3832_v14 = vmax.f32 %v3814_v18, %v3816_v16 }
 0x220   : > { %v3863_v15 = vld [vmem:[#allocation3 + $0x60] ss:$2 sm:$0xff]  ;;  %v3879_v23 = vld [vmem:[#allocation3 + $0x61] ss:$2 sm:$0xff] }
 0x221   : > { %v3888_v17 = vmax.f32 %v3863_v15, %v3879_v23  ;;  %3849 = vst.msk [vmem:[#allocation3 + $0x70] sm:$0xff] %vm3834_vm4, %v3832_v14 }
 0x222   : > { %v8445_v6 = vld [vmem:[#allocation4 + $0x61] sm:$0xff] }
 0x223   : > { %3920 = vst.msk [vmem:[#allocation4 + $0x71] sm:$0xff] %vm3834_vm4, %v3888_v17  ;;  %6571 = vmatprep.mubr.msk.f32.mxu1 %vm3834_vm4, %v8445_v6  ;;  %6625 = vmatmul.mubr.msk.f32.gmra.mxu0 %vm3834_vm4, %v8445_v6  ;;  %v4205_v21 = vld [vmem:[#allocation4 + $0x62] sm:$0xff] }
 0x228   : > { %v3865_v32 = vld [vmem:[#allocation3 + $0x70] ss:$2 sm:$0xff]  ;;  %v3881_v60 = vld [vmem:[#allocation3 + $0x71] ss:$2 sm:$0xff] }
 0x229   : > { %v3889_v26 = vmax.f32 %v3865_v32, %v3881_v60 }
 0x22a   : > { %v8452_v22 = vld [vmem:[#allocation4 + $0x71] sm:$0xff] }
 0x22b   : > { %3921 = vst.msk [vmem:[#allocation4 + $0x81] sm:$0xff] %vm3834_vm4, %v3889_v26  ;;  %6572 = vmatmul.mubr.msk.f32.gmra.mxu1 %vm3834_vm4, %v8452_v22  ;;  %6627 = vmatprep.mubr.msk.f32.mxu0 %vm3834_vm4, %v8452_v22  ;;  %v3929_v2 = vld [vmem:[#allocation4 + $0x70] sm:$0xff] }
 0x22c   : > { %6576 = vmatprep.mubr.msk.f32.mxu1 %vm3834_vm4, %v3922_v56  ;;  %v4206_v54 = vld [vmem:[#allocation4 + $0x72] sm:$0xff] }
 0x22f   : > { %6577 = vmatmul.mubr.msk.f32.vlgmr.msra.gmra.mxu1 %vm3834_vm4, %v3923_v7 }
 0x230   : > { %6589 = vmatpush3.msra.mxu1 %v8331_v8  ;;  %6579 = vmatprep.mubr.msk.f32.mxu1 %vm3834_vm4, %v3924_v59  ;;  %v3928_v8 = vld [vmem:[#allocation4 + $0x60] sm:$0xff] }
 0x231   : > { %6602 = vmatprep.subr.mxu1 %v5673_v29 }
 0x232   : > { %v8466_v63 = vld [vmem:[#allocation4 + $0x81] sm:$0xff] }
 0x233   : > { %6580 = vmatmul.mubr.msk.f32.gmra.mxu1 %vm3834_vm4, %v3925_v37  ;;  %6628 = vmatmul.mubr.msk.f32.gmra.mxu0 %vm3834_vm4, %v8466_v63  ;;  %v5088_v57 = vld [vmem:[#allocation4 + $0x82] sm:$0xff] }
 0x234   : > { %6582 = vmatprep.mubr.msk.f32.mxu1 %vm3834_vm4, %v3926_v33  ;;  %6646 = vmatprep.mubr.msk.f32.mxu0 %vm3834_vm4, %v3924_v59 }
 0x237   : > { %6583 = vmatmul.mubr.msk.f32.gmra.mxu1 %vm3834_vm4, %v3927_v46  ;;  %6647 = vmatmul.mubr.msk.f32.vlgmr.msra.gmra.mxu0 %vm3834_vm4, %v3925_v37 }
 0x238   : > { %6585 = vmatprep.mubr.msk.f32.mxu1 %vm3834_vm4, %v3928_v8  ;;  %6649 = vmatprep.mubr.msk.f32.mxu0 %vm3834_vm4, %v3926_v33 }
 0x239   : > { %6673 = vmatpush3.msra.mxu0 %v8363_v61  ;;  %v4794_v61 = vld [vmem:[#allocation4 + $0x80] sm:$0xff] }
 0x23b   : > { %6586 = vmatmul.mubr.msk.f32.gmra.mxu1 %vm3834_vm4, %v3929_v2  ;;  %6650 = vmatmul.mubr.msk.f32.gmra.mxu0 %vm3834_vm4, %v3927_v46 }
 0x23c   : > { %6652 = vmatprep.mubr.msk.f32.mxu0 %vm3834_vm4, %v3928_v8  ;;  %6590 = vmatprep.mubr.msk.f32.mxu1 %vm3834_vm4, %v4199_v13 }
 0x23f   : > { %6591 = vmatmul.mubr.msk.f32.vlgmr.msra.gmra.mxu1 %vm3834_vm4, %v4200_v34  ;;  %6653 = vmatmul.mubr.msk.f32.gmra.mxu0 %vm3834_vm4, %v3929_v2 }
 0x240   : > { %6603 = vmatpush3.msra.mxu1 %v5673_v29  ;;  %6593 = vmatprep.mubr.msk.f32.mxu1 %vm3834_vm4, %v4201_v30 }
 0x241   : > { %6655 = vmatprep.mubr.msk.f32.mxu0 %vm3834_vm4, %v4794_v61  ;;  %6630 = vmatprep.subr.mxu1 %v5691_v43 }
 0x243   : > { %6594 = vmatmul.mubr.msk.f32.gmra.mxu1 %vm3834_vm4, %v4202_v47  ;;  %6656 = vmatmul.mubr.msk.f32.gmra.mxu0 %vm3834_vm4, %v4795_v50 }
 0x244   : > { %6596 = vmatprep.mubr.msk.f32.mxu1 %vm3834_vm4, %v4203_v55  ;;  %6674 = vmatprep.mubr.msk.f32.mxu0 %vm3834_vm4, %v4201_v30 }
 0x247   : > { %6597 = vmatmul.mubr.msk.f32.gmra.mxu1 %vm3834_vm4, %v4204_v1  ;;  %6675 = vmatmul.mubr.msk.f32.vlgmr.msra.gmra.mxu0 %vm3834_vm4, %v4202_v47 }
 0x248   : > { %6599 = vmatprep.mubr.msk.f32.mxu1 %vm3834_vm4, %v4205_v21  ;;  %6677 = vmatprep.mubr.msk.f32.mxu0 %vm3834_vm4, %v4203_v55 }
 0x24b   : > { %6600 = vmatmul.mubr.msk.f32.gmra.mxu1 %vm3834_vm4, %v4206_v54  ;;  %6678 = vmatmul.mubr.msk.f32.gmra.mxu0 %vm3834_vm4, %v4204_v1 }
 0x24c   : > { %6604 = vmatprep.mubr.msk.f32.mxu1 %vm3834_vm4, %v3923_v7  ;;  %6680 = vmatprep.mubr.msk.f32.mxu0 %vm3834_vm4, %v4205_v21 }
 0x24f   : > { %6605 = vmatmul.mubr.msk.f32.vlgmr.msra.gmra.mxu1 %vm3834_vm4, %v3924_v59  ;;  %6681 = vmatmul.mubr.msk.f32.gmra.mxu0 %vm3834_vm4, %v4206_v54 }
 0x250   : > { %6631 = vmatpush3.msra.mxu1 %v5691_v43  ;;  %6607 = vmatprep.mubr.msk.f32.mxu1 %vm3834_vm4, %v3925_v37 }
 0x251   : > { %6683 = vmatprep.mubr.msk.f32.mxu0 %vm3834_vm4, %v5088_v57  ;;  %6658 = vmatprep.subr.mxu1 %v5709_v10 }
 0x253   : > { %6608 = vmatmul.mubr.msk.f32.gmra.mxu1 %vm3834_vm4, %v3926_v33  ;;  %6684 = vmatmul.mubr.msk.f32.gmra.mxu0 %vm3834_vm4, %v5089_v40 }
 0x254   : > { %6610 = vmatprep.mubr.msk.f32.mxu1 %vm3834_vm4, %v3927_v46 }
 0x257   : > { %6611 = vmatmul.mubr.msk.f32.gmra.mxu1 %vm3834_vm4, %v3928_v8 }
 0x258   : > { %6613 = vmatprep.mubr.msk.f32.mxu1 %vm3834_vm4, %v3929_v2 }
 0x25b   : > { %6614 = vmatmul.mubr.msk.f32.gmra.mxu1 %vm3834_vm4, %v4794_v61 }
 0x25c   : > { %6632 = vmatprep.mubr.msk.f32.mxu1 %vm3834_vm4, %v4200_v34 }
 0x25f   : > { %6633 = vmatmul.mubr.msk.f32.vlgmr.msra.gmra.mxu1 %vm3834_vm4, %v4201_v30 }
 0x260   : > { %6659 = vmatpush3.msra.mxu1 %v5709_v10  ;;  %6635 = vmatprep.mubr.msk.f32.mxu1 %vm3834_vm4, %v4202_v47 }
 0x263   : > { %6636 = vmatmul.mubr.msk.f32.gmra.mxu1 %vm3834_vm4, %v4203_v55 }
 0x264   : > { %6638 = vmatprep.mubr.msk.f32.mxu1 %vm3834_vm4, %v4204_v1 }
 0x267   : > { %6639 = vmatmul.mubr.msk.f32.gmra.mxu1 %vm3834_vm4, %v4205_v21 }
 0x268   : > { %6641 = vmatprep.mubr.msk.f32.mxu1 %vm3834_vm4, %v4206_v54 }
 0x26b   : > { %6642 = vmatmul.mubr.msk.f32.gmra.mxu1 %vm3834_vm4, %v5088_v57 }
 0x26c   : > { %6660 = vmatprep.mubr.msk.f32.mxu1 %vm3834_vm4, %v8358_v51 }
 0x26f   : > { %6661 = vmatmul.mubr.msk.f32.vlgmr.msra.gmra.mxu1 %vm3834_vm4, %v8390_v25 }
 0x270   : > { %6663 = vmatprep.mubr.msk.f32.mxu1 %vm3834_vm4, %v8413_v19 }
 0x273   : > { %6664 = vmatmul.mubr.msk.f32.gmra.mxu1 %vm3834_vm4, %v8432_v28 }
 0x274   : > { %6666 = vmatprep.mubr.msk.f32.mxu1 %vm3834_vm4, %v8445_v6 }
 0x277   : > { %6667 = vmatmul.mubr.msk.f32.gmra.mxu1 %vm3834_vm4, %v8452_v22 }
 0x278   : > { %6669 = vmatprep.mubr.msk.f32.mxu1 %vm3834_vm4, %v8466_v63 }
 0x27b   : > { %6670 = vmatmul.mubr.msk.f32.gmra.mxu1 %vm3834_vm4, %v4942_v38 }
 0x2bb   : > { %v6564_v51 = vpop.f32.mrf.mxu1 }
 0x2bd   : > { %v4031_v25 = vpop.f32.mrf.mxu1 }
 0x2c3   : > { %v6620_v45 = vpop.f32.mrf.mxu0 }
 0x2c5   : > { %v8541_v5 = vpop.f32.mrf.mxu0 }
 0x2cb   : > { %v6567_v53 = vpop.f32.mrf.mxu1 }
 0x2cd   : > { %v4041_v20 = vpop.f32.mrf.mxu1 }
 0x2d3   : > { %v8543_v4 = vpop.f32.mrf.mxu0 }
 0x2d5   : > { %v8545_v31 = vpop.f32.mrf.mxu0 }
 0x2db   : > { %v6570_v19 = vpop.f32.mrf.mxu1 }
 0x2dd   : > { %v4051_v42 = vpop.f32.mrf.mxu1 }
 0x2e3   : > { %v8547_v62 = vpop.f32.mrf.mxu0 }
 0x2e5   : > { %v8549_v27 = vpop.f32.mrf.mxu0 }
 0x2eb   : > { %v8537_v0 = vpop.f32.mrf.mxu1 }
 0x2ed   : > { %v8539_v9 = vpop.f32.mrf.mxu1 }
 0x2ef   : > { %v6578_v58 = vpop.f32.mrf.mxu1 }
 0x2f0   : > { %v4166_v13 = vadd.f32 %v6578_v58, %v6564_v51 }
 0x2f1   : > { %v4160_v48 = vpop.f32.mrf.mxu1 }
 0x2f2   : > { %v4161_v43 = vadd.f32 %v4160_v48, %v4031_v25 }
 0x2f3   : > { %v6581_v24 = vpop.f32.mrf.mxu1  ;;  %v8551_v11 = vpop.f32.mrf.mxu0 }
 0x2f4   : > { %v4176_v50 = vadd.f32 %v6581_v24, %v6567_v53 }
 0x2f5   : > { %v4170_v12 = vpop.f32.mrf.mxu1  ;;  %v8553_v3 = vpop.f32.mrf.mxu0 }
 0x2f6   : > { %8838 = vst [vmem:[#allocation7_spill] sm:$0xff] %v8553_v3  ;;  %v4171_v54 = vadd.f32 %v4170_v12, %v4041_v20 }
 0x2f7   : > { %v6584_v49 = vpop.f32.mrf.mxu1  ;;  %v6648_v18 = vpop.f32.mrf.mxu0 }
 0x2f8   : > { %v4186_v40 = vadd.f32 %v6584_v49, %v6570_v19 }
 0x2f9   : > { %v4180_v44 = vpop.f32.mrf.mxu1  ;;  %v8555_v14 = vpop.f32.mrf.mxu0 }
 0x2fa   : > { %v4181_v51 = vadd.f32 %v4180_v44, %v4051_v42 }
 0x2fb   : > { %v6587_v36 = vpop.f32.mrf.mxu1  ;;  %v8557_v17 = vpop.f32.mrf.mxu0 }
 0x2fc   : > { %v4196_v24 = vadd.f32 %v6587_v36, %v8537_v0 }
 0x2fd   : > { %v4190_v35 = vpop.f32.mrf.mxu1  ;;  %v8559_v60 = vpop.f32.mrf.mxu0 }
 0x2fe   : > { %v4191_v49 = vadd.f32 %v4190_v35, %v8539_v9 }
 0x2ff   : > { %v6592_v28 = vpop.f32.mrf.mxu1  ;;  %v8561_v22 = vpop.f32.mrf.mxu0 }
 0x300   : > { %8839 = vst [vmem:[#allocation12_spill] sm:$0xff] %v8561_v22  ;;  %v4339_v30 = vadd.f32 %v6592_v28, %v4166_v13 }
 0x301   : > { %v4299_v52 = vpop.f32.mrf.mxu1  ;;  %v8563_v59 = vpop.f32.mrf.mxu0 }
 0x302   : > { %8840 = vst [vmem:[#allocation11_spill] sm:$0xff] %v8563_v59  ;;  %v4338_v47 = vadd.f32 %v4299_v52, %v4161_v43 }
 0x303   : > { %v6595_v41 = vpop.f32.mrf.mxu1  ;;  %v8565_v33 = vpop.f32.mrf.mxu0 }
 0x304   : > { %8841 = vst [vmem:[#allocation31_spill] sm:$0xff] %v8565_v33  ;;  %v4341_v10 = vadd.f32 %v6595_v41, %v4176_v50 }
 0x305   : > { %v4309_v39 = vpop.f32.mrf.mxu1  ;;  %v8567_v2 = vpop.f32.mrf.mxu0 }
 0x306   : > { %8842 = vst [vmem:[#allocation8_spill] sm:$0xff] %v8567_v2  ;;  %v4340_v33 = vadd.f32 %v4309_v39, %v4171_v54 }
 0x307   : > { %v6598_v16 = vpop.f32.mrf.mxu1  ;;  %v6676_v1 = vpop.f32.mrf.mxu0  ;;  %v8844_v43 = vld [vmem:[#allocation12_spill] sm:$0xff] }
 0x308   : > { %v4343_v58 = vadd.f32 %v6598_v16, %v4186_v40 }
 0x309   : > { %v4319_v15 = vpop.f32.mrf.mxu1  ;;  %v5182_v2 = vpop.f32.mrf.mxu0 }
 0x30a   : > { %v4342_v28 = vadd.f32 %v4319_v15, %v4181_v51 }
 0x30b   : > { %v6601_v23 = vpop.f32.mrf.mxu1 }
 0x30c   : > { %v4345_v41 = vadd.f32 %v6601_v23, %v4196_v24 }
 0x30d   : > { %v4329_v6 = vpop.f32.mrf.mxu1 }
 0x30f   : > { %v6606_v32 = vpop.f32.mrf.mxu1 }
 0x310   : > { %v4486_v55 = vadd.f32 %v6606_v32, %v4339_v30 }
 0x311   : > { %v4446_v26 = vpop.f32.mrf.mxu1 }
 0x312   : > { %v4485_v57 = vadd.f32 %v4446_v26, %v4338_v47  ;;  %v4633_v22 = vadd.f32 %v6620_v45, %v4486_v55  ;;  %v6679_v45 = vpop.f32.mrf.mxu0  ;;  %v4344_v26 = vadd.f32 %v4329_v6, %v4191_v49  ;;  %v8845_v47 = vld [vmem:[#allocation11_spill] sm:$0xff] }
 0x313   : > { %v6609_v56 = vpop.f32.mrf.mxu1 }
 0x314   : > { %v4488_v59 = vadd.f32 %v6609_v56, %v4341_v10  ;;  %v4632_v53 = vadd.f32 %v8541_v5, %v4485_v57  ;;  %v8846_v57 = vld [vmem:[#allocation31_spill] sm:$0xff] }
 0x315   : > { %v4456_v7 = vpop.f32.mrf.mxu1 }
 0x316   : > { %v4487_v25 = vadd.f32 %v4456_v7, %v4340_v33  ;;  %v4635_v19 = vadd.f32 %v8543_v4, %v4488_v59  ;;  %v5192_v4 = vpop.f32.mrf.mxu0 }
 0x317   : > { %v6612_v29 = vpop.f32.mrf.mxu1 }
 0x318   : > { %v4490_v52 = vadd.f32 %v6612_v29, %v4343_v58  ;;  %v4634_v16 = vadd.f32 %v8545_v31, %v4487_v25 }
 0x319   : > { %v4466_v37 = vpop.f32.mrf.mxu1 }
 0x31a   : > { %v4489_v42 = vadd.f32 %v4466_v37, %v4342_v28  ;;  %v4637_v0 = vadd.f32 %v8547_v62, %v4490_v52  ;;  %v5727_v62 = vld [vmem:[%s8607_s4] ss:$0 sm:$0xff] }
 0x31b   : > { %v6615_v63 = vpop.f32.mrf.mxu1 }
 0x31c   : > { %v4492_v5 = vadd.f32 %v6615_v63, %v4345_v41  ;;  %v4636_v35 = vadd.f32 %v8549_v27, %v4489_v42  ;;  %v8843_v27 = vld [vmem:[#allocation7_spill] sm:$0xff] }
 0x31d   : > { %v4476_v46 = vpop.f32.mrf.mxu1 }
 0x31e   : > { %v4491_v7 = vadd.f32 %v4476_v46, %v4344_v26  ;;  %v4639_v6 = vadd.f32 %v8551_v11, %v4492_v5  ;;  %v6682_v46 = vpop.f32.mrf.mxu0 }
 0x31f   : > { %v6634_v8 = vpop.f32.mrf.mxu1 }
 0x320   : > { %v4780_v48 = vadd.f32 %v6634_v8, %v4633_v22  ;;  %v4638_v13 = vadd.f32 %v8843_v27, %v4491_v7 }
 0x321   : > { %v4740_v34 = vpop.f32.mrf.mxu1 }
 0x322   : > { %v4779_v12 = vadd.f32 %v4740_v34, %v4632_v53  ;;  %v4928_v32 = vadd.f32 %v6648_v18, %v4780_v48 }
 0x323   : > { %v6637_v61 = vpop.f32.mrf.mxu1 }
 0x324   : > { %v4782_v39 = vadd.f32 %v6637_v61, %v4635_v19  ;;  %v4927_v22 = vadd.f32 %v8555_v14, %v4779_v12 }
 0x325   : > { %v4750_v21 = vpop.f32.mrf.mxu1 }
 0x326   : > { %v4781_v15 = vadd.f32 %v4750_v21, %v4634_v16  ;;  %v4930_v31 = vadd.f32 %v8557_v17, %v4782_v39 }
 0x327   : > { %v6640_v38 = vpop.f32.mrf.mxu1 }
 0x328   : > { %v4784_v9 = vadd.f32 %v6640_v38, %v4637_v0  ;;  %v4929_v33 = vadd.f32 %v8559_v60, %v4781_v15  ;;  %v5202_v60 = vpop.f32.mrf.mxu0 }
 0x329   : > { %v4760_v3 = vpop.f32.mrf.mxu1 }
 0x32a   : > { %v4783_v18 = vadd.f32 %v4760_v3, %v4636_v35  ;;  %v4932_v30 = vadd.f32 %v8844_v43, %v4784_v9  ;;  %v6685_v53 = vpop.f32.mrf.mxu0 }
 0x32b   : > { %v6643_v20 = vpop.f32.mrf.mxu1 }
 0x32c   : > { %v4786_v8 = vadd.f32 %v6643_v20, %v4639_v6  ;;  %v4931_v55 = vadd.f32 %v8845_v47, %v4783_v18  ;;  %v8847_v20 = vld [vmem:[#allocation8_spill] sm:$0xff] }
 0x32d   : > { %v4770_v44 = vpop.f32.mrf.mxu1 }
 0x32e   : > { %v4934_v40 = vadd.f32 %v8846_v57, %v4786_v8 }
 0x32f   : > { %v6662_v36 = vpop.f32.mrf.mxu1 }
 0x330   : > { %v5075_v56 = vadd.f32 %v6662_v36, %v4928_v32 }
 0x331   : > { %v5035_v23 = vpop.f32.mrf.mxu1 }
 0x332   : > { %v5222_v29 = vadd.f32 %v6676_v1, %v5075_v56  ;;  %v5074_v59 = vadd.f32 %v5035_v23, %v4927_v22  ;;  %v4785_v1 = vadd.f32 %v4770_v44, %v4638_v13  ;;  %v5212_v44 = vpop.f32.mrf.mxu0 }
 0x333   : > { %v6665_v37 = vpop.f32.mrf.mxu1 }
 0x334   : > { %v5221_v63 = vadd.f32 %v5182_v2, %v5074_v59  ;;  %v5077_v14 = vadd.f32 %v6665_v37, %v4930_v31  ;;  %v5237_v17 = vadd.f32 %v5727_v62, %v5222_v29  ;;  %v4933_v12 = vadd.f32 %v8847_v20, %v4785_v1 }
 0x335   : > { %v5045_v34 = vpop.f32.mrf.mxu1 }
 0x336   : > { %v5236_v3 = vadd.f32 %v5727_v62, %v5221_v63  ;;  %v5224_v61 = vadd.f32 %v6679_v45, %v5077_v14  ;;  %v5076_v11 = vadd.f32 %v5045_v34, %v4929_v33 }
 0x337   : > { %v6668_v50 = vpop.f32.mrf.mxu1 }
 0x338   : > { %v5244_v2 = vmax.f32 %v5236_v3, %v5237_v17  ;;  %v5223_v21 = vadd.f32 %v5192_v4, %v5076_v11  ;;  %v5079_v54 = vadd.f32 %v6668_v50, %v4932_v30  ;;  %v5239_v38 = vadd.f32 %v5727_v62, %v5224_v61 }
 0x339   : > { %v5055_v10 = vpop.f32.mrf.mxu1 }
 0x33a   : > { %5249 = vst.msk [vmem:[#allocation5] sm:$0xff] %vm5248_vm7, %v5244_v2  ;;  %v5238_v51 = vadd.f32 %v5727_v62, %v5223_v21  ;;  %v5226_v58 = vadd.f32 %v6682_v46, %v5079_v54  ;;  %v5078_v25 = vadd.f32 %v5055_v10, %v4931_v55 }
 0x33b   : > { %v6671_v48 = vpop.f32.mrf.mxu1 }
 0x33c   : > { %v5245_v24 = vmax.f32 %v5238_v51, %v5239_v38  ;;  %v5225_v28 = vadd.f32 %v5202_v60, %v5078_v25  ;;  %v5081_v52 = vadd.f32 %v6671_v48, %v4934_v40  ;;  %v5241_v49 = vadd.f32 %v5727_v62, %v5226_v58 }
 0x33d   : > { %v5065_v19 = vpop.f32.mrf.mxu1 }
 0x33e   : > { %5250 = vst.msk [vmem:[#allocation5 + $0x8] sm:$0xff] %vm5248_vm7, %v5245_v24  ;;  %v5240_v41 = vadd.f32 %v5727_v62, %v5225_v28  ;;  %v5228_v45 = vadd.f32 %v6685_v53, %v5081_v52  ;;  %v5080_v42 = vadd.f32 %v5065_v19, %v4933_v12 }
 0x340   : > { %v5246_v39 = vmax.f32 %v5240_v41, %v5241_v49  ;;  %v5227_v16 = vadd.f32 %v5212_v44, %v5080_v42  ;;  %v5243_v0 = vadd.f32 %v5727_v62, %v5228_v45 }
 0x341   : > { %v5253_v32 = vld [vmem:[#allocation5] ss:$2 sm:$0xf]  ;;  %v5261_v26 = vld [vmem:[#allocation5 + $0x1] ss:$2 sm:$0xf] }
 0x342   : > { %v5268_v5 = vmax.f32 %v5253_v32, %v5261_v26  ;;  %5251 = vst.msk [vmem:[#allocation5 + $0x10] sm:$0xff] %vm5248_vm7, %v5246_v39  ;;  %v5242_v36 = vadd.f32 %v5727_v62, %v5227_v16 }
 0x344   : > { %5273 = vst.msk [vmem:[%s224_s22] sm:$0xf] %vm5272_vm8, %v5268_v5  ;;  %v5247_v15 = vmax.f32 %v5242_v36, %v5243_v0 }
 0x345   : > { %v5255_v56 = vld [vmem:[#allocation5 + $0x8] ss:$2 sm:$0xf]  ;;  %v5263_v22 = vld [vmem:[#allocation5 + $0x9] ss:$2 sm:$0xf] }
 0x346   : > { %v5269_v4 = vmax.f32 %v5255_v56, %v5263_v22  ;;  %5252 = vst.msk [vmem:[#allocation5 + $0x18] sm:$0xff] %vm5248_vm7, %v5247_v15 }
 0x348   : > { %5274 = vst.msk [vmem:[%s224_s22 + $0x4] sm:$0xf] %vm5272_vm8, %v5269_v4 }
 0x349   : > { %v5257_v7 = vld [vmem:[#allocation5 + $0x10] ss:$2 sm:$0xf]  ;;  %v5265_v9 = vld [vmem:[#allocation5 + $0x11] ss:$2 sm:$0xf] }
 0x34a   : > { %v5270_v35 = vmax.f32 %v5257_v7, %v5265_v9 }
 0x34c   : > { %5275 = vst.msk [vmem:[%s224_s22 + $0x8] sm:$0xf] %vm5272_vm8, %v5270_v35 }
 0x34d   : > { %v5259_v23 = vld [vmem:[#allocation5 + $0x18] ss:$2 sm:$0xf]  ;;  %v5267_v29 = vld [vmem:[#allocation5 + $0x19] ss:$2 sm:$0xf] }
 0x34e   : > { %v5271_v59 = vmax.f32 %v5259_v23, %v5267_v29 }
 0x350   : > { %5276 = vst.msk [vmem:[%s224_s22 + $0xc] sm:$0xf] %vm5272_vm8, %v5271_v59 }
 0x351 PF: > { %s15_s18 = sadd.s32 1, %s6703_s18  }
 0x352   : > { %p12_p4 = scmp.ge.s32.totalorder %s15_s18, 4  }
 0x354   :  { %14 = sbr.rel (!%p12_p4) target bundleno = 1 (0x1), region = 114 }

</bundles_post_ra>
